<compile_context>
chip_gen: v6e
topology: v6e:2x2x1
jax: 0.10.0
libtpu: 0.0.40
codegen_flags: <defaults>
</compile_context>

<pallas_src>
import functools

import jax
import jax.numpy as jnp
from jax import lax
from jax.experimental import pallas as pl
from jax.experimental.pallas import tpu as pltpu


def _round_up(x, m):
    return ((x + m - 1) // m) * m


def _conv_bn_relu_kernel(xc_ref, xt_ref, w_ref, b_ref, o_ref, xbuf_ref, *,
                         shifts, tm, tsub, apply_relu, res_mode, d_center):
    # xc_ref  : (tm, C)          bf16  rows [i*tm, (i+1)*tm) of the flat padded input
    # xt_ref  : (ttail, C)       bf16  rows [(i+1)*tm, (i+1)*tm + ttail) (window tail)
    # w_ref   : (slots, C, Op)   bf16  per-tap weights (BN scale folded in);
    #                                  slot ks*ks is the identity slot iff res_mode=="matmul"
    # b_ref   : (1, Op)          f32   folded BN bias
    # o_ref   : (tm, Op)               output rows
    # xbuf_ref: (tm + ttail, C)  bf16  contiguous window so tap slices can cross the
    #                                  tile boundary (both stores are sublane-aligned)
    xbuf_ref[0:tm, :] = xc_ref[...]
    xbuf_ref[tm:, :] = xt_ref[...]
    bias = b_ref[...]                                     # (1, Op) f32

    # Invariant (relied on by the final wrapper slice): kept output rows satisfy
    # y + ki <= hp - 1 and x + kj <= wp - 1, so tap reads never cross an image
    # boundary, and row + d <= tm - 1 + d_max <= tm + ttail - 1 (ttail >= d_max).
    for s in range(tm // tsub):                           # static unroll over sub-chunks
        base = s * tsub
        acc = None
        for t, d in enumerate(shifts):                    # ks*ks taps, f32 MXU accum
            part = jnp.dot(xbuf_ref[base + d:base + d + tsub, :], w_ref[t],
                           preferred_element_type=jnp.float32)
            acc = part if acc is None else acc + part
        acc = acc + bias
        if apply_relu:
            acc = jnp.maximum(acc, 0.0)
        if res_mode == "add":
            # out_cp == out_c == in_c: residual rides the VPU (no extra matmul)
            acc = acc + xbuf_ref[base + d_center:base + d_center + tsub,
                                 :].astype(jnp.float32)
        elif res_mode == "matmul":
            # lane-padded output: inject the residual via an identity tap
            acc = acc + jnp.dot(
                xbuf_ref[base + d_center:base + d_center + tsub, :],
                w_ref[len(shifts)], preferred_element_type=jnp.float32)
        o_ref[base:base + tsub, :] = acc.astype(o_ref.dtype)


def _conv_bn_relu_impl(x, weight, gamma, beta, running_mean, running_var, *,
                       ks, norm, res, eps, tm_hint, out_dtype, output_nchw,
                       vmem_limit_bytes, conservative):
    n, in_c, h, w = x.shape
    out_c = weight.shape[0]
    p = ks // 2
    hp, wp = h + 2 * p, w + 2 * p

    # ---- fold BatchNorm (eval mode) into weight scale / bias ---------------
    if norm:
        scale = gamma / jnp.sqrt(running_var + eps)
        bias = beta - running_mean * scale
    else:
        scale = jnp.ones((out_c,), jnp.float32)
        bias = jnp.zeros((out_c,), jnp.float32)

    # Lane padding only when it pays off (tiny out_c stays unpadded: 16x less
    # output HBM).  The conservative path uses the previously-validated
    # 128-lane-padded layout.
    if not conservative and (out_c % 128 == 0 or out_c < 64):
        out_cp = out_c
    else:
        out_cp = _round_up(out_c, 128)

    # per-tap weights (ks*ks, in_c, out_cp); tap t = ki*ks + kj, scale folded in
    w_taps = jnp.transpose(weight, (2, 3, 1, 0)).reshape(ks * ks, in_c, out_c)
    w_taps = w_taps * scale.reshape(1, 1, out_c)
    if out_cp != out_c:
        w_taps = jnp.pad(w_taps, ((0, 0), (0, 0), (0, out_cp - out_c)))
    res_mode = "none"
    if res:
        if out_cp == out_c and not conservative:
            res_mode = "add"                          # fused VPU add in-kernel
        else:
            res_mode = "matmul"                       # identity tap (padded lanes)
            ident = jnp.zeros((1, in_c, out_cp), jnp.float32)
            ident = ident.at[0, :, :out_c].set(jnp.eye(in_c, dtype=jnp.float32))
            w_taps = jnp.concatenate([w_taps, ident], axis=0)
    w_all = w_taps.astype(jnp.bfloat16)
    bias_p = jnp.pad(bias.astype(jnp.float32),
                     (0, out_cp - out_c)).reshape(1, out_cp)

    # ---- input: cast+NCHW->NHWC+pad in one pass, then flatten ---------------
    xp = jnp.pad(jnp.transpose(x.astype(jnp.bfloat16), (0, 2, 3, 1)),
                 ((0, 0), (p, p), (p, p), (0, 0)))
    m_valid = n * hp * wp
    x2 = xp.reshape(m_valid, in_c)

    shifts = tuple(ki * wp + kj for ki in range(ks) for kj in range(ks))
    d_center = p * wp + p
    d_max = max(shifts)
    ttail = _round_up(max(d_max, 16), 16)            # just >= d_max, 16-row aligned

    # sub-chunk rows: keep the f32 accumulator ~<= 16 vregs (register resident)
    lane_tiles = max(1, pl.cdiv(out_cp, 128))
    tsub = max(8, min(128, (16 // lane_tiles) * 8))

    tm = _round_up(max(tm_hint, tsub), tsub)
    # small images: aim for >= ~4 row tiles so both v7x TensorCores get work
    tm = min(tm, max(tsub, _round_up(pl.cdiv(m_valid, 4), tsub)))

    # clamp tm so the VMEM plan (double-buffered worst case, lane-padded
    # storage) stays within ~75% of the limit
    out_isz = jnp.dtype(out_dtype).itemsize

    def vmem_plan(tm_):
        lane = lambda c: _round_up(c, 128)
        r16 = lambda r: _round_up(r, 16)
        xc = 2 * tm_ * lane(in_c) * 2
        xt = 2 * r16(ttail) * lane(in_c) * 2
        wgt = 2 * w_all.shape[0] * r16(in_c) * lane(out_cp) * 2
        bia = 2 * 16 * lane(out_cp) * 4
        outb = 2 * tm_ * lane(out_cp) * out_isz
        xbuf = (tm_ + r16(ttail)) * lane(in_c) * 2
        return xc + xt + wgt + bia + outb + xbuf

    while tm > tsub and vmem_plan(tm) > int(0.75 * vmem_limit_bytes):
        tm = max(tsub, _round_up(tm // 2, tsub))

    nt = pl.cdiv(m_valid, tm)                        # 1-D grid over row tiles
    m_rows = nt * tm + ttail                         # only ttail extra rows padded
    x2 = jnp.pad(x2, ((0, m_rows - m_valid), (0, 0)))

    # per-tile window tails: rows [(i+1)*tm, (i+1)*tm + ttail) — tiny side array,
    # removes the old duplicate full input stream and the ttail | tm constraint
    tail_idx = (jnp.arange(nt)[:, None] + 1) * tm + jnp.arange(ttail)[None, :]
    tails = x2[tail_idx]                             # (nt, ttail, in_c) bf16

    kernel = functools.partial(
        _conv_bn_relu_kernel, shifts=shifts, tm=tm, tsub=tsub,
        apply_relu=norm, res_mode=res_mode, d_center=d_center)

    const_kw = {} if conservative else {"pipeline_mode": pl.Buffered(1)}
    grid_spec = pltpu.PrefetchScalarGridSpec(
        num_scalar_prefetch=0,
        grid=(nt,),
        in_specs=[
            pl.BlockSpec((tm, in_c), lambda i: (i, 0)),
            pl.BlockSpec((None, ttail, in_c), lambda i: (i, 0, 0)),
            pl.BlockSpec(w_all.shape, lambda i: (0, 0, 0), **const_kw),
            pl.BlockSpec((1, out_cp), lambda i: (0, 0), **const_kw),
        ],
        out_specs=pl.BlockSpec((tm, out_cp), lambda i: (i, 0)),
        scratch_shapes=[pltpu.VMEM((tm + ttail, in_c), jnp.bfloat16)],
    )
    out_flat = pl.pallas_call(
        kernel,
        out_shape=jax.ShapeDtypeStruct((nt * tm, out_cp), out_dtype),
        grid_spec=grid_spec,
        compiler_params=pltpu.CompilerParams(
            dimension_semantics=("parallel",),
            vmem_limit_bytes=vmem_limit_bytes),
    )(x2, tails, w_all, bias_p)

    # gather the valid output rows: (N, Hp, Wp, out_cp) -> (N, H, W, out_c)
    y = out_flat[:m_valid].reshape(n, hp, wp, out_cp)[:, :h, :w, :out_c]
    if output_nchw:
        y = jnp.transpose(y, (0, 3, 1, 2))
    return y


def conv_bn_relu(x, weight, gamma, beta, running_mean, running_var, *,
                 ks, stride=1, norm=True, res=False, eps=1e-5,
                 tm=1024, out_dtype=None, output_nchw=True,
                 vmem_limit_bytes=48 * 1024 * 1024):
    """Forward pass of ConvBNReLU.

    x:      (N, in_c, H, W)   float32, NCHW (PyTorch convention)
    weight: (out_c, in_c, ks, ks)
    """
    assert ks % 2 == 1, "only odd kernel sizes (padding = ks // 2) are supported"
    # TODO(synk): stride > 1 is not expressible in the flat row-shift
    # formulation used here; only the module's default stride=1 is implemented.
    assert stride == 1, "only stride=1 is implemented"
    if res:
        assert x.shape[1] == weight.shape[0], "residual requires in_c == out_c"
    out_dtype = x.dtype if out_dtype is None else out_dtype

    kwargs = dict(ks=ks, norm=norm, res=res, eps=eps, tm_hint=tm,
                  out_dtype=out_dtype, output_nchw=output_nchw,
                  vmem_limit_bytes=vmem_limit_bytes)
    try:
        return _conv_bn_relu_impl(x, weight, gamma, beta, running_mean,
                                  running_var, conservative=False, **kwargs)
    except Exception:
        # Fall back to the previously-validated configuration (128-lane-padded
        # output, identity-matmul residual, default double-buffered constants)
        # in case this jax build rejects Buffered(1) or narrow-N matmuls.
        return _conv_bn_relu_impl(x, weight, gamma, beta, running_mean,
                                  running_var, conservative=True, **kwargs)


# ----------------------------- references ----------------------------------
def _reference_f32(x, weight, gamma, beta, running_mean, running_var, *,
                   ks, stride=1, norm=True, res=False, eps=1e-5):
    y = lax.conv_general_dilated(
        x, weight, (stride, stride),
        [(ks // 2, ks // 2), (ks // 2, ks // 2)],
        dimension_numbers=("NCHW", "OIHW", "NCHW"))
    if norm:
        s = (gamma / jnp.sqrt(running_var + eps)).reshape(1, -1, 1, 1)
        b = (beta - running_mean * gamma / jnp.sqrt(running_var + eps)
             ).reshape(1, -1, 1, 1)
        y = jnp.maximum(y * s + b, 0.0)
    if res:
        y = x + y
    return y


def _reference_bf16_matched(x, weight, gamma, beta, running_mean, running_var,
                            *, ks, stride=1, norm=True, res=False, eps=1e-5):
    """Same math as the kernel (bf16-rounded activations / folded weights)."""
    if norm:
        scale = gamma / jnp.sqrt(running_var + eps)
        bias = beta - running_mean * scale
    else:
        scale = jnp.ones((weight.shape[0],), jnp.float32)
        bias = jnp.zeros((weight.shape[0],), jnp.float32)
    w_eff = (weight * scale.reshape(-1, 1, 1, 1)
             ).astype(jnp.bfloat16).astype(jnp.float32)
    x_bf = x.astype(jnp.bfloat16).astype(jnp.float32)
    y = lax.conv_general_dilated(
        x_bf, w_eff, (stride, stride),
        [(ks // 2, ks // 2), (ks // 2, ks // 2)],
        dimension_numbers=("NCHW", "OIHW", "NCHW"))
    y = y + bias.reshape(1, -1, 1, 1)
    if norm:
        y = jnp.maximum(y, 0.0)
    if res:
        y = x_bf + y
    return y


if __name__ == "__main__":
    key = jax.random.PRNGKey(0)
    k_x, k_w, k_g, k_b, k_m, k_v, k_x2, k_w2 = jax.random.split(key, 8)

    # --- case 1: ConvBNReLU(in_c=4, out_c=8, ks=3), no residual -------------
    N, in_c, H, W = 2, 4, 16, 16
    out_c, ks = 8, 3
    x = jax.random.normal(k_x, (N, in_c, H, W), jnp.float32)
    weight = jax.random.normal(k_w, (out_c, in_c, ks, ks), jnp.float32) * 0.1
    gamma = 1.0 + 0.1 * jax.random.normal(k_g, (out_c,), jnp.float32)
    beta = 0.1 * jax.random.normal(k_b, (out_c,), jnp.float32)
    running_mean = 0.05 * jax.random.normal(k_m, (out_c,), jnp.float32)
    running_var = 1.0 + 0.1 * jax.random.uniform(k_v, (out_c,), jnp.float32)

    out = conv_bn_relu(x, weight, gamma, beta, running_mean, running_var,
                       ks=ks, norm=True, res=False)
    out = jax.block_until_ready(out)
    assert out.shape == (N, out_c, H, W)

    ref_m = _reference_bf16_matched(x, weight, gamma, beta, running_mean,
                                    running_var, ks=ks, norm=True, res=False)
    assert jnp.allclose(out, ref_m, atol=2e-3, rtol=2e-3), \
        "mismatch vs bf16-matched reference"
    ref_f = _reference_f32(x, weight, gamma, beta, running_mean, running_var,
                           ks=ks, norm=True, res=False)
    assert jnp.allclose(out, ref_f, atol=5e-2, rtol=5e-2), \
        "mismatch vs f32 reference"

    # --- case 2: residual variant (in_c == out_c), fused in-kernel ----------
    C2 = 8
    x_r = jax.random.normal(k_x2, (N, C2, H, W), jnp.float32)
    w_r = jax.random.normal(k_w2, (C2, C2, ks, ks), jnp.float32) * 0.1
    out_r = conv_bn_relu(x_r, w_r, gamma, beta, running_mean, running_var,
                         ks=ks, norm=True, res=True)
    out_r = jax.block_until_ready(out_r)
    assert out_r.shape == (N, C2, H, W)
    ref_r = _reference_bf16_matched(x_r, w_r, gamma, beta, running_mean,
                                    running_var, ks=ks, norm=True, res=True)
    assert jnp.allclose(out_r, ref_r, atol=2e-3, rtol=2e-3), \
        "mismatch (residual path)"

    # --- case 3: norm=False (plain conv, no ReLU / BN) -----------------------
    out_c3 = conv_bn_relu(x, weight, gamma, beta, running_mean, running_var,
                          ks=ks, norm=False, res=False)
    out_c3 = jax.block_until_ready(out_c3)
    ref_c3 = _reference_bf16_matched(x, weight, gamma, beta, running_mean,
                                     running_var, ks=ks, norm=False, res=False)
    assert jnp.allclose(out_c3, ref_c3, atol=2e-3, rtol=2e-3), \
        "mismatch (norm=False path)"

    print("KERNEL_OK")
</pallas_src>

<mosaic_0001>
module attributes {stable_mosaic.version = 11 : i64} {
  func.func @_conv_bn_relu_kernel(%arg0: i32, %arg1: memref<256x4xbf16, #tpu.memory_space<vmem>>, %arg2: memref<1x48x4xbf16, #tpu.memory_space<vmem>>, %arg3: memref<9x4x8xbf16, #tpu.memory_space<vmem>>, %arg4: memref<1x8xf32, #tpu.memory_space<vmem>>, %arg5: memref<256x8xf32, #tpu.memory_space<vmem>>, %arg6: memref<304x4xbf16, #tpu.memory_space<vmem>>) attributes {dimension_semantics = [#tpu.dimension_semantics<parallel>], iteration_bounds = array<i64: 3>, scalar_prefetch = 0 : i64, scratch_operands = 1 : i64, tpu.core_type = #tpu.core_type<tc>, window_params = [{transform_indices = @transform_0, window_bounds = array<i64: 256, 4>}, {transform_indices = @transform_1, window_bounds = array<i64: 1, 48, 4>}, {pipeline_mode = #tpu.pipeline_mode<synchronous>, transform_indices = @transform_2, window_bounds = array<i64: 9, 4, 8>}, {pipeline_mode = #tpu.pipeline_mode<synchronous>, transform_indices = @transform_3, window_bounds = array<i64: 1, 8>}, {transform_indices = @transform_4, window_bounds = array<i64: 256, 8>}]} {
    %c0 = arith.constant 0 : index
    %c0_0 = arith.constant 0 : index
    %0 = vector.load %arg1[%c0, %c0_0] : memref<256x4xbf16, #tpu.memory_space<vmem>>, vector<256x4xbf16>
    %c0_1 = arith.constant 0 : index
    %c0_2 = arith.constant 0 : index
    %1 = vector.load %arg6[%c0_1, %c0_2] : memref<304x4xbf16, #tpu.memory_space<vmem>>, vector<256x4xbf16>
    tpu.vector_store %arg6[%c0_1, %c0_2], %0 {strides = array<i32>} : memref<304x4xbf16, #tpu.memory_space<vmem>>, vector<256x4xbf16>,
    %c0_3 = arith.constant 0 : index
    %c0_4 = arith.constant 0 : index
    %c0_5 = arith.constant 0 : index
    %2 = vector.load %arg2[%c0_3, %c0_4, %c0_5] : memref<1x48x4xbf16, #tpu.memory_space<vmem>>, vector<1x48x4xbf16>
    %3 = vector.shape_cast %2 : vector<1x48x4xbf16> to vector<48x4xbf16>
    %c256 = arith.constant 256 : index
    %c0_6 = arith.constant 0 : index
    %4 = vector.load %arg6[%c256, %c0_6] : memref<304x4xbf16, #tpu.memory_space<vmem>>, vector<48x4xbf16>
    tpu.vector_store %arg6[%c256, %c0_6], %3 {strides = array<i32>} : memref<304x4xbf16, #tpu.memory_space<vmem>>, vector<48x4xbf16>,
    %c0_7 = arith.constant 0 : index
    %c0_8 = arith.constant 0 : index
    %5 = vector.load %arg4[%c0_7, %c0_8] : memref<1x8xf32, #tpu.memory_space<vmem>>, vector<1x8xf32>
    %c0_9 = arith.constant 0 : index
    %c0_10 = arith.constant 0 : index
    %6 = vector.load %arg6[%c0_9, %c0_10] : memref<304x4xbf16, #tpu.memory_space<vmem>>, vector<128x4xbf16>
    %c0_11 = arith.constant 0 : index
    %c0_12 = arith.constant 0 : index
    %c0_13 = arith.constant 0 : index
    %7 = vector.load %arg3[%c0_11, %c0_12, %c0_13] : memref<9x4x8xbf16, #tpu.memory_space<vmem>>, vector<1x4x8xbf16>
    %8 = vector.shape_cast %7 : vector<1x4x8xbf16> to vector<4x8xbf16>
    %cst = arith.constant dense<0.000000e+00> : vector<128x8xf32>
    %9 = tpu.matmul %6, %8, %cst {dimension_numbers = #tpu.dot_dimension_numbers<[1], [0], [0], [1], [0, 0, 1, 1], [], []>} : vector<128x4xbf16>, vector<4x8xbf16>, vector<128x8xf32> -> vector<128x8xf32>
    %c1 = arith.constant 1 : index
    %c0_14 = arith.constant 0 : index
    %10 = vector.load %arg6[%c1, %c0_14] : memref<304x4xbf16, #tpu.memory_space<vmem>>, vector<128x4xbf16>
    %c1_15 = arith.constant 1 : index
    %c0_16 = arith.constant 0 : index
    %c0_17 = arith.constant 0 : index
    %11 = vector.load %arg3[%c1_15, %c0_16, %c0_17] : memref<9x4x8xbf16, #tpu.memory_space<vmem>>, vector<1x4x8xbf16>
    %12 = vector.shape_cast %11 : vector<1x4x8xbf16> to vector<4x8xbf16>
    %cst_18 = arith.constant dense<0.000000e+00> : vector<128x8xf32>
    %13 = tpu.matmul %10, %12, %cst_18 {dimension_numbers = #tpu.dot_dimension_numbers<[1], [0], [0], [1], [0, 0, 1, 1], [], []>} : vector<128x4xbf16>, vector<4x8xbf16>, vector<128x8xf32> -> vector<128x8xf32>
    %14 = arith.addf %9, %13 : vector<128x8xf32>
    %c2 = arith.constant 2 : index
    %c0_19 = arith.constant 0 : index
    %15 = vector.load %arg6[%c2, %c0_19] : memref<304x4xbf16, #tpu.memory_space<vmem>>, vector<128x4xbf16>
    %c2_20 = arith.constant 2 : index
    %c0_21 = arith.constant 0 : index
    %c0_22 = arith.constant 0 : index
    %16 = vector.load %arg3[%c2_20, %c0_21, %c0_22] : memref<9x4x8xbf16, #tpu.memory_space<vmem>>, vector<1x4x8xbf16>
    %17 = vector.shape_cast %16 : vector<1x4x8xbf16> to vector<4x8xbf16>
    %cst_23 = arith.constant dense<0.000000e+00> : vector<128x8xf32>
    %18 = tpu.matmul %15, %17, %cst_23 {dimension_numbers = #tpu.dot_dimension_numbers<[1], [0], [0], [1], [0, 0, 1, 1], [], []>} : vector<128x4xbf16>, vector<4x8xbf16>, vector<128x8xf32> -> vector<128x8xf32>
    %19 = arith.addf %14, %18 : vector<128x8xf32>
    %c18 = arith.constant 18 : index
    %c0_24 = arith.constant 0 : index
    %20 = vector.load %arg6[%c18, %c0_24] : memref<304x4xbf16, #tpu.memory_space<vmem>>, vector<128x4xbf16>
    %c3 = arith.constant 3 : index
    %c0_25 = arith.constant 0 : index
    %c0_26 = arith.constant 0 : index
    %21 = vector.load %arg3[%c3, %c0_25, %c0_26] : memref<9x4x8xbf16, #tpu.memory_space<vmem>>, vector<1x4x8xbf16>
    %22 = vector.shape_cast %21 : vector<1x4x8xbf16> to vector<4x8xbf16>
    %cst_27 = arith.constant dense<0.000000e+00> : vector<128x8xf32>
    %23 = tpu.matmul %20, %22, %cst_27 {dimension_numbers = #tpu.dot_dimension_numbers<[1], [0], [0], [1], [0, 0, 1, 1], [], []>} : vector<128x4xbf16>, vector<4x8xbf16>, vector<128x8xf32> -> vector<128x8xf32>
    %24 = arith.addf %19, %23 : vector<128x8xf32>
    %c19 = arith.constant 19 : index
    %c0_28 = arith.constant 0 : index
    %25 = vector.load %arg6[%c19, %c0_28] : memref<304x4xbf16, #tpu.memory_space<vmem>>, vector<128x4xbf16>
    %c4 = arith.constant 4 : index
    %c0_29 = arith.constant 0 : index
    %c0_30 = arith.constant 0 : index
    %26 = vector.load %arg3[%c4, %c0_29, %c0_30] : memref<9x4x8xbf16, #tpu.memory_space<vmem>>, vector<1x4x8xbf16>
    %27 = vector.shape_cast %26 : vector<1x4x8xbf16> to vector<4x8xbf16>
    %cst_31 = arith.constant dense<0.000000e+00> : vector<128x8xf32>
    %28 = tpu.matmul %25, %27, %cst_31 {dimension_numbers = #tpu.dot_dimension_numbers<[1], [0], [0], [1], [0, 0, 1, 1], [], []>} : vector<128x4xbf16>, vector<4x8xbf16>, vector<128x8xf32> -> vector<128x8xf32>
    %29 = arith.addf %24, %28 : vector<128x8xf32>
    %c20 = arith.constant 20 : index
    %c0_32 = arith.constant 0 : index
    %30 = vector.load %arg6[%c20, %c0_32] : memref<304x4xbf16, #tpu.memory_space<vmem>>, vector<128x4xbf16>
    %c5 = arith.constant 5 : index
    %c0_33 = arith.constant 0 : index
    %c0_34 = arith.constant 0 : index
    %31 = vector.load %arg3[%c5, %c0_33, %c0_34] : memref<9x4x8xbf16, #tpu.memory_space<vmem>>, vector<1x4x8xbf16>
    %32 = vector.shape_cast %31 : vector<1x4x8xbf16> to vector<4x8xbf16>
    %cst_35 = arith.constant dense<0.000000e+00> : vector<128x8xf32>
    %33 = tpu.matmul %30, %32, %cst_35 {dimension_numbers = #tpu.dot_dimension_numbers<[1], [0], [0], [1], [0, 0, 1, 1], [], []>} : vector<128x4xbf16>, vector<4x8xbf16>, vector<128x8xf32> -> vector<128x8xf32>
    %34 = arith.addf %29, %33 : vector<128x8xf32>
    %c36 = arith.constant 36 : index
    %c0_36 = arith.constant 0 : index
    %35 = vector.load %arg6[%c36, %c0_36] : memref<304x4xbf16, #tpu.memory_space<vmem>>, vector<128x4xbf16>
    %c6 = arith.constant 6 : index
    %c0_37 = arith.constant 0 : index
    %c0_38 = arith.constant 0 : index
    %36 = vector.load %arg3[%c6, %c0_37, %c0_38] : memref<9x4x8xbf16, #tpu.memory_space<vmem>>, vector<1x4x8xbf16>
    %37 = vector.shape_cast %36 : vector<1x4x8xbf16> to vector<4x8xbf16>
    %cst_39 = arith.constant dense<0.000000e+00> : vector<128x8xf32>
    %38 = tpu.matmul %35, %37, %cst_39 {dimension_numbers = #tpu.dot_dimension_numbers<[1], [0], [0], [1], [0, 0, 1, 1], [], []>} : vector<128x4xbf16>, vector<4x8xbf16>, vector<128x8xf32> -> vector<128x8xf32>
    %39 = arith.addf %34, %38 : vector<128x8xf32>
    %c37 = arith.constant 37 : index
    %c0_40 = arith.constant 0 : index
    %40 = vector.load %arg6[%c37, %c0_40] : memref<304x4xbf16, #tpu.memory_space<vmem>>, vector<128x4xbf16>
    %c7 = arith.constant 7 : index
    %c0_41 = arith.constant 0 : index
    %c0_42 = arith.constant 0 : index
    %41 = vector.load %arg3[%c7, %c0_41, %c0_42] : memref<9x4x8xbf16, #tpu.memory_space<vmem>>, vector<1x4x8xbf16>
    %42 = vector.shape_cast %41 : vector<1x4x8xbf16> to vector<4x8xbf16>
    %cst_43 = arith.constant dense<0.000000e+00> : vector<128x8xf32>
    %43 = tpu.matmul %40, %42, %cst_43 {dimension_numbers = #tpu.dot_dimension_numbers<[1], [0], [0], [1], [0, 0, 1, 1], [], []>} : vector<128x4xbf16>, vector<4x8xbf16>, vector<128x8xf32> -> vector<128x8xf32>
    %44 = arith.addf %39, %43 : vector<128x8xf32>
    %c38 = arith.constant 38 : index
    %c0_44 = arith.constant 0 : index
    %45 = vector.load %arg6[%c38, %c0_44] : memref<304x4xbf16, #tpu.memory_space<vmem>>, vector<128x4xbf16>
    %c8 = arith.constant 8 : index
    %c0_45 = arith.constant 0 : index
    %c0_46 = arith.constant 0 : index
    %46 = vector.load %arg3[%c8, %c0_45, %c0_46] : memref<9x4x8xbf16, #tpu.memory_space<vmem>>, vector<1x4x8xbf16>
    %47 = vector.shape_cast %46 : vector<1x4x8xbf16> to vector<4x8xbf16>
    %cst_47 = arith.constant dense<0.000000e+00> : vector<128x8xf32>
    %48 = tpu.matmul %45, %47, %cst_47 {dimension_numbers = #tpu.dot_dimension_numbers<[1], [0], [0], [1], [0, 0, 1, 1], [], []>} : vector<128x4xbf16>, vector<4x8xbf16>, vector<128x8xf32> -> vector<128x8xf32>
    %49 = arith.addf %44, %48 : vector<128x8xf32>
    %50 = vector.broadcast %5 : vector<1x8xf32> to vector<128x8xf32>
    %51 = arith.addf %49, %50 : vector<128x8xf32>
    %cst_48 = arith.constant 0.000000e+00 : f32
    %52 = vector.broadcast %cst_48 : f32 to vector<128x8xf32>
    %53 = arith.maximumf %51, %52 : vector<128x8xf32>
    %c0_49 = arith.constant 0 : index
    %c0_50 = arith.constant 0 : index
    %54 = vector.load %arg5[%c0_49, %c0_50] : memref<256x8xf32, #tpu.memory_space<vmem>>, vector<128x8xf32>
    tpu.vector_store %arg5[%c0_49, %c0_50], %53 {strides = array<i32>} : memref<256x8xf32, #tpu.memory_space<vmem>>, vector<128x8xf32>,
    %c128 = arith.constant 128 : index
    %c0_51 = arith.constant 0 : index
    %55 = vector.load %arg6[%c128, %c0_51] : memref<304x4xbf16, #tpu.memory_space<vmem>>, vector<128x4xbf16>
    %c0_52 = arith.constant 0 : index
    %c0_53 = arith.constant 0 : index
    %c0_54 = arith.constant 0 : index
    %56 = vector.load %arg3[%c0_52, %c0_53, %c0_54] : memref<9x4x8xbf16, #tpu.memory_space<vmem>>, vector<1x4x8xbf16>
    %57 = vector.shape_cast %56 : vector<1x4x8xbf16> to vector<4x8xbf16>
    %cst_55 = arith.constant dense<0.000000e+00> : vector<128x8xf32>
    %58 = tpu.matmul %55, %57, %cst_55 {dimension_numbers = #tpu.dot_dimension_numbers<[1], [0], [0], [1], [0, 0, 1, 1], [], []>} : vector<128x4xbf16>, vector<4x8xbf16>, vector<128x8xf32> -> vector<128x8xf32>
    %c129 = arith.constant 129 : index
    %c0_56 = arith.constant 0 : index
    %59 = vector.load %arg6[%c129, %c0_56] : memref<304x4xbf16, #tpu.memory_space<vmem>>, vector<128x4xbf16>
    %c1_57 = arith.constant 1 : index
    %c0_58 = arith.constant 0 : index
    %c0_59 = arith.constant 0 : index
    %60 = vector.load %arg3[%c1_57, %c0_58, %c0_59] : memref<9x4x8xbf16, #tpu.memory_space<vmem>>, vector<1x4x8xbf16>
    %61 = vector.shape_cast %60 : vector<1x4x8xbf16> to vector<4x8xbf16>
    %cst_60 = arith.constant dense<0.000000e+00> : vector<128x8xf32>
    %62 = tpu.matmul %59, %61, %cst_60 {dimension_numbers = #tpu.dot_dimension_numbers<[1], [0], [0], [1], [0, 0, 1, 1], [], []>} : vector<128x4xbf16>, vector<4x8xbf16>, vector<128x8xf32> -> vector<128x8xf32>
    %63 = arith.addf %58, %62 : vector<128x8xf32>
    %c130 = arith.constant 130 : index
    %c0_61 = arith.constant 0 : index
    %64 = vector.load %arg6[%c130, %c0_61] : memref<304x4xbf16, #tpu.memory_space<vmem>>, vector<128x4xbf16>
    %c2_62 = arith.constant 2 : index
    %c0_63 = arith.constant 0 : index
    %c0_64 = arith.constant 0 : index
    %65 = vector.load %arg3[%c2_62, %c0_63, %c0_64] : memref<9x4x8xbf16, #tpu.memory_space<vmem>>, vector<1x4x8xbf16>
    %66 = vector.shape_cast %65 : vector<1x4x8xbf16> to vector<4x8xbf16>
    %cst_65 = arith.constant dense<0.000000e+00> : vector<128x8xf32>
    %67 = tpu.matmul %64, %66, %cst_65 {dimension_numbers = #tpu.dot_dimension_numbers<[1], [0], [0], [1], [0, 0, 1, 1], [], []>} : vector<128x4xbf16>, vector<4x8xbf16>, vector<128x8xf32> -> vector<128x8xf32>
    %68 = arith.addf %63, %67 : vector<128x8xf32>
    %c146 = arith.constant 146 : index
    %c0_66 = arith.constant 0 : index
    %69 = vector.load %arg6[%c146, %c0_66] : memref<304x4xbf16, #tpu.memory_space<vmem>>, vector<128x4xbf16>
    %c3_67 = arith.constant 3 : index
    %c0_68 = arith.constant 0 : index
    %c0_69 = arith.constant 0 : index
    %70 = vector.load %arg3[%c3_67, %c0_68, %c0_69] : memref<9x4x8xbf16, #tpu.memory_space<vmem>>, vector<1x4x8xbf16>
    %71 = vector.shape_cast %70 : vector<1x4x8xbf16> to vector<4x8xbf16>
    %cst_70 = arith.constant dense<0.000000e+00> : vector<128x8xf32>
    %72 = tpu.matmul %69, %71, %cst_70 {dimension_numbers = #tpu.dot_dimension_numbers<[1], [0], [0], [1], [0, 0, 1, 1], [], []>} : vector<128x4xbf16>, vector<4x8xbf16>, vector<128x8xf32> -> vector<128x8xf32>
    %73 = arith.addf %68, %72 : vector<128x8xf32>
    %c147 = arith.constant 147 : index
    %c0_71 = arith.constant 0 : index
    %74 = vector.load %arg6[%c147, %c0_71] : memref<304x4xbf16, #tpu.memory_space<vmem>>, vector<128x4xbf16>
    %c4_72 = arith.constant 4 : index
    %c0_73 = arith.constant 0 : index
    %c0_74 = arith.constant 0 : index
    %75 = vector.load %arg3[%c4_72, %c0_73, %c0_74] : memref<9x4x8xbf16, #tpu.memory_space<vmem>>, vector<1x4x8xbf16>
    %76 = vector.shape_cast %75 : vector<1x4x8xbf16> to vector<4x8xbf16>
    %cst_75 = arith.constant dense<0.000000e+00> : vector<128x8xf32>
    %77 = tpu.matmul %74, %76, %cst_75 {dimension_numbers = #tpu.dot_dimension_numbers<[1], [0], [0], [1], [0, 0, 1, 1], [], []>} : vector<128x4xbf16>, vector<4x8xbf16>, vector<128x8xf32> -> vector<128x8xf32>
    %78 = arith.addf %73, %77 : vector<128x8xf32>
    %c148 = arith.constant 148 : index
    %c0_76 = arith.constant 0 : index
    %79 = vector.load %arg6[%c148, %c0_76] : memref<304x4xbf16, #tpu.memory_space<vmem>>, vector<128x4xbf16>
    %c5_77 = arith.constant 5 : index
    %c0_78 = arith.constant 0 : index
    %c0_79 = arith.constant 0 : index
    %80 = vector.load %arg3[%c5_77, %c0_78, %c0_79] : memref<9x4x8xbf16, #tpu.memory_space<vmem>>, vector<1x4x8xbf16>
    %81 = vector.shape_cast %80 : vector<1x4x8xbf16> to vector<4x8xbf16>
    %cst_80 = arith.constant dense<0.000000e+00> : vector<128x8xf32>
    %82 = tpu.matmul %79, %81, %cst_80 {dimension_numbers = #tpu.dot_dimension_numbers<[1], [0], [0], [1], [0, 0, 1, 1], [], []>} : vector<128x4xbf16>, vector<4x8xbf16>, vector<128x8xf32> -> vector<128x8xf32>
    %83 = arith.addf %78, %82 : vector<128x8xf32>
    %c164 = arith.constant 164 : index
    %c0_81 = arith.constant 0 : index
    %84 = vector.load %arg6[%c164, %c0_81] : memref<304x4xbf16, #tpu.memory_space<vmem>>, vector<128x4xbf16>
    %c6_82 = arith.constant 6 : index
    %c0_83 = arith.constant 0 : index
    %c0_84 = arith.constant 0 : index
    %85 = vector.load %arg3[%c6_82, %c0_83, %c0_84] : memref<9x4x8xbf16, #tpu.memory_space<vmem>>, vector<1x4x8xbf16>
    %86 = vector.shape_cast %85 : vector<1x4x8xbf16> to vector<4x8xbf16>
    %cst_85 = arith.constant dense<0.000000e+00> : vector<128x8xf32>
    %87 = tpu.matmul %84, %86, %cst_85 {dimension_numbers = #tpu.dot_dimension_numbers<[1], [0], [0], [1], [0, 0, 1, 1], [], []>} : vector<128x4xbf16>, vector<4x8xbf16>, vector<128x8xf32> -> vector<128x8xf32>
    %88 = arith.addf %83, %87 : vector<128x8xf32>
    %c165 = arith.constant 165 : index
    %c0_86 = arith.constant 0 : index
    %89 = vector.load %arg6[%c165, %c0_86] : memref<304x4xbf16, #tpu.memory_space<vmem>>, vector<128x4xbf16>
    %c7_87 = arith.constant 7 : index
    %c0_88 = arith.constant 0 : index
    %c0_89 = arith.constant 0 : index
    %90 = vector.load %arg3[%c7_87, %c0_88, %c0_89] : memref<9x4x8xbf16, #tpu.memory_space<vmem>>, vector<1x4x8xbf16>
    %91 = vector.shape_cast %90 : vector<1x4x8xbf16> to vector<4x8xbf16>
    %cst_90 = arith.constant dense<0.000000e+00> : vector<128x8xf32>
    %92 = tpu.matmul %89, %91, %cst_90 {dimension_numbers = #tpu.dot_dimension_numbers<[1], [0], [0], [1], [0, 0, 1, 1], [], []>} : vector<128x4xbf16>, vector<4x8xbf16>, vector<128x8xf32> -> vector<128x8xf32>
    %93 = arith.addf %88, %92 : vector<128x8xf32>
    %c166 = arith.constant 166 : index
    %c0_91 = arith.constant 0 : index
    %94 = vector.load %arg6[%c166, %c0_91] : memref<304x4xbf16, #tpu.memory_space<vmem>>, vector<128x4xbf16>
    %c8_92 = arith.constant 8 : index
    %c0_93 = arith.constant 0 : index
    %c0_94 = arith.constant 0 : index
    %95 = vector.load %arg3[%c8_92, %c0_93, %c0_94] : memref<9x4x8xbf16, #tpu.memory_space<vmem>>, vector<1x4x8xbf16>
    %96 = vector.shape_cast %95 : vector<1x4x8xbf16> to vector<4x8xbf16>
    %cst_95 = arith.constant dense<0.000000e+00> : vector<128x8xf32>
    %97 = tpu.matmul %94, %96, %cst_95 {dimension_numbers = #tpu.dot_dimension_numbers<[1], [0], [0], [1], [0, 0, 1, 1], [], []>} : vector<128x4xbf16>, vector<4x8xbf16>, vector<128x8xf32> -> vector<128x8xf32>
    %98 = arith.addf %93, %97 : vector<128x8xf32>
    %99 = vector.broadcast %5 : vector<1x8xf32> to vector<128x8xf32>
    %100 = arith.addf %98, %99 : vector<128x8xf32>
    %cst_96 = arith.constant 0.000000e+00 : f32
    %101 = vector.broadcast %cst_96 : f32 to vector<128x8xf32>
    %102 = arith.maximumf %100, %101 : vector<128x8xf32>
    %c128_97 = arith.constant 128 : index
    %c0_98 = arith.constant 0 : index
    %103 = vector.load %arg5[%c128_97, %c0_98] : memref<256x8xf32, #tpu.memory_space<vmem>>, vector<128x8xf32>
    tpu.vector_store %arg5[%c128_97, %c0_98], %102 {strides = array<i32>} : memref<256x8xf32, #tpu.memory_space<vmem>>, vector<128x8xf32>,
    return
  }
  func.func @transform_0(%arg0: i32) -> (i32, i32) {
    %c0_i32 = arith.constant 0 : i32
    %c0_i32_0 = arith.constant 0 : i32
    return %arg0, %c0_i32 : i32, i32
  }
  func.func @transform_1(%arg0: i32) -> (i32, i32, i32) {
    %c0_i32 = arith.constant 0 : i32
    %c0_i32_0 = arith.constant 0 : i32
    %c0_i32_1 = arith.constant 0 : i32
    return %arg0, %c0_i32, %c0_i32_0 : i32, i32, i32
  }
  func.func @transform_2(%arg0: i32) -> (i32, i32, i32) {
    %c0_i32 = arith.constant 0 : i32
    %c0_i32_0 = arith.constant 0 : i32
    %c0_i32_1 = arith.constant 0 : i32
    %c0_i32_2 = arith.constant 0 : i32
    return %c0_i32, %c0_i32_0, %c0_i32_1 : i32, i32, i32
  }
  func.func @transform_3(%arg0: i32) -> (i32, i32) {
    %c0_i32 = arith.constant 0 : i32
    %c0_i32_0 = arith.constant 0 : i32
    %c0_i32_1 = arith.constant 0 : i32
    return %c0_i32, %c0_i32_0 : i32, i32
  }
  func.func @transform_4(%arg0: i32) -> (i32, i32) {
    %c0_i32 = arith.constant 0 : i32
    %c0_i32_0 = arith.constant 0 : i32
    return %arg0, %c0_i32 : i32, i32
  }
}

module attributes {stable_mosaic.version = 11 : i64} {
  func.func @_conv_bn_relu_kernel(%arg0: i32, %arg1: memref<256x4xbf16, #tpu.memory_space<vmem>>, %arg2: memref<1x48x4xbf16, #tpu.memory_space<vmem>>, %arg3: memref<9x4x128xbf16, #tpu.memory_space<vmem>>, %arg4: memref<1x128xf32, #tpu.memory_space<vmem>>, %arg5: memref<256x128xf32, #tpu.memory_space<vmem>>, %arg6: memref<304x4xbf16, #tpu.memory_space<vmem>>) attributes {dimension_semantics = [#tpu.dimension_semantics<parallel>], iteration_bounds = array<i64: 3>, scalar_prefetch = 0 : i64, scratch_operands = 1 : i64, tpu.core_type = #tpu.core_type<tc>, window_params = [{transform_indices = @transform_0, window_bounds = array<i64: 256, 4>}, {transform_indices = @transform_1, window_bounds = array<i64: 1, 48, 4>}, {pipeline_mode = #tpu.pipeline_mode<synchronous>, transform_indices = @transform_2, window_bounds = array<i64: 9, 4, 128>}, {pipeline_mode = #tpu.pipeline_mode<synchronous>, transform_indices = @transform_3, window_bounds = array<i64: 1, 128>}, {transform_indices = @transform_4, window_bounds = array<i64: 256, 128>}]} {
    %c0 = arith.constant 0 : index
    %c0_0 = arith.constant 0 : index
    %0 = vector.load %arg1[%c0, %c0_0] : memref<256x4xbf16, #tpu.memory_space<vmem>>, vector<256x4xbf16>
    %c0_1 = arith.constant 0 : index
    %c0_2 = arith.constant 0 : index
    %1 = vector.load %arg6[%c0_1, %c0_2] : memref<304x4xbf16, #tpu.memory_space<vmem>>, vector<256x4xbf16>
    tpu.vector_store %arg6[%c0_1, %c0_2], %0 {strides = array<i32>} : memref<304x4xbf16, #tpu.memory_space<vmem>>, vector<256x4xbf16>,
    %c0_3 = arith.constant 0 : index
    %c0_4 = arith.constant 0 : index
    %c0_5 = arith.constant 0 : index
    %2 = vector.load %arg2[%c0_3, %c0_4, %c0_5] : memref<1x48x4xbf16, #tpu.memory_space<vmem>>, vector<1x48x4xbf16>
    %3 = vector.shape_cast %2 : vector<1x48x4xbf16> to vector<48x4xbf16>
    %c256 = arith.constant 256 : index
    %c0_6 = arith.constant 0 : index
    %4 = vector.load %arg6[%c256, %c0_6] : memref<304x4xbf16, #tpu.memory_space<vmem>>, vector<48x4xbf16>
    tpu.vector_store %arg6[%c256, %c0_6], %3 {strides = array<i32>} : memref<304x4xbf16, #tpu.memory_space<vmem>>, vector<48x4xbf16>,
    %c0_7 = arith.constant 0 : index
    %c0_8 = arith.constant 0 : index
    %5 = vector.load %arg4[%c0_7, %c0_8] : memref<1x128xf32, #tpu.memory_space<vmem>>, vector<1x128xf32>
    %c0_9 = arith.constant 0 : index
    %c0_10 = arith.constant 0 : index
    %6 = vector.load %arg6[%c0_9, %c0_10] : memref<304x4xbf16, #tpu.memory_space<vmem>>, vector<128x4xbf16>
    %c0_11 = arith.constant 0 : index
    %c0_12 = arith.constant 0 : index
    %c0_13 = arith.constant 0 : index
    %7 = vector.load %arg3[%c0_11, %c0_12, %c0_13] : memref<9x4x128xbf16, #tpu.memory_space<vmem>>, vector<1x4x128xbf16>
    %8 = vector.shape_cast %7 : vector<1x4x128xbf16> to vector<4x128xbf16>
    %cst = arith.constant dense<0.000000e+00> : vector<128x128xf32>
    %9 = tpu.matmul %6, %8, %cst {dimension_numbers = #tpu.dot_dimension_numbers<[1], [0], [0], [1], [0, 0, 1, 1], [], []>} : vector<128x4xbf16>, vector<4x128xbf16>, vector<128x128xf32> -> vector<128x128xf32>
    %c1 = arith.constant 1 : index
    %c0_14 = arith.constant 0 : index
    %10 = vector.load %arg6[%c1, %c0_14] : memref<304x4xbf16, #tpu.memory_space<vmem>>, vector<128x4xbf16>
    %c1_15 = arith.constant 1 : index
    %c0_16 = arith.constant 0 : index
    %c0_17 = arith.constant 0 : index
    %11 = vector.load %arg3[%c1_15, %c0_16, %c0_17] : memref<9x4x128xbf16, #tpu.memory_space<vmem>>, vector<1x4x128xbf16>
    %12 = vector.shape_cast %11 : vector<1x4x128xbf16> to vector<4x128xbf16>
    %cst_18 = arith.constant dense<0.000000e+00> : vector<128x128xf32>
    %13 = tpu.matmul %10, %12, %cst_18 {dimension_numbers = #tpu.dot_dimension_numbers<[1], [0], [0], [1], [0, 0, 1, 1], [], []>} : vector<128x4xbf16>, vector<4x128xbf16>, vector<128x128xf32> -> vector<128x128xf32>
    %14 = arith.addf %9, %13 : vector<128x128xf32>
    %c2 = arith.constant 2 : index
    %c0_19 = arith.constant 0 : index
    %15 = vector.load %arg6[%c2, %c0_19] : memref<304x4xbf16, #tpu.memory_space<vmem>>, vector<128x4xbf16>
    %c2_20 = arith.constant 2 : index
    %c0_21 = arith.constant 0 : index
    %c0_22 = arith.constant 0 : index
    %16 = vector.load %arg3[%c2_20, %c0_21, %c0_22] : memref<9x4x128xbf16, #tpu.memory_space<vmem>>, vector<1x4x128xbf16>
    %17 = vector.shape_cast %16 : vector<1x4x128xbf16> to vector<4x128xbf16>
    %cst_23 = arith.constant dense<0.000000e+00> : vector<128x128xf32>
    %18 = tpu.matmul %15, %17, %cst_23 {dimension_numbers = #tpu.dot_dimension_numbers<[1], [0], [0], [1], [0, 0, 1, 1], [], []>} : vector<128x4xbf16>, vector<4x128xbf16>, vector<128x128xf32> -> vector<128x128xf32>
    %19 = arith.addf %14, %18 : vector<128x128xf32>
    %c18 = arith.constant 18 : index
    %c0_24 = arith.constant 0 : index
    %20 = vector.load %arg6[%c18, %c0_24] : memref<304x4xbf16, #tpu.memory_space<vmem>>, vector<128x4xbf16>
    %c3 = arith.constant 3 : index
    %c0_25 = arith.constant 0 : index
    %c0_26 = arith.constant 0 : index
    %21 = vector.load %arg3[%c3, %c0_25, %c0_26] : memref<9x4x128xbf16, #tpu.memory_space<vmem>>, vector<1x4x128xbf16>
    %22 = vector.shape_cast %21 : vector<1x4x128xbf16> to vector<4x128xbf16>
    %cst_27 = arith.constant dense<0.000000e+00> : vector<128x128xf32>
    %23 = tpu.matmul %20, %22, %cst_27 {dimension_numbers = #tpu.dot_dimension_numbers<[1], [0], [0], [1], [0, 0, 1, 1], [], []>} : vector<128x4xbf16>, vector<4x128xbf16>, vector<128x128xf32> -> vector<128x128xf32>
    %24 = arith.addf %19, %23 : vector<128x128xf32>
    %c19 = arith.constant 19 : index
    %c0_28 = arith.constant 0 : index
    %25 = vector.load %arg6[%c19, %c0_28] : memref<304x4xbf16, #tpu.memory_space<vmem>>, vector<128x4xbf16>
    %c4 = arith.constant 4 : index
    %c0_29 = arith.constant 0 : index
    %c0_30 = arith.constant 0 : index
    %26 = vector.load %arg3[%c4, %c0_29, %c0_30] : memref<9x4x128xbf16, #tpu.memory_space<vmem>>, vector<1x4x128xbf16>
    %27 = vector.shape_cast %26 : vector<1x4x128xbf16> to vector<4x128xbf16>
    %cst_31 = arith.constant dense<0.000000e+00> : vector<128x128xf32>
    %28 = tpu.matmul %25, %27, %cst_31 {dimension_numbers = #tpu.dot_dimension_numbers<[1], [0], [0], [1], [0, 0, 1, 1], [], []>} : vector<128x4xbf16>, vector<4x128xbf16>, vector<128x128xf32> -> vector<128x128xf32>
    %29 = arith.addf %24, %28 : vector<128x128xf32>
    %c20 = arith.constant 20 : index
    %c0_32 = arith.constant 0 : index
    %30 = vector.load %arg6[%c20, %c0_32] : memref<304x4xbf16, #tpu.memory_space<vmem>>, vector<128x4xbf16>
    %c5 = arith.constant 5 : index
    %c0_33 = arith.constant 0 : index
    %c0_34 = arith.constant 0 : index
    %31 = vector.load %arg3[%c5, %c0_33, %c0_34] : memref<9x4x128xbf16, #tpu.memory_space<vmem>>, vector<1x4x128xbf16>
    %32 = vector.shape_cast %31 : vector<1x4x128xbf16> to vector<4x128xbf16>
    %cst_35 = arith.constant dense<0.000000e+00> : vector<128x128xf32>
    %33 = tpu.matmul %30, %32, %cst_35 {dimension_numbers = #tpu.dot_dimension_numbers<[1], [0], [0], [1], [0, 0, 1, 1], [], []>} : vector<128x4xbf16>, vector<4x128xbf16>, vector<128x128xf32> -> vector<128x128xf32>
    %34 = arith.addf %29, %33 : vector<128x128xf32>
    %c36 = arith.constant 36 : index
    %c0_36 = arith.constant 0 : index
    %35 = vector.load %arg6[%c36, %c0_36] : memref<304x4xbf16, #tpu.memory_space<vmem>>, vector<128x4xbf16>
    %c6 = arith.constant 6 : index
    %c0_37 = arith.constant 0 : index
    %c0_38 = arith.constant 0 : index
    %36 = vector.load %arg3[%c6, %c0_37, %c0_38] : memref<9x4x128xbf16, #tpu.memory_space<vmem>>, vector<1x4x128xbf16>
    %37 = vector.shape_cast %36 : vector<1x4x128xbf16> to vector<4x128xbf16>
    %cst_39 = arith.constant dense<0.000000e+00> : vector<128x128xf32>
    %38 = tpu.matmul %35, %37, %cst_39 {dimension_numbers = #tpu.dot_dimension_numbers<[1], [0], [0], [1], [0, 0, 1, 1], [], []>} : vector<128x4xbf16>, vector<4x128xbf16>, vector<128x128xf32> -> vector<128x128xf32>
    %39 = arith.addf %34, %38 : vector<128x128xf32>
    %c37 = arith.constant 37 : index
    %c0_40 = arith.constant 0 : index
    %40 = vector.load %arg6[%c37, %c0_40] : memref<304x4xbf16, #tpu.memory_space<vmem>>, vector<128x4xbf16>
    %c7 = arith.constant 7 : index
    %c0_41 = arith.constant 0 : index
    %c0_42 = arith.constant 0 : index
    %41 = vector.load %arg3[%c7, %c0_41, %c0_42] : memref<9x4x128xbf16, #tpu.memory_space<vmem>>, vector<1x4x128xbf16>
    %42 = vector.shape_cast %41 : vector<1x4x128xbf16> to vector<4x128xbf16>
    %cst_43 = arith.constant dense<0.000000e+00> : vector<128x128xf32>
    %43 = tpu.matmul %40, %42, %cst_43 {dimension_numbers = #tpu.dot_dimension_numbers<[1], [0], [0], [1], [0, 0, 1, 1], [], []>} : vector<128x4xbf16>, vector<4x128xbf16>, vector<128x128xf32> -> vector<128x128xf32>
    %44 = arith.addf %39, %43 : vector<128x128xf32>
    %c38 = arith.constant 38 : index
    %c0_44 = arith.constant 0 : index
    %45 = vector.load %arg6[%c38, %c0_44] : memref<304x4xbf16, #tpu.memory_space<vmem>>, vector<128x4xbf16>
    %c8 = arith.constant 8 : index
    %c0_45 = arith.constant 0 : index
    %c0_46 = arith.constant 0 : index
    %46 = vector.load %arg3[%c8, %c0_45, %c0_46] : memref<9x4x128xbf16, #tpu.memory_space<vmem>>, vector<1x4x128xbf16>
    %47 = vector.shape_cast %46 : vector<1x4x128xbf16> to vector<4x128xbf16>
    %cst_47 = arith.constant dense<0.000000e+00> : vector<128x128xf32>
    %48 = tpu.matmul %45, %47, %cst_47 {dimension_numbers = #tpu.dot_dimension_numbers<[1], [0], [0], [1], [0, 0, 1, 1], [], []>} : vector<128x4xbf16>, vector<4x128xbf16>, vector<128x128xf32> -> vector<128x128xf32>
    %49 = arith.addf %44, %48 : vector<128x128xf32>
    %50 = vector.broadcast %5 : vector<1x128xf32> to vector<128x128xf32>
    %51 = arith.addf %49, %50 : vector<128x128xf32>
    %cst_48 = arith.constant 0.000000e+00 : f32
    %52 = vector.broadcast %cst_48 : f32 to vector<128x128xf32>
    %53 = arith.maximumf %51, %52 : vector<128x128xf32>
    %c0_49 = arith.constant 0 : index
    %c0_50 = arith.constant 0 : index
    %54 = vector.load %arg5[%c0_49, %c0_50] : memref<256x128xf32, #tpu.memory_space<vmem>>, vector<128x128xf32>
    tpu.vector_store %arg5[%c0_49, %c0_50], %53 {strides = array<i32>} : memref<256x128xf32, #tpu.memory_space<vmem>>, vector<128x128xf32>,
    %c128 = arith.constant 128 : index
    %c0_51 = arith.constant 0 : index
    %55 = vector.load %arg6[%c128, %c0_51] : memref<304x4xbf16, #tpu.memory_space<vmem>>, vector<128x4xbf16>
    %c0_52 = arith.constant 0 : index
    %c0_53 = arith.constant 0 : index
    %c0_54 = arith.constant 0 : index
    %56 = vector.load %arg3[%c0_52, %c0_53, %c0_54] : memref<9x4x128xbf16, #tpu.memory_space<vmem>>, vector<1x4x128xbf16>
    %57 = vector.shape_cast %56 : vector<1x4x128xbf16> to vector<4x128xbf16>
    %cst_55 = arith.constant dense<0.000000e+00> : vector<128x128xf32>
    %58 = tpu.matmul %55, %57, %cst_55 {dimension_numbers = #tpu.dot_dimension_numbers<[1], [0], [0], [1], [0, 0, 1, 1], [], []>} : vector<128x4xbf16>, vector<4x128xbf16>, vector<128x128xf32> -> vector<128x128xf32>
    %c129 = arith.constant 129 : index
    %c0_56 = arith.constant 0 : index
    %59 = vector.load %arg6[%c129, %c0_56] : memref<304x4xbf16, #tpu.memory_space<vmem>>, vector<128x4xbf16>
    %c1_57 = arith.constant 1 : index
    %c0_58 = arith.constant 0 : index
    %c0_59 = arith.constant 0 : index
    %60 = vector.load %arg3[%c1_57, %c0_58, %c0_59] : memref<9x4x128xbf16, #tpu.memory_space<vmem>>, vector<1x4x128xbf16>
    %61 = vector.shape_cast %60 : vector<1x4x128xbf16> to vector<4x128xbf16>
    %cst_60 = arith.constant dense<0.000000e+00> : vector<128x128xf32>
    %62 = tpu.matmul %59, %61, %cst_60 {dimension_numbers = #tpu.dot_dimension_numbers<[1], [0], [0], [1], [0, 0, 1, 1], [], []>} : vector<128x4xbf16>, vector<4x128xbf16>, vector<128x128xf32> -> vector<128x128xf32>
    %63 = arith.addf %58, %62 : vector<128x128xf32>
    %c130 = arith.constant 130 : index
    %c0_61 = arith.constant 0 : index
    %64 = vector.load %arg6[%c130, %c0_61] : memref<304x4xbf16, #tpu.memory_space<vmem>>, vector<128x4xbf16>
    %c2_62 = arith.constant 2 : index
    %c0_63 = arith.constant 0 : index
    %c0_64 = arith.constant 0 : index
    %65 = vector.load %arg3[%c2_62, %c0_63, %c0_64] : memref<9x4x128xbf16, #tpu.memory_space<vmem>>, vector<1x4x128xbf16>
    %66 = vector.shape_cast %65 : vector<1x4x128xbf16> to vector<4x128xbf16>
    %cst_65 = arith.constant dense<0.000000e+00> : vector<128x128xf32>
    %67 = tpu.matmul %64, %66, %cst_65 {dimension_numbers = #tpu.dot_dimension_numbers<[1], [0], [0], [1], [0, 0, 1, 1], [], []>} : vector<128x4xbf16>, vector<4x128xbf16>, vector<128x128xf32> -> vector<128x128xf32>
    %68 = arith.addf %63, %67 : vector<128x128xf32>
    %c146 = arith.constant 146 : index
    %c0_66 = arith.constant 0 : index
    %69 = vector.load %arg6[%c146, %c0_66] : memref<304x4xbf16, #tpu.memory_space<vmem>>, vector<128x4xbf16>
    %c3_67 = arith.constant 3 : index
    %c0_68 = arith.constant 0 : index
    %c0_69 = arith.constant 0 : index
    %70 = vector.load %arg3[%c3_67, %c0_68, %c0_69] : memref<9x4x128xbf16, #tpu.memory_space<vmem>>, vector<1x4x128xbf16>
    %71 = vector.shape_cast %70 : vector<1x4x128xbf16> to vector<4x128xbf16>
    %cst_70 = arith.constant dense<0.000000e+00> : vector<128x128xf32>
    %72 = tpu.matmul %69, %71, %cst_70 {dimension_numbers = #tpu.dot_dimension_numbers<[1], [0], [0], [1], [0, 0, 1, 1], [], []>} : vector<128x4xbf16>, vector<4x128xbf16>, vector<128x128xf32> -> vector<128x128xf32>
    %73 = arith.addf %68, %72 : vector<128x128xf32>
    %c147 = arith.constant 147 : index
    %c0_71 = arith.constant 0 : index
    %74 = vector.load %arg6[%c147, %c0_71] : memref<304x4xbf16, #tpu.memory_space<vmem>>, vector<128x4xbf16>
    %c4_72 = arith.constant 4 : index
    %c0_73 = arith.constant 0 : index
    %c0_74 = arith.constant 0 : index
    %75 = vector.load %arg3[%c4_72, %c0_73, %c0_74] : memref<9x4x128xbf16, #tpu.memory_space<vmem>>, vector<1x4x128xbf16>
    %76 = vector.shape_cast %75 : vector<1x4x128xbf16> to vector<4x128xbf16>
    %cst_75 = arith.constant dense<0.000000e+00> : vector<128x128xf32>
    %77 = tpu.matmul %74, %76, %cst_75 {dimension_numbers = #tpu.dot_dimension_numbers<[1], [0], [0], [1], [0, 0, 1, 1], [], []>} : vector<128x4xbf16>, vector<4x128xbf16>, vector<128x128xf32> -> vector<128x128xf32>
    %78 = arith.addf %73, %77 : vector<128x128xf32>
    %c148 = arith.constant 148 : index
    %c0_76 = arith.constant 0 : index
    %79 = vector.load %arg6[%c148, %c0_76] : memref<304x4xbf16, #tpu.memory_space<vmem>>, vector<128x4xbf16>
    %c5_77 = arith.constant 5 : index
    %c0_78 = arith.constant 0 : index
    %c0_79 = arith.constant 0 : index
    %80 = vector.load %arg3[%c5_77, %c0_78, %c0_79] : memref<9x4x128xbf16, #tpu.memory_space<vmem>>, vector<1x4x128xbf16>
    %81 = vector.shape_cast %80 : vector<1x4x128xbf16> to vector<4x128xbf16>
    %cst_80 = arith.constant dense<0.000000e+00> : vector<128x128xf32>
    %82 = tpu.matmul %79, %81, %cst_80 {dimension_numbers = #tpu.dot_dimension_numbers<[1], [0], [0], [1], [0, 0, 1, 1], [], []>} : vector<128x4xbf16>, vector<4x128xbf16>, vector<128x128xf32> -> vector<128x128xf32>
    %83 = arith.addf %78, %82 : vector<128x128xf32>
    %c164 = arith.constant 164 : index
    %c0_81 = arith.constant 0 : index
    %84 = vector.load %arg6[%c164, %c0_81] : memref<304x4xbf16, #tpu.memory_space<vmem>>, vector<128x4xbf16>
    %c6_82 = arith.constant 6 : index
    %c0_83 = arith.constant 0 : index
    %c0_84 = arith.constant 0 : index
    %85 = vector.load %arg3[%c6_82, %c0_83, %c0_84] : memref<9x4x128xbf16, #tpu.memory_space<vmem>>, vector<1x4x128xbf16>
    %86 = vector.shape_cast %85 : vector<1x4x128xbf16> to vector<4x128xbf16>
    %cst_85 = arith.constant dense<0.000000e+00> : vector<128x128xf32>
    %87 = tpu.matmul %84, %86, %cst_85 {dimension_numbers = #tpu.dot_dimension_numbers<[1], [0], [0], [1], [0, 0, 1, 1], [], []>} : vector<128x4xbf16>, vector<4x128xbf16>, vector<128x128xf32> -> vector<128x128xf32>
    %88 = arith.addf %83, %87 : vector<128x128xf32>
    %c165 = arith.constant 165 : index
    %c0_86 = arith.constant 0 : index
    %89 = vector.load %arg6[%c165, %c0_86] : memref<304x4xbf16, #tpu.memory_space<vmem>>, vector<128x4xbf16>
    %c7_87 = arith.constant 7 : index
    %c0_88 = arith.constant 0 : index
    %c0_89 = arith.constant 0 : index
    %90 = vector.load %arg3[%c7_87, %c0_88, %c0_89] : memref<9x4x128xbf16, #tpu.memory_space<vmem>>, vector<1x4x128xbf16>
    %91 = vector.shape_cast %90 : vector<1x4x128xbf16> to vector<4x128xbf16>
    %cst_90 = arith.constant dense<0.000000e+00> : vector<128x128xf32>
    %92 = tpu.matmul %89, %91, %cst_90 {dimension_numbers = #tpu.dot_dimension_numbers<[1], [0], [0], [1], [0, 0, 1, 1], [], []>} : vector<128x4xbf16>, vector<4x128xbf16>, vector<128x128xf32> -> vector<128x128xf32>
    %93 = arith.addf %88, %92 : vector<128x128xf32>
    %c166 = arith.constant 166 : index
    %c0_91 = arith.constant 0 : index
    %94 = vector.load %arg6[%c166, %c0_91] : memref<304x4xbf16, #tpu.memory_space<vmem>>, vector<128x4xbf16>
    %c8_92 = arith.constant 8 : index
    %c0_93 = arith.constant 0 : index
    %c0_94 = arith.constant 0 : index
    %95 = vector.load %arg3[%c8_92, %c0_93, %c0_94] : memref<9x4x128xbf16, #tpu.memory_space<vmem>>, vector<1x4x128xbf16>
    %96 = vector.shape_cast %95 : vector<1x4x128xbf16> to vector<4x128xbf16>
    %cst_95 = arith.constant dense<0.000000e+00> : vector<128x128xf32>
    %97 = tpu.matmul %94, %96, %cst_95 {dimension_numbers = #tpu.dot_dimension_numbers<[1], [0], [0], [1], [0, 0, 1, 1], [], []>} : vector<128x4xbf16>, vector<4x128xbf16>, vector<128x128xf32> -> vector<128x128xf32>
    %98 = arith.addf %93, %97 : vector<128x128xf32>
    %99 = vector.broadcast %5 : vector<1x128xf32> to vector<128x128xf32>
    %100 = arith.addf %98, %99 : vector<128x128xf32>
    %cst_96 = arith.constant 0.000000e+00 : f32
    %101 = vector.broadcast %cst_96 : f32 to vector<128x128xf32>
    %102 = arith.maximumf %100, %101 : vector<128x128xf32>
    %c128_97 = arith.constant 128 : index
    %c0_98 = arith.constant 0 : index
    %103 = vector.load %arg5[%c128_97, %c0_98] : memref<256x128xf32, #tpu.memory_space<vmem>>, vector<128x128xf32>
    tpu.vector_store %arg5[%c128_97, %c0_98], %102 {strides = array<i32>} : memref<256x128xf32, #tpu.memory_space<vmem>>, vector<128x128xf32>,
    return
  }
  func.func @transform_0(%arg0: i32) -> (i32, i32) {
    %c0_i32 = arith.constant 0 : i32
    %c0_i32_0 = arith.constant 0 : i32
    return %arg0, %c0_i32 : i32, i32
  }
  func.func @transform_1(%arg0: i32) -> (i32, i32, i32) {
    %c0_i32 = arith.constant 0 : i32
    %c0_i32_0 = arith.constant 0 : i32
    %c0_i32_1 = arith.constant 0 : i32
    return %arg0, %c0_i32, %c0_i32_0 : i32, i32, i32
  }
  func.func @transform_2(%arg0: i32) -> (i32, i32, i32) {
    %c0_i32 = arith.constant 0 : i32
    %c0_i32_0 = arith.constant 0 : i32
    %c0_i32_1 = arith.constant 0 : i32
    %c0_i32_2 = arith.constant 0 : i32
    return %c0_i32, %c0_i32_0, %c0_i32_1 : i32, i32, i32
  }
  func.func @transform_3(%arg0: i32) -> (i32, i32) {
    %c0_i32 = arith.constant 0 : i32
    %c0_i32_0 = arith.constant 0 : i32
    %c0_i32_1 = arith.constant 0 : i32
    return %c0_i32, %c0_i32_0 : i32, i32
  }
  func.func @transform_4(%arg0: i32) -> (i32, i32) {
    %c0_i32 = arith.constant 0 : i32
    %c0_i32_0 = arith.constant 0 : i32
    return %arg0, %c0_i32 : i32, i32
  }
}

</mosaic_0001>

<bundles_post_ra>
// kernel: tpu_custom_call.1
= control target key start
LH: loop header
LB: loop body
LE: loop exit
PB: predicated region body
PF: predicated region fallthrough
CT: control target
= control target key end

     0   :  { %s4833_s15 = smov 0   ;;  %s6289_s0 = inlined_call_operand.vmem [shape: bf16[816,4], index: 0, kind: input, shape index: {}]   ;;  %s6290_s1 = inlined_call_operand.vmem [shape: bf16[3,48,4], index: 1, kind: input, shape index: {}]   ;;  %s6291_s2 = inlined_call_operand.vmem [shape: bf16[9,4,8], index: 2, kind: input, shape index: {}]   ;;  %s6292_s3 = inlined_call_operand.vmem [shape: f32[1,8], index: 3, kind: input, shape index: {}]   ;;  %s6293_s4 = inlined_call_operand.vmem [shape: f32[768,8], index: 4, kind: output, shape index: {}]  }
   0x1 LB: > { %s4839_s16 = sadd.s32 4294967295, %s4806_s15   ;;  %p3995_p0 = scmp.ge.s32.totalorder %s4806_s15, 1  ;;  %s4806_s15 = sphi %s4833_s15, %s14_s15  }
   0x2   : > { %p181_p1 = scmp.lt.s32.totalorder %s4806_s15, 4 }
   0x4   : > { %p182_p2 = pnand %p3995_p0, %p181_p1 }
   0x6   : > { %185 = sbr.rel (%p182_p2) target bundleno = 530 (0x212), region = 36 }
   0xb   : > { %v336_v0 = vld [vmem:[%s6291_s2] sm:$0x3]  ;;  %vm477_vm0 = vcmask 1041408   ;;  %v4001_v1 = vld [vmem:[%s6291_s2 + $0x2] sm:$0x3]  ;;  %s4850_s21 = sshll.u32 %s4839_s16, 5 }
   0xc   : > { %4715 = vmatprep.subr.msk.bf16.mxu1 %vm477_vm0, %v336_v0  ;;  %v595_v2 = vsel %vm477_vm0, %v336_v0, 0  ;;  %4714 = vmatprep.subr.msk.bf16.mxu0 %vm477_vm0, %v4001_v1  ;;  %p221_p3 = scmp.lt.s32.totalorder %s4850_s21, 101  ;;  %v479_v3 = vsel %vm477_vm0, %v4001_v1, 0  ;;  %v4860_v4 = vld [vmem:[%s6291_s2 + $0x4] sm:$0x3]  ;;  %vm274_vm1 = vcmask 27648  }
   0xd   : > { %4409 = vmatpush3.bf16.msra.mxu1 %v595_v2  ;;  %4391 = vmatpush3.bf16.msra.mxu0 %v479_v3  ;;  %v4037_v5 = vld [vmem:[%s6291_s2 + $0x6] sm:$0x3]  ;;  %vm452_vm2 = vcmask 31744   ;;  %vm383_vm3 = vsmask.f32 7424  ;;  %v743_v48 = vsel %vm477_vm0, %v4860_v4, 0 }
   0xe   : > { %s222_s26 = scalar_select %p221_p3, %s4850_s21, 101  ;;  %4716 = vmatprep.subr.msk.bf16.mxu0 %vm477_vm0, %v4860_v4  ;;  %4717 = vmatprep.subr.msk.bf16.mxu1 %vm477_vm0, %v4037_v5  ;;  %v4924_v31 = vld [vmem:[%s6291_s2 + $0xa] sm:$0x3]  ;;  %v962_v33 = vsel %vm477_vm0, %v4037_v5, 0  ;;  %v4963_v61 = vld [vmem:[%s6291_s2 + $0x8] sm:$0x3] }
   0xf   : > { %vm700_vm4 = vcmask 1046528   ;;  %p230_p4 = scmp.lt.s32.totalorder %s4839_s16, 2  ;;  %vm1310_vm5 = vcmask 1045504   ;;  %vm1083_vm6 = vsmask.f32 6400  ;;  %vm1920_vm8 = vcmask 1044480  }
  0x10   : > { %s3997_s27 = sshll.u32 %s222_s26, 2  ;;  %vm1693_vm7 = vsmask.f32 5376  ;;  %p236_p5 = scmp.lt.s32.totalorder %s4850_s21, 95  ;;  %vm2116_vm9 = vcmask 64512  }
  0x11   : > { %s4872_s30 = scalar_lea.vmem %s6289_s0, %s3997_s27  ;;  %s6387_s16 = smov (!%p230_p4, %s4839_s16), 2 }
  0x12   : > { %v242_v6 = vld [vmem:[%s4872_s30] sm:$0xf]  ;;  %v243_v7 = vld [vmem:[%s4872_s30 + $0x4] sm:$0xf]  ;;  %v244_v8 = vld [vmem:[%s4872_s30 + $0x8] sm:$0xf] }
  0x13   : > { %275 = vst.msk [vmem:[#allocation2] sm:$0xf] %vm274_vm1, %v242_v6  ;;  %276 = vst.msk [vmem:[#allocation2 + $0x4] sm:$0xf] %vm274_vm1, %v243_v7  ;;  %v245_v9 = vld [vmem:[%s4872_s30 + $0xc] sm:$0xf] }
  0x14   : > { %277 = vst.msk [vmem:[#allocation2 + $0x8] sm:$0xf] %vm274_vm1, %v244_v8  ;;  %v246_v10 = vld [vmem:[%s4872_s30 + $0x10] sm:$0xf]  ;;  %v247_v11 = vld [vmem:[%s4872_s30 + $0x14] sm:$0xf] }
  0x15   : > { %278 = vst.msk [vmem:[#allocation2 + $0xc] sm:$0xf] %vm274_vm1, %v245_v9  ;;  %279 = vst.msk [vmem:[#allocation2 + $0x10] sm:$0xf] %vm274_vm1, %v246_v10  ;;  %v248_v12 = vld [vmem:[%s4872_s30 + $0x18] sm:$0xf] }
  0x16   : > { %280 = vst.msk [vmem:[#allocation2 + $0x14] sm:$0xf] %vm274_vm1, %v247_v11  ;;  %v249_v13 = vld [vmem:[%s4872_s30 + $0x1c] sm:$0xf]  ;;  %v250_v14 = vld [vmem:[%s4872_s30 + $0x20] sm:$0xf] }
  0x17   : > { %281 = vst.msk [vmem:[#allocation2 + $0x18] sm:$0xf] %vm274_vm1, %v248_v12  ;;  %282 = vst.msk [vmem:[#allocation2 + $0x1c] sm:$0xf] %vm274_vm1, %v249_v13  ;;  %v251_v15 = vld [vmem:[%s4872_s30 + $0x24] sm:$0xf] }
  0x18   : > { %283 = vst.msk [vmem:[#allocation2 + $0x20] sm:$0xf] %vm274_vm1, %v250_v14  ;;  %v252_v16 = vld [vmem:[%s4872_s30 + $0x28] sm:$0xf]  ;;  %v253_v17 = vld [vmem:[%s4872_s30 + $0x2c] sm:$0xf] }
  0x19   : > { %284 = vst.msk [vmem:[#allocation2 + $0x24] sm:$0xf] %vm274_vm1, %v251_v15  ;;  %285 = vst.msk [vmem:[#allocation2 + $0x28] sm:$0xf] %vm274_vm1, %v252_v16  ;;  %v254_v18 = vld [vmem:[%s4872_s30 + $0x30] sm:$0xf] }
  0x1a   : > { %286 = vst.msk [vmem:[#allocation2 + $0x2c] sm:$0xf] %vm274_vm1, %v253_v17  ;;  %v255_v19 = vld [vmem:[%s4872_s30 + $0x34] sm:$0xf]  ;;  %v256_v20 = vld [vmem:[%s4872_s30 + $0x38] sm:$0xf] }
  0x1b   : > { %287 = vst.msk [vmem:[#allocation2 + $0x30] sm:$0xf] %vm274_vm1, %v254_v18  ;;  %288 = vst.msk [vmem:[#allocation2 + $0x34] sm:$0xf] %vm274_vm1, %v255_v19  ;;  %v257_v21 = vld [vmem:[%s4872_s30 + $0x3c] sm:$0xf] }
  0x1c   : > { %289 = vst.msk [vmem:[#allocation2 + $0x38] sm:$0xf] %vm274_vm1, %v256_v20  ;;  %v258_v22 = vld [vmem:[%s4872_s30 + $0x40] sm:$0xf]  ;;  %v259_v23 = vld [vmem:[%s4872_s30 + $0x44] sm:$0xf] }
  0x1d   : > { %290 = vst.msk [vmem:[#allocation2 + $0x3c] sm:$0xf] %vm274_vm1, %v257_v21  ;;  %291 = vst.msk [vmem:[#allocation2 + $0x40] sm:$0xf] %vm274_vm1, %v258_v22  ;;  %v260_v24 = vld [vmem:[%s4872_s30 + $0x48] sm:$0xf] }
  0x1e   : > { %292 = vst.msk [vmem:[#allocation2 + $0x44] sm:$0xf] %vm274_vm1, %v259_v23  ;;  %293 = vst.msk [vmem:[#allocation2 + $0x48] sm:$0xf] %vm274_vm1, %v260_v24  ;;  %v261_v25 = vld [vmem:[%s4872_s30 + $0x4c] sm:$0xf] }
  0x1f   : > { %v262_v26 = vld [vmem:[%s4872_s30 + $0x50] sm:$0xf]  ;;  %v320_v27 = vld [vmem:[#allocation2] sm:$0xf]  ;;  %v4914_v28 = vld [vmem:[#allocation2 + $0x4] sm:$0xf] }
  0x20   : > { %294 = vst.msk [vmem:[#allocation2 + $0x4c] sm:$0xf] %vm274_vm1, %v261_v25  ;;  %295 = vst.msk [vmem:[#allocation2 + $0x50] sm:$0xf] %vm274_vm1, %v262_v26  ;;  %v4002_v29 = vcombine.low %v320_v27, %v4914_v28  ;;  %v4919_v30 = vld [vmem:[#allocation2 + $0x8] sm:$0xff]   ;;  %v4926_v32 = vld [vmem:[#allocation2 + $0x10] sm:$0xff]  }
  0x21   : > { %v392_v36 = vshll.u32 %v4919_v30, 16  ;;  %v396_v37 = vshrl.u32 %v4919_v30, 16  ;;  %v400_v38 = vshll.u32 %v4926_v32, 16  ;;  %v4935_v39 = vld [vmem:[#allocation2 + $0x18] sm:$0xff]   ;;  %v404_v40 = vshrl.u32 %v4926_v32, 16  ;;  %v4941_v45 = vld [vmem:[#allocation2 + $0x20] sm:$0xff]  }
  0x22   : > { %4410 = vmatprep.mubr.msk.bf16.mxu1 %vm452_vm2, %v4002_v29  ;;  %v385_v34 = vshrl.u32 %v4002_v29, 16  ;;  %v387_v35 = vshll.u32 %v4002_v29, 16  ;;  %v408_v44 = vshll.u32 %v4935_v39, 16  ;;  %v4947_v49 = vld [vmem:[#allocation2 + $0x28] sm:$0xff]   ;;  %v412_v52 = vshrl.u32 %v4935_v39, 16  ;;  %v4957_v59 = vld [vmem:[#allocation2 + $0x30] sm:$0xff]  }
  0x23   : > { %4411 = vmatmul.mubr.msk.bf16.vlgmr.msra.gmra.mxu1 %vm452_vm2, %v4919_v30  ;;  %v394_v42 = vrot.slane %v392_v36, 1  ;;  %v402_v43 = vrot.slane %v400_v38, 1  ;;  %v416_v53 = vshll.u32 %v4941_v45, 16  ;;  %v420_v56 = vshrl.u32 %v4941_v45, 16  ;;  %v858_v3 = vld [vmem:[#allocation2 + $0x8] sm:$0xe] }
  0x24   : > { %v389_v41 = vrot.slane %v387_v35, 1  ;;  %4445 = vmatpush3.bf16.msra.mxu1 %v962_v33  ;;  %4414 = vmatprep.mubr.msk.bf16.mxu1 %vm452_vm2, %v4926_v32  ;;  %v410_v51 = vrot.slane %v408_v44, 1  ;;  %v424_v57 = vshll.u32 %v4947_v49, 16  ;;  %v4970_v1 = vld [vmem:[#allocation2 + $0x38] sm:$0xff]   ;;  %v432_v2 = vshll.u32 %v4957_v59, 16  ;;  %v4987_v12 = vld [vmem:[#allocation2 + $0x10] sm:$0xff]  }
  0x25   : > { %4719 = vmatprep.subr.msk.bf16.mxu1 %vm477_vm0, %v4924_v31  ;;  %v398_v47 = vor.u32 %v396_v37, %v394_v42  ;;  %v406_v50 = vor.u32 %v404_v40, %v402_v43  ;;  %v418_v60 = vrot.slane %v416_v53, 1  ;;  %v4975_v4 = vld [vmem:[#allocation2 + $0xc] sm:$0xf]  ;;  %v428_v6 = vshrl.u32 %v4947_v49, 16  ;;  %v694_v17 = vld [vmem:[#allocation2] sm:$0xe] }
  0x26   : > { %v390_v46 = vor.u32 %v389_v41, %v385_v34  ;;  %v414_v62 = vor.u32 %v412_v52, %v410_v51  ;;  %v426_v0 = vrot.slane %v424_v57, 1  ;;  %v436_v8 = vshrl.u32 %v4957_v59, 16  ;;  %v4982_v10 = vld [vmem:[#allocation2 + $0x40] ss:$0 sps:$4 sm:$0x11]   ;;  %v5002_v25 = vld [vmem:[#allocation2 + $0x18] sm:$0xff]  }
  0x27   : > { %v403_v55 = vsel %vm383_vm3, %v398_v47, %v402_v43  ;;  %v411_v58 = vsel %vm383_vm3, %v406_v50, %v410_v51  ;;  %v422_v63 = vor.u32 %v420_v56, %v418_v60  ;;  %v440_v9 = vshll.u32 %v4970_v1, 16  ;;  %v5005_v27 = vld [vmem:[#allocation2 + $0x20] sm:$0xff]   ;;  %v5018_v41 = vld [vmem:[#allocation2 + $0x28] sm:$0xff]   ;;  %v5023_v44 = vld [vmem:[#allocation2 + $0x30] sm:$0xff]   ;;  %s4732_s13 = smul.u32 24, %s6387_s16  ;;  %s6389_s21 = smov (!%p236_p5, %s4850_s21), 95 }
  0x28   : > { %v395_v54 = vsel %vm383_vm3, %v390_v46, %v394_v42  ;;  %v419_v5 = vsel %vm383_vm3, %v414_v62, %v418_v60  ;;  %v4985_v11 = vcombine.low %v858_v3, %v4975_v4  ;;  %v434_v13 = vrot.slane %v432_v2, 1  ;;  %v5044_v52 = vld [vmem:[#allocation2 + $0x38] sm:$0xff]   ;;  %v5055_v56 = vld [vmem:[%s6291_s2 + $0xc] sm:$0x3]  ;;  %v267_v3 = vld [vmem:[%s4872_s30 + $0x64] sm:$0xf] }
  0x29   : > { %4392 = vmatprep.mubr.msk.bf16.mxu0 %vm452_vm2, %v395_v54  ;;  %v427_v7 = vsel %vm383_vm3, %v422_v63, %v426_v0  ;;  %v430_v14 = vor.u32 %v428_v6, %v426_v0  ;;  %v442_v16 = vrot.slane %v440_v9, 1  ;;  %v921_v19 = vrot.slane %v4987_v12, 1  ;;  %v4759_v62 = vld [vmem:[#allocation2 + $0x48] ss:$0 sps:$4 sm:$0x11]   ;;  %s5113_s17 = scalar_lea.vmem %s6290_s1, %s4732_s13  ;;  %s4000_s16 = sshll.u32 %s6389_s21, 3 }
  0x2a   : > { %4393 = vmatmul.mubr.msk.bf16.vlgmr.msra.gmra.mxu0 %vm452_vm2, %v403_v55  ;;  %v438_v15 = vor.u32 %v436_v8, %v434_v13  ;;  %v920_v18 = vrot.slane %v4985_v11, 1  ;;  %v444_v21 = vshrl.u32 %v4970_v1, 16  ;;  %v448_v22 = vshll.u32 %v4982_v10, 16  ;;  %v5048_v55 = vld [vmem:[#allocation2 + $0x40] sm:$0xff]   ;;  %v264_v63 = vld [vmem:[%s4872_s30 + $0x58] sm:$0xf]  ;;  %s5915_s18 = scalar_lea.vmem %s6293_s4, %s4000_s16 }
  0x2b   : > { %4427 = vmatpush3.bf16.msra.mxu0 %v743_v48  ;;  %4415 = vmatmul.mubr.msk.bf16.gmra.mxu1 %vm452_vm2, %v4935_v39  ;;  %v435_v20 = vsel %vm383_vm3, %v430_v14, %v434_v13  ;;  %v4028_v23 = vcombine.low %v694_v17, %v4914_v28  ;;  %v923_v28 = vrot.slane %v5002_v25, 1  ;;  %v702_v35 = vrot.slane %v4919_v30, 1  ;;  %v5029_v30 = vld [vmem:[%s6291_s2 + $0xe] sm:$0x3]  ;;  %v1304_v0 = vld [vmem:[#allocation2 + $0x8] sm:$0xc] }
  0x2c   : > { %4396 = vmatprep.mubr.msk.bf16.mxu0 %vm452_vm2, %v411_v58  ;;  %4418 = vmatprep.mubr.msk.bf16.mxu1 %vm452_vm2, %v4941_v45  ;;  %v443_v24 = vsel %vm383_vm3, %v438_v15, %v442_v16  ;;  %v922_v26 = vsel %vm700_vm4, %v920_v18, %v921_v19  ;;  %v446_v29 = vor.u32 %v444_v21, %v442_v16  ;;  %v450_v33 = vrot.slane %v448_v22, 1  ;;  %v265_v2 = vld [vmem:[%s4872_s30 + $0x5c] sm:$0xf]  ;;  %v269_v16 = vld [vmem:[%s4872_s30 + $0x6c] sm:$0xf] }
  0x2d   : > { %4718 = vmatprep.subr.msk.bf16.mxu0 %vm477_vm0, %v4963_v61  ;;  %v701_v34 = vrot.slane %v4028_v23, 1  ;;  %v925_v36 = vrot.slane %v5005_v27, 1  ;;  %v924_v38 = vsel %vm700_vm4, %v921_v19, %v923_v28  ;;  %v1353_v42 = vsel %vm477_vm0, %v4924_v31, 0  ;;  %297 = vst.msk [vmem:[#allocation2 + $0x58] sm:$0xf] %vm274_vm1, %v264_v63 }
  0x2e   : > { %v451_v37 = vsel %vm383_vm3, %v446_v29, %v450_v33  ;;  %v704_v46 = vrot.slane %v4926_v32, 1  ;;  %v927_v31 = vrot.slane %v5018_v41, 1  ;;  %v706_v47 = vrot.slane %v4935_v39, 1  ;;  %v263_v39 = vld [vmem:[%s4872_s30 + $0x54] sm:$0xf] }
  0x2f   : > { %v703_v40 = vsel %vm700_vm4, %v701_v34, %v702_v35  ;;  %v926_v43 = vsel %vm700_vm4, %v923_v28, %v925_v36  ;;  %v929_v48 = vrot.slane %v5023_v44, 1  ;;  %v1189_v51 = vsel %vm477_vm0, %v4963_v61, 0  ;;  %296 = vst.msk [vmem:[#allocation2 + $0x54] sm:$0xf] %vm274_vm1, %v263_v39  ;;  %298 = vst.msk [vmem:[#allocation2 + $0x5c] sm:$0xf] %vm274_vm1, %v265_v2 }
  0x30   : > { %v705_v50 = vsel %vm700_vm4, %v702_v35, %v704_v46  ;;  %v928_v32 = vsel %vm700_vm4, %v925_v36, %v927_v31  ;;  %v707_v53 = vsel %vm700_vm4, %v704_v46, %v706_v47  ;;  %v708_v57 = vrot.slane %v4941_v45, 1  ;;  %300 = vst.msk [vmem:[#allocation2 + $0x64] sm:$0xf] %vm274_vm1, %v267_v3  ;;  %302 = vst.msk [vmem:[#allocation2 + $0x6c] sm:$0xf] %vm274_vm1, %v269_v16 }
  0x31   : > { %v930_v54 = vsel %vm700_vm4, %v927_v31, %v929_v48  ;;  %v931_v58 = vrot.slane %v5044_v52, 1  ;;  %v710_v60 = vrot.slane %v4947_v49, 1  ;;  %v933_v61 = vrot.slane %v5048_v55, 1  ;;  %v270_v18 = vld [vmem:[%s4872_s30 + $0x70] sm:$0xf] }
  0x32   : > { %4397 = vmatmul.mubr.msk.bf16.gmra.mxu0 %vm452_vm2, %v419_v5  ;;  %v709_v45 = vsel %vm700_vm4, %v706_v47, %v708_v57  ;;  %v4066_v9 = vcombine.low %v1304_v0, %v4975_v4  ;;  %v712_v13 = vrot.slane %v4957_v59, 1  ;;  %v935_v14 = vrot.slane %v4759_v62, 1  ;;  %v271_v19 = vld [vmem:[%s4872_s30 + $0x74] sm:$0xf]  ;;  %303 = vst.msk [vmem:[#allocation2 + $0x70] sm:$0xf] %vm274_vm1, %v270_v18 }
  0x33   : > { %4419 = vmatmul.mubr.msk.bf16.gmra.mxu1 %vm452_vm2, %v4947_v49  ;;  %4400 = vmatprep.mubr.msk.bf16.mxu0 %vm452_vm2, %v427_v7  ;;  %v266_v49 = vld [vmem:[%s4872_s30 + $0x60] sm:$0xf]  ;;  %v932_v5 = vsel %vm700_vm4, %v929_v48, %v931_v58  ;;  %v711_v6 = vsel %vm700_vm4, %v708_v57, %v710_v60  ;;  %v268_v7 = vld [vmem:[%s4872_s30 + $0x68] sm:$0xf]  ;;  %v934_v8 = vsel %vm700_vm4, %v931_v58, %v933_v61  ;;  %v714_v15 = vrot.slane %v4970_v1, 1 }
  0x34   : > { %4422 = vmatprep.mubr.msk.bf16.mxu1 %vm452_vm2, %v4957_v59  ;;  %299 = vst.msk [vmem:[#allocation2 + $0x60] sm:$0xf] %vm274_vm1, %v266_v49  ;;  %301 = vst.msk [vmem:[#allocation2 + $0x68] sm:$0xf] %vm274_vm1, %v268_v7  ;;  %v1085_v17 = vshrl.u32 %v4985_v11, 16  ;;  %v1088_v4 = vshll.u32 %v4985_v11, 16  ;;  %v713_v11 = vsel %vm700_vm4, %v710_v60, %v712_v13 }
  0x35   : > { %v1093_v59 = vshrl.u32 %v4987_v12, 16  ;;  %304 = vst.msk [vmem:[#allocation2 + $0x74] sm:$0xf] %vm274_vm1, %v271_v19  ;;  %v273_v21 = vld [vmem:[%s4872_s30 + $0x7c] sm:$0xf]  ;;  %v1311_v22 = vrot.slane %v4066_v9, 2 }
  0x36   : > { %v1312_v23 = vrot.slane %v4987_v12, 2  ;;  %306 = vst.msk [vmem:[#allocation2 + $0x7c] sm:$0xf] %vm274_vm1, %v273_v21  ;;  %v1087_v29 = vrot.slane %v1085_v17, 1  ;;  %v1090_v33 = vrot.slane %v1088_v4, 2  ;;  %v716_v36 = vrot.slane %v4982_v10, 1 }
  0x37   : > { %v307_v35 = vld [vmem:[%s5113_s17] sm:$0xf]  ;;  %v1316_v46 = vrot.slane %v5005_v27, 2  ;;  %v1111_v10 = vshrl.u32 %v5005_v27, 16  ;;  %v1114_v31 = vshll.u32 %v5005_v27, 16  ;;  %v1120_v57 = vshrl.u32 %v5018_v41, 16 }
  0x38   : > { %v1313_v28 = vsel %vm1310_vm5, %v1311_v22, %v1312_v23  ;;  %313 = vst.msk [vmem:[#allocation2 + $0x80] sm:$0xf] %vm274_vm1, %v307_v35  ;;  %v717_v47 = vsel %vm700_vm4, %v714_v15, %v716_v36  ;;  %v1123_v27 = vshll.u32 %v5018_v41, 16  ;;  %v5144_v58 = vld [vmem:[%s6291_s2 + $0x2] sm:$0x3]  ;;  %v1318_v60 = vrot.slane %v5018_v41, 2 }
  0x39   : > { %v1116_v39 = vrot.slane %v1114_v31, 2  ;;  %v1132_v62 = vshll.u32 %v5023_v44, 16  ;;  %v1320_v0 = vrot.slane %v5023_v44, 2  ;;  %v1122_v2 = vrot.slane %v1120_v57, 1  ;;  %v1468_v49 = vld [vmem:[#allocation2 + $0x10] sm:$0xc] }
  0x3a   : > { %4401 = vmatmul.mubr.msk.bf16.gmra.mxu0 %vm452_vm2, %v435_v20  ;;  %v272_v20 = vld [vmem:[%s4872_s30 + $0x78] sm:$0xf]  ;;  %v5155_v3 = vld [vmem:[#allocation2 + $0x14] sm:$0xf]  ;;  %v1322_v16 = vrot.slane %v5044_v52, 2  ;;  %v1138_v17 = vshrl.u32 %v5044_v52, 16 }
  0x3b   : > { %4423 = vmatmul.mubr.msk.bf16.gmra.mxu1 %vm452_vm2, %v4970_v1  ;;  %4404 = vmatprep.mubr.msk.bf16.mxu0 %vm452_vm2, %v443_v24  ;;  %v1096_v1 = vshll.u32 %v4987_v12, 16  ;;  %305 = vst.msk [vmem:[#allocation2 + $0x78] sm:$0xf] %vm274_vm1, %v272_v20  ;;  %v936_v24 = vsel %vm700_vm4, %v933_v61, %v935_v14  ;;  %v1095_v12 = vrot.slane %v1093_v59, 1  ;;  %v1129_v61 = vshrl.u32 %v5023_v44, 16  ;;  %v5166_v14 = vld [vmem:[#allocation2 + $0x18] sm:$0xff]  }
  0x3c   : > { %4446 = vmatprep.mubr.msk.bf16.mxu1 %vm452_vm2, %v922_v26  ;;  %v715_v26 = vsel %vm700_vm4, %v712_v13, %v714_v15  ;;  %v1321_v44 = vsel %vm1310_vm5, %v1318_v60, %v1320_v0  ;;  %v5164_v13 = vcombine.low %v1468_v49, %v5155_v3  ;;  %v1141_v4 = vshll.u32 %v5044_v52, 16  ;;  %v308_v20 = vld [vmem:[%s5113_s17 + $0x4] sm:$0xf]  ;;  %v4760_v21 = vld [vmem:[#allocation2 + $0x48] ss:$0 sps:$4 sm:$0x33]  }
  0x3d   : > { %v1098_v34 = vrot.slane %v1096_v1, 2  ;;  %v1131_v7 = vrot.slane %v1129_v61, 1  ;;  %v1324_v19 = vrot.slane %v5048_v55, 2  ;;  %v1147_v59 = vshrl.u32 %v5048_v55, 16  ;;  %314 = vst.msk [vmem:[#allocation2 + $0x84] sm:$0xf] %vm274_vm1, %v308_v20 }
  0x3e   : > { %v1150_v1 = vshll.u32 %v5048_v55, 16  ;;  %v1695_v22 = vshrl.u32 %v5164_v13, 16  ;;  %v1703_v52 = vshrl.u32 %v5166_v14, 16  ;;  %v1159_v31 = vshll.u32 %v4760_v21, 16  ;;  %v5215_v49 = vld [vmem:[#allocation2 + $0x38] sm:$0xff]  }
  0x3f   : > { %v1325_v35 = vsel %vm1310_vm5, %v1322_v16, %v1324_v19  ;;  %v1149_v36 = vrot.slane %v1147_v59, 1  ;;  %v5230_v59 = vld [vmem:[#allocation2 + $0x40] sm:$0xff]  }
  0x42   : > { %4405 = vmatmul.mubr.msk.bf16.gmra.mxu0 %vm452_vm2, %v451_v37  ;;  %v1102_v37 = vshrl.u32 %v5002_v25, 16 }
  0x43   : > { %4447 = vmatmul.mubr.msk.bf16.vlgmr.msra.gmra.mxu1 %vm452_vm2, %v924_v38  ;;  %4428 = vmatprep.mubr.msk.bf16.mxu0 %vm452_vm2, %v703_v40  ;;  %v1105_v38 = vshll.u32 %v5002_v25, 16  ;;  %v1314_v40 = vrot.slane %v5002_v25, 2  ;;  %v1799_v25 = vsel %vm477_vm0, %v5029_v30, 0 }
  0x44   : > { %4481 = vmatpush3.bf16.msra.mxu1 %v1353_v42  ;;  %4450 = vmatprep.mubr.msk.bf16.mxu1 %vm452_vm2, %v926_v43  ;;  %v1091_v42 = vor.u32 %v1090_v33, %v1087_v29  ;;  %v1099_v43 = vor.u32 %v1098_v34, %v1095_v12  ;;  %v1104_v48 = vrot.slane %v1102_v37, 1  ;;  %v1323_v29 = vsel %vm1310_vm5, %v1320_v0, %v1322_v16  ;;  %v5196_v34 = vld [vmem:[#allocation2 + $0x28] sm:$0xff]  }
  0x45   : > { %4721 = vmatprep.subr.msk.bf16.mxu1 %vm477_vm0, %v5029_v30  ;;  %v1140_v33 = vrot.slane %v1138_v17, 1  ;;  %v1143_v12 = vrot.slane %v1141_v4, 2  ;;  %v1152_v37 = vrot.slane %v1150_v1, 2  ;;  %v1742_v16 = vshll.u32 %v5215_v49, 16 }
  0x46   : > { %v2288_v1 = vsel %vm477_vm0, %v5144_v58, 0 }
  0x4a   : > { %4429 = vmatmul.mubr.msk.bf16.vlgmr.msra.gmra.mxu0 %vm452_vm2, %v705_v50  ;;  %v1107_v50 = vrot.slane %v1105_v38, 2  ;;  %v1697_v38 = vrot.slane %v1695_v22, 2  ;;  %v1744_v22 = vrot.slane %v1742_v16, 3 }
  0x4b   : > { %4463 = vmatpush3.bf16.msra.mxu0 %v1189_v51  ;;  %4451 = vmatmul.mubr.msk.bf16.gmra.mxu1 %vm452_vm2, %v928_v32  ;;  %v1315_v51 = vsel %vm1310_vm5, %v1312_v23, %v1314_v40  ;;  %v1100_v32 = vsel %vm1083_vm6, %v1091_v42, %v1099_v43  ;;  %v1698_v23 = vshll.u32 %v5164_v13, 16  ;;  %v1705_v42 = vrot.slane %v1703_v52, 2  ;;  %v5241_v52 = vld [vmem:[%s6291_s2 + $0x4] sm:$0x3] }
  0x4c   : > { %4432 = vmatprep.mubr.msk.bf16.mxu0 %vm452_vm2, %v707_v53  ;;  %4454 = vmatprep.mubr.msk.bf16.mxu1 %vm452_vm2, %v930_v54  ;;  %v1317_v53 = vsel %vm1310_vm5, %v1314_v40, %v1316_v46  ;;  %v1113_v54 = vrot.slane %v1111_v10, 1  ;;  %v1108_v30 = vor.u32 %v1107_v50, %v1104_v48  ;;  %v1156_v10 = vshrl.u32 %v4760_v21, 16 }
  0x4d   : > { %4720 = vmatprep.subr.msk.bf16.mxu0 %vm477_vm0, %v5055_v56  ;;  %v1700_v40 = vrot.slane %v1698_v23, 3  ;;  %v1153_v48 = vor.u32 %v1152_v37, %v1149_v36  ;;  %v5235_v23 = vld [vmem:[#allocation2 + $0x48] sm:$0xff]   ;;  %v5254_v36 = vld [vmem:[#allocation2 + $0x44] sm:$0xf] }
  0x4e   : > { %v1117_v63 = vor.u32 %v1116_v39, %v1113_v54  ;;  %v1109_v41 = vsel %vm1083_vm6, %v1099_v43, %v1108_v30  ;;  %v1724_v54 = vshll.u32 %v5196_v34, 16  ;;  %v1158_v57 = vrot.slane %v1156_v10, 1  ;;  %v5261_v10 = vld [vmem:[#allocation2 + $0x50] ss:$0 sps:$4 sm:$0x77]  }
  0x50   : > { %v1118_v9 = vsel %vm1083_vm6, %v1108_v30, %v1117_v63 }
  0x52   : > { %4433 = vmatmul.mubr.msk.bf16.gmra.mxu0 %vm452_vm2, %v709_v45  ;;  %v1125_v45 = vrot.slane %v1123_v27, 2  ;;  %v1161_v27 = vrot.slane %v1159_v31, 2 }
  0x53   : > { %4455 = vmatmul.mubr.msk.bf16.gmra.mxu1 %vm452_vm2, %v932_v5  ;;  %4436 = vmatprep.mubr.msk.bf16.mxu0 %vm452_vm2, %v711_v6  ;;  %v1572_v5 = vsel %vm477_vm0, %v5055_v56, 0  ;;  %v1319_v6 = vsel %vm1310_vm5, %v1316_v46, %v1318_v60  ;;  %v5172_v56 = vld [vmem:[%s6291_s2 + $0x10] sm:$0x3]  ;;  %v1144_v46 = vor.u32 %v1143_v12, %v1140_v33  ;;  %v1757_v12 = vshrl.u32 %v5235_v23, 16 }
  0x54   : > { %4458 = vmatprep.mubr.msk.bf16.mxu1 %vm452_vm2, %v934_v8  ;;  %v1134_v8 = vrot.slane %v1132_v62, 2  ;;  %v1126_v15 = vor.u32 %v1125_v45, %v1122_v2  ;;  %v1726_v45 = vrot.slane %v1724_v54, 3  ;;  %v1769_v54 = vshll.u32 %v5261_v10, 16 }
  0x55   : > { %v1154_v60 = vsel %vm1083_vm6, %v1144_v46, %v1153_v48 }
  0x56   : > { %v1135_v18 = vor.u32 %v1134_v8, %v1131_v7  ;;  %v1127_v55 = vsel %vm1083_vm6, %v1117_v63, %v1126_v15  ;;  %v5212_v63 = vld [vmem:[#allocation2 + $0x30] sm:$0xff]   ;;  %v1531_v7 = vrot.slane %v5166_v14, 2 }
  0x57   : > { %v1730_v8 = vshrl.u32 %v5212_v63, 16 }
  0x58   : > { %v1145_v39 = vsel %vm1083_vm6, %v1135_v18, %v1144_v46 }
  0x5a   : > { %4437 = vmatmul.mubr.msk.bf16.gmra.mxu0 %vm452_vm2, %v713_v11  ;;  %v1706_v11 = vshll.u32 %v5166_v14, 16 }
  0x5b   : > { %4459 = vmatmul.mubr.msk.bf16.gmra.mxu1 %vm452_vm2, %v936_v24  ;;  %4440 = vmatprep.mubr.msk.bf16.mxu0 %vm452_vm2, %v715_v26  ;;  %v5191_v24 = vld [vmem:[#allocation2 + $0x20] sm:$0xff]   ;;  %v309_v26 = vld [vmem:[%s5113_s17 + $0x8] sm:$0xf] }
  0x5c   : > { %4482 = vmatprep.mubr.msk.bf16.mxu1 %vm452_vm2, %v1313_v28  ;;  %315 = vst.msk [vmem:[#allocation2 + $0x88] sm:$0xf] %vm274_vm1, %v309_v26  ;;  %v1136_v28 = vsel %vm1083_vm6, %v1126_v15, %v1135_v18  ;;  %v1708_v43 = vrot.slane %v1706_v11, 3  ;;  %v1712_v50 = vshrl.u32 %v5191_v24, 16  ;;  %v1739_v15 = vshrl.u32 %v5215_v49, 16 }
  0x5d   : > { %v1732_v18 = vrot.slane %v1730_v8, 2  ;;  %v1533_v11 = vrot.slane %v5191_v24, 2  ;;  %v1535_v26 = vrot.slane %v5196_v34, 2  ;;  %v1541_v8 = vrot.slane %v5230_v59, 2 }
  0x5e   : > { %v1714_v61 = vrot.slane %v1712_v50, 2 }
  0x5f   : > { %v1534_v37 = vsel %vm1310_vm5, %v1531_v7, %v1533_v11 }
  0x62   : > { %4441 = vmatmul.mubr.msk.bf16.gmra.mxu0 %vm452_vm2, %v717_v47  ;;  %v1326_v47 = vrot.slane %v4760_v21, 2  ;;  %v1741_v21 = vrot.slane %v1739_v15, 2  ;;  %v1543_v15 = vrot.slane %v5235_v23, 2 }
  0x63   : > { %4483 = vmatmul.mubr.msk.bf16.vlgmr.msra.gmra.mxu1 %vm452_vm2, %v1315_v51  ;;  %4464 = vmatprep.mubr.msk.bf16.mxu0 %vm452_vm2, %v1100_v32  ;;  %v1715_v51 = vshll.u32 %v5191_v24, 16  ;;  %v1701_v32 = vor.u32 %v1700_v40, %v1697_v38  ;;  %v1963_v38 = vsel %vm477_vm0, %v5172_v56, 0 }
  0x64   : > { %4517 = vmatpush3.bf16.msra.mxu1 %v1799_v25  ;;  %4486 = vmatprep.mubr.msk.bf16.mxu1 %vm452_vm2, %v1317_v53  ;;  %v1709_v25 = vor.u32 %v1708_v43, %v1705_v42  ;;  %v1721_v53 = vshrl.u32 %v5196_v34, 16  ;;  %v1327_v30 = vsel %vm1310_vm5, %v1324_v19, %v1326_v47  ;;  %v1745_v33 = vor.u32 %v1744_v22, %v1741_v21 }
  0x65   : > { %4723 = vmatprep.subr.msk.bf16.mxu1 %vm477_vm0, %v5144_v58  ;;  %v1717_v62 = vrot.slane %v1715_v51, 3  ;;  %v1536_v42 = vsel %vm1310_vm5, %v1533_v11, %v1535_v26  ;;  %v1759_v47 = vrot.slane %v1757_v12, 2  ;;  %v1537_v51 = vrot.slane %v5212_v63, 2  ;;  %v5317_v12 = vld [vmem:[#allocation2 + $0x60] sm:$0xff]  }
  0x66   : > { %v1710_v0 = vsel %vm1693_vm7, %v1701_v32, %v1709_v25  ;;  %v1723_v2 = vrot.slane %v1721_v53, 2  ;;  %v1766_v53 = vshrl.u32 %v5261_v10, 16  ;;  %v1544_v21 = vsel %vm1310_vm5, %v1541_v8, %v1543_v15 }
  0x6a   : > { %4465 = vmatmul.mubr.msk.bf16.vlgmr.msra.gmra.mxu0 %vm452_vm2, %v1109_v41  ;;  %v1162_v41 = vor.u32 %v1161_v27, %v1158_v57  ;;  %v5280_v57 = vld [vmem:[#allocation2 + $0x48] sm:$0xff]  }
  0x6b   : > { %4499 = vmatpush3.bf16.msra.mxu0 %v1572_v5  ;;  %4487 = vmatmul.mubr.msk.bf16.gmra.mxu1 %vm452_vm2, %v1319_v6  ;;  %v1530_v5 = vrot.slane %v5164_v13, 2  ;;  %v1718_v6 = vor.u32 %v1717_v62, %v1714_v61  ;;  %v1768_v62 = vrot.slane %v1766_v53, 2  ;;  %v2207_v22 = vshrl.u32 %v5280_v57, 16 }
  0x6c   : > { %4468 = vmatprep.mubr.msk.bf16.mxu0 %vm452_vm2, %v1118_v9  ;;  %4490 = vmatprep.mubr.msk.bf16.mxu1 %vm452_vm2, %v1321_v44  ;;  %v1733_v9 = vshll.u32 %v5212_v63, 16  ;;  %v1727_v44 = vor.u32 %v1726_v45, %v1723_v2  ;;  %v1163_v17 = vsel %vm1083_vm6, %v1153_v48, %v1162_v41  ;;  %v310_v2 = vld [vmem:[%s5113_s17 + $0xc] sm:$0xf]  ;;  %v1924_v53 = vrot.slane %v5191_v24, 3 }
  0x6d   : > { %4722 = vmatprep.subr.msk.bf16.mxu0 %vm477_vm0, %v5172_v56  ;;  %v1719_v4 = vsel %vm1693_vm7, %v1709_v25, %v1718_v6  ;;  %v1532_v13 = vsel %vm1310_vm5, %v1530_v5, %v1531_v7  ;;  %v5271_v56 = vld [vmem:[%s6291_s2] sm:$0x3]  ;;  %v1539_v25 = vrot.slane %v5215_v49, 2  ;;  %316 = vst.msk [vmem:[#allocation2 + $0x8c] sm:$0xf] %vm274_vm1, %v310_v2 }
  0x6e   : > { %v1735_v19 = vrot.slane %v1733_v9, 3  ;;  %v1728_v20 = vsel %vm1693_vm7, %v1718_v6, %v1727_v44  ;;  %v2203_v6 = vshll.u32 %v5280_v57, 16  ;;  %v311_v7 = vld [vmem:[%s5113_s17 + $0x10] sm:$0xf] }
  0x6f   : > { %v1540_v61 = vsel %vm1310_vm5, %v1537_v51, %v1539_v25  ;;  %317 = vst.msk [vmem:[#allocation2 + $0x90] sm:$0xf] %vm274_vm1, %v311_v7  ;;  %v5299_v9 = vld [vmem:[#allocation2 + $0x50] sm:$0xff]   ;;  %v4150_v7 = vld [vmem:[%s6291_s2 + $0x6] sm:$0x3] }
  0x70   : > { %v1736_v58 = vor.u32 %v1735_v19, %v1732_v18  ;;  %v1542_v18 = vsel %vm1310_vm5, %v1539_v25, %v1541_v8  ;;  %v4770_v19 = vld [vmem:[#allocation2 + $0x50] ss:$0 sps:$4 sm:$0x33]   ;;  %v5337_v25 = vld [vmem:[%s6291_s2 + $0x8] sm:$0x3] }
  0x72   : > { %4469 = vmatmul.mubr.msk.bf16.gmra.mxu0 %vm452_vm2, %v1127_v55  ;;  %v1748_v55 = vshrl.u32 %v5230_v59, 16  ;;  %v1737_v40 = vsel %vm1693_vm7, %v1727_v44, %v1736_v58  ;;  %v1746_v31 = vsel %vm1693_vm7, %v1736_v58, %v1745_v33 }
  0x73   : > { %4491 = vmatmul.mubr.msk.bf16.gmra.mxu1 %vm452_vm2, %v1323_v29  ;;  %4472 = vmatprep.mubr.msk.bf16.mxu0 %vm452_vm2, %v1136_v28  ;;  %v1751_v29 = vshll.u32 %v5230_v59, 16  ;;  %v1760_v28 = vshll.u32 %v5235_v23, 16 }
  0x74   : > { %4494 = vmatprep.mubr.msk.bf16.mxu1 %vm452_vm2, %v1325_v35  ;;  %v2133_v35 = vld [vmem:[#allocation2 + $0x40] sm:$0xf]  ;;  %v1750_v43 = vrot.slane %v1748_v55, 2 }
  0x75   : > { %v1753_v46 = vrot.slane %v1751_v29, 3  ;;  %v1762_v48 = vrot.slane %v1760_v28, 3  ;;  %v5265_v50 = vcombine.low %v2133_v35, %v5254_v36  ;;  %v1545_v29 = vrot.slane %v4770_v19, 2 }
  0x76   : > { %v1922_v35 = vrot.slane %v5166_v14, 3 }
  0x77   : > { %v1754_v32 = vor.u32 %v1753_v46, %v1750_v43  ;;  %v2198_v27 = vshll.u32 %v5265_v50, 16  ;;  %v2196_v41 = vshrl.u32 %v5265_v50, 16  ;;  %v2227_v43 = vshll.u32 %v5317_v12, 16 }
  0x79   : > { %v2200_v5 = vrot.slane %v2198_v27, 1  ;;  %v1926_v27 = vrot.slane %v5196_v34, 3 }
  0x7a   : > { %4473 = vmatmul.mubr.msk.bf16.gmra.mxu0 %vm452_vm2, %v1145_v39  ;;  %v1763_v39 = vor.u32 %v1762_v48, %v1759_v47  ;;  %v2550_v48 = vsel %vm477_vm0, %v5241_v52, 0 }
  0x7b   : > { %4495 = vmatmul.mubr.msk.bf16.gmra.mxu1 %vm452_vm2, %v1327_v30  ;;  %4476 = vmatprep.mubr.msk.bf16.mxu0 %vm452_vm2, %v1154_v60  ;;  %v1538_v30 = vsel %vm1310_vm5, %v1535_v26, %v1537_v51  ;;  %v1755_v60 = vsel %vm1693_vm7, %v1745_v33, %v1754_v32  ;;  %v2201_v16 = vor.u32 %v2200_v5, %v2196_v41  ;;  %v2215_v26 = vshrl.u32 %v5299_v9, 16 }
  0x7c   : > { %4518 = vmatprep.mubr.msk.bf16.mxu1 %vm452_vm2, %v1710_v0  ;;  %v1771_v0 = vrot.slane %v1769_v54, 3  ;;  %v1764_v45 = vsel %vm1693_vm7, %v1754_v32, %v1763_v39  ;;  %v2231_v51 = vshrl.u32 %v5317_v12, 16  ;;  %v5342_v54 = vld [vmem:[#allocation2 + $0x70] sm:$0xff]   ;;  %v1927_v34 = vsel %vm1920_vm8, %v1924_v53, %v1926_v27 }
  0x7d   : > { %v2243_v24 = vshll.u32 %v5342_v54, 16  ;;  %v2247_v5 = vshrl.u32 %v5342_v54, 16 }
  0x7e   : > { %v1772_v44 = vor.u32 %v1771_v0, %v1768_v62  ;;  %v1925_v62 = vsel %vm1920_vm8, %v1922_v35, %v1924_v53  ;;  %v2404_v0 = vsel %vm477_vm0, %v5271_v56, 0  ;;  %v5422_v53 = vld [vmem:[#allocation2 + $0x50] sm:$0xff]  }
  0x7f   : > { %v2245_v8 = vrot.slane %v2243_v24, 1 }
  0x82   : > { %4477 = vmatmul.mubr.msk.bf16.gmra.mxu0 %vm452_vm2, %v1163_v17  ;;  %v2205_v17 = vrot.slane %v2203_v6, 1 }
  0x83   : > { %4519 = vmatmul.mubr.msk.bf16.vlgmr.msra.gmra.mxu1 %vm452_vm2, %v1719_v4  ;;  %4500 = vmatprep.mubr.msk.bf16.mxu0 %vm452_vm2, %v1532_v13  ;;  %v1914_v4 = vld [vmem:[#allocation2 + $0x10] sm:$0x8]  ;;  %v5303_v13 = vld [vmem:[#allocation2 + $0x58] sm:$0xff]  }
  0x84   : > { %4553 = vmatpush3.bf16.msra.mxu1 %v2288_v1  ;;  %4522 = vmatprep.mubr.msk.bf16.mxu1 %vm452_vm2, %v1728_v20  ;;  %v2211_v1 = vshll.u32 %v5299_v9, 16  ;;  %v1773_v20 = vsel %vm1693_vm7, %v1763_v39, %v1772_v44  ;;  %v4104_v11 = vcombine.low %v1914_v4, %v5155_v3  ;;  %v2206_v58 = vsel %vm383_vm3, %v2201_v16, %v2205_v17  ;;  %v5369_v16 = vld [vmem:[#allocation2 + $0x80] ss:$0 sps:$4 sm:$0x11]  }
  0x85   : > { %4725 = vmatprep.subr.msk.bf16.mxu1 %vm477_vm0, %v5241_v52  ;;  %v2219_v55 = vshll.u32 %v5303_v13, 16  ;;  %v2209_v28 = vor.u32 %v2207_v22, %v2205_v17  ;;  %v2223_v47 = vshrl.u32 %v5303_v13, 16  ;;  %v2229_v52 = vrot.slane %v2227_v43, 1 }
  0x86   : > { %v2213_v33 = vrot.slane %v2211_v1, 1  ;;  %v1921_v3 = vrot.slane %v4104_v11, 3  ;;  %v2249_v17 = vor.u32 %v2247_v5, %v2245_v8  ;;  %v1932_v11 = vrot.slane %v5230_v59, 3  ;;  %v5445_v5 = vld [vmem:[#allocation2 + $0x60] sm:$0xff]  }
  0x87   : > { %v1936_v59 = vrot.slane %v5261_v10, 3  ;;  %v2993_v43 = vsel %vm477_vm0, %v5337_v25, 0  ;;  %v5406_v10 = vld [vmem:[%s6291_s2 + $0xc] sm:$0x3] }
  0x88   : > { %v2214_v46 = vsel %vm383_vm3, %v2209_v28, %v2213_v33 }
  0x8a   : > { %4501 = vmatmul.mubr.msk.bf16.vlgmr.msra.gmra.mxu0 %vm452_vm2, %v1534_v37  ;;  %v2217_v37 = vor.u32 %v2215_v26, %v2213_v33  ;;  %v2509_v33 = vrot.slane %v5280_v57, 1 }
  0x8b   : > { %4535 = vmatpush3.bf16.msra.mxu0 %v1963_v38  ;;  %4523 = vmatmul.mubr.msk.bf16.gmra.mxu1 %vm452_vm2, %v1737_v40  ;;  %v2221_v38 = vrot.slane %v2219_v55, 1  ;;  %v5321_v40 = vld [vmem:[#allocation2 + $0x68] sm:$0xff]   ;;  %v1934_v55 = vrot.slane %v5235_v23, 3  ;;  %v2511_v23 = vrot.slane %v5299_v9, 1 }
  0x8c   : > { %4504 = vmatprep.mubr.msk.bf16.mxu0 %vm452_vm2, %v1536_v42  ;;  %4526 = vmatprep.mubr.msk.bf16.mxu1 %vm452_vm2, %v1746_v31  ;;  %v1546_v42 = vsel %vm1310_vm5, %v1543_v15, %v1545_v29  ;;  %v1923_v31 = vsel %vm1920_vm8, %v1921_v3, %v1922_v35  ;;  %v2235_v32 = vshll.u32 %v5321_v40, 16  ;;  %v1930_v15 = vrot.slane %v5215_v49, 3 }
  0x8d   : > { %4724 = vmatprep.subr.msk.bf16.mxu0 %vm477_vm0, %v5271_v56  ;;  %v2222_v14 = vsel %vm383_vm3, %v2217_v37, %v2221_v38  ;;  %v2225_v39 = vor.u32 %v2223_v47, %v2221_v38  ;;  %v1928_v56 = vrot.slane %v5212_v63, 3  ;;  %v1935_v3 = vsel %vm1920_vm8, %v1932_v11, %v1934_v55 }
  0x8e   : > { %v1933_v28 = vsel %vm1920_vm8, %v1930_v15, %v1932_v11  ;;  %v2513_v37 = vrot.slane %v5303_v13, 1  ;;  %v1937_v38 = vsel %vm1920_vm8, %v1934_v55, %v1936_v59  ;;  %v2517_v47 = vrot.slane %v5321_v40, 1 }
  0x8f   : > { %v2230_v2 = vsel %vm383_vm3, %v2225_v39, %v2229_v52  ;;  %v1929_v19 = vsel %vm1920_vm8, %v1926_v27, %v1928_v56  ;;  %v1931_v63 = vsel %vm1920_vm8, %v1928_v56, %v1930_v15  ;;  %v2519_v39 = vrot.slane %v5342_v54, 1 }
  0x90   : > { %v2915_v15 = vshrl.u32 %v5445_v5, 16 }
  0x91   : > { %v2520_v24 = vsel %vm700_vm4, %v2517_v47, %v2519_v39 }
  0x92   : > { %4505 = vmatmul.mubr.msk.bf16.gmra.mxu0 %vm452_vm2, %v1538_v30  ;;  %v2233_v30 = vor.u32 %v2231_v51, %v2229_v52  ;;  %v2768_v51 = vsel %vm477_vm0, %v4150_v7, 0  ;;  %v5429_v52 = vld [vmem:[%s6291_s2 + $0xa] sm:$0x3] }
  0x93   : > { %4527 = vmatmul.mubr.msk.bf16.gmra.mxu1 %vm452_vm2, %v1755_v60  ;;  %4508 = vmatprep.mubr.msk.bf16.mxu0 %vm452_vm2, %v1540_v61  ;;  %v2237_v60 = vrot.slane %v2235_v32, 1  ;;  %v5346_v61 = vld [vmem:[#allocation2 + $0x78] sm:$0xff]  }
  0x94   : > { %4530 = vmatprep.mubr.msk.bf16.mxu1 %vm452_vm2, %v1764_v45  ;;  %v2239_v45 = vshrl.u32 %v5321_v40, 16  ;;  %v2251_v6 = vshll.u32 %v5346_v61, 16  ;;  %v2521_v27 = vrot.slane %v5346_v61, 1 }
  0x95   : > { %v2238_v41 = vsel %vm383_vm3, %v2233_v30, %v2237_v60 }
  0x96   : > { %v2241_v44 = vor.u32 %v2239_v45, %v2237_v60  ;;  %v2253_v4 = vrot.slane %v2251_v6, 1  ;;  %v2523_v6 = vrot.slane %v5369_v16, 1 }
  0x98   : > { %v2246_v1 = vsel %vm383_vm3, %v2241_v44, %v2245_v8  ;;  %v2254_v22 = vsel %vm383_vm3, %v2249_v17, %v2253_v4  ;;  %v2918_v17 = vshll.u32 %v5445_v5, 16 }
  0x9a   : > { %4509 = vmatmul.mubr.msk.bf16.gmra.mxu0 %vm452_vm2, %v1542_v18  ;;  %v2503_v18 = vld [vmem:[#allocation2 + $0x40] sm:$0xe] }
  0x9b   : > { %4531 = vmatmul.mubr.msk.bf16.gmra.mxu1 %vm452_vm2, %v1773_v20  ;;  %4512 = vmatprep.mubr.msk.bf16.mxu0 %vm452_vm2, %v1544_v21  ;;  %v2255_v20 = vshrl.u32 %v5346_v61, 16  ;;  %v2259_v21 = vshll.u32 %v5369_v16, 16  ;;  %v4141_v49 = vcombine.low %v2503_v18, %v5254_v36  ;;  %v2920_v16 = vrot.slane %v2918_v17, 2 }
  0x9c   : > { %4554 = vmatprep.mubr.msk.bf16.mxu1 %vm452_vm2, %v2206_v58 }
  0x9d   : > { %v2257_v58 = vor.u32 %v2255_v20, %v2253_v4  ;;  %v2261_v26 = vrot.slane %v2259_v21, 1  ;;  %v2508_v29 = vrot.slane %v4141_v49, 1 }
  0x9f   : > { %v2262_v36 = vsel %vm383_vm3, %v2257_v58, %v2261_v26  ;;  %v2510_v35 = vsel %vm700_vm4, %v2508_v29, %v2509_v33 }
  0xa2   : > { %4513 = vmatmul.mubr.msk.bf16.gmra.mxu0 %vm452_vm2, %v1546_v42  ;;  %v2512_v42 = vsel %vm700_vm4, %v2509_v33, %v2511_v23 }
  0xa3   : > { %4555 = vmatmul.mubr.msk.bf16.vlgmr.msra.gmra.mxu1 %vm452_vm2, %v2214_v46  ;;  %4536 = vmatprep.mubr.msk.bf16.mxu0 %vm452_vm2, %v1923_v31  ;;  %v2514_v46 = vsel %vm700_vm4, %v2511_v23, %v2513_v37  ;;  %v2515_v31 = vrot.slane %v5317_v12, 1  ;;  %v5482_v23 = vld [vmem:[#allocation2 + $0x80] sm:$0xff]  }
  0xa4   : > { %4589 = vmatpush3.bf16.msra.mxu1 %v2550_v48  ;;  %4558 = vmatprep.mubr.msk.bf16.mxu1 %vm452_vm2, %v2222_v14  ;;  %v2665_v48 = vld [vmem:[#allocation2 + $0x48] sm:$0xe]  ;;  %v5416_v14 = vld [vmem:[#allocation2 + $0x4c] sm:$0xf] }
  0xa5   : > { %4727 = vmatprep.subr.msk.bf16.mxu1 %vm477_vm0, %v5337_v25  ;;  %v2516_v32 = vsel %vm700_vm4, %v2513_v37, %v2515_v31  ;;  %v2518_v25 = vsel %vm700_vm4, %v2515_v31, %v2517_v47  ;;  %v5489_v37 = vld [vmem:[%s6291_s2 + $0x10] sm:$0x3]  ;;  %v2731_v31 = vrot.slane %v5445_v5, 1 }
  0xaa   : > { %4537 = vmatmul.mubr.msk.bf16.vlgmr.msra.gmra.mxu0 %vm452_vm2, %v1925_v62  ;;  %v2900_v62 = vshll.u32 %v5422_v53, 16 }
  0xab   : > { %4571 = vmatpush3.bf16.msra.mxu0 %v2404_v0  ;;  %4559 = vmatmul.mubr.msk.bf16.gmra.mxu1 %vm452_vm2, %v2230_v2  ;;  %v2522_v0 = vsel %vm700_vm4, %v2519_v39, %v2521_v27 }
  0xac   : > { %4540 = vmatprep.mubr.msk.bf16.mxu0 %vm452_vm2, %v1927_v34  ;;  %4562 = vmatprep.mubr.msk.bf16.mxu1 %vm452_vm2, %v2238_v41  ;;  %v2902_v41 = vrot.slane %v2900_v62, 2 }
  0xad   : > { %4726 = vmatprep.subr.msk.bf16.mxu0 %vm477_vm0, %v4150_v7 }
  0xb2   : > { %4541 = vmatmul.mubr.msk.bf16.gmra.mxu0 %vm452_vm2, %v1929_v19  ;;  %v5459_v19 = vld [vmem:[#allocation2 + $0x68] sm:$0xff]  }
  0xb3   : > { %4563 = vmatmul.mubr.msk.bf16.gmra.mxu1 %vm452_vm2, %v2246_v1  ;;  %4544 = vmatprep.mubr.msk.bf16.mxu0 %vm452_vm2, %v1931_v63  ;;  %v2917_v1 = vrot.slane %v2915_v15, 1  ;;  %v5462_v63 = vld [vmem:[#allocation2 + $0x70] sm:$0xff]   ;;  %v2924_v49 = vshrl.u32 %v5459_v19, 16  ;;  %v2927_v11 = vshll.u32 %v5459_v19, 16 }
  0xb4   : > { %4566 = vmatprep.mubr.msk.bf16.mxu1 %vm452_vm2, %v2254_v22  ;;  %v2727_v22 = vrot.slane %v5422_v53, 1  ;;  %v2933_v26 = vshrl.u32 %v5462_v63, 16 }
  0xb5   : > { %v2921_v58 = vor.u32 %v2920_v16, %v2917_v1  ;;  %v2929_v33 = vrot.slane %v2927_v11, 2  ;;  %v5529_v1 = vld [vmem:[#allocation2 + $0x54] sm:$0xf] }
  0xba   : > { %4545 = vmatmul.mubr.msk.bf16.gmra.mxu0 %vm452_vm2, %v1933_v28  ;;  %v5477_v28 = vld [vmem:[#allocation2 + $0x78] sm:$0xff]  }
  0xbb   : > { %4567 = vmatmul.mubr.msk.bf16.gmra.mxu1 %vm452_vm2, %v2262_v36  ;;  %4548 = vmatprep.mubr.msk.bf16.mxu0 %vm452_vm2, %v1935_v3  ;;  %v3373_v36 = vsel %vm477_vm0, %v5406_v10, 0 }
  0xbc   : > { %4590 = vmatprep.mubr.msk.bf16.mxu1 %vm452_vm2, %v2510_v35  ;;  %v2935_v35 = vrot.slane %v2933_v26, 1 }
  0xc2   : > { %4549 = vmatmul.mubr.msk.bf16.gmra.mxu0 %vm452_vm2, %v1937_v38 }
  0xc3   : > { %4591 = vmatmul.mubr.msk.bf16.vlgmr.msra.gmra.mxu1 %vm452_vm2, %v2512_v42  ;;  %4572 = vmatprep.mubr.msk.bf16.mxu0 %vm452_vm2, %v5265_v50  ;;  %v4151_v50 = vcombine.low %v2665_v48, %v5416_v14  ;;  %v2951_v48 = vshrl.u32 %v5482_v23, 16 }
  0xc4   : > { %4625 = vmatpush3.bf16.msra.mxu1 %v2993_v43  ;;  %4594 = vmatprep.mubr.msk.bf16.mxu1 %vm452_vm2, %v2514_v46  ;;  %v2942_v46 = vshrl.u32 %v5477_v28, 16 }
  0xc5   : > { %4729 = vmatprep.subr.msk.bf16.mxu1 %vm477_vm0, %v5406_v10  ;;  %v2889_v30 = vshrl.u32 %v4151_v50, 16  ;;  %v2892_v60 = vshll.u32 %v4151_v50, 16  ;;  %v2726_v20 = vrot.slane %v4151_v50, 1  ;;  %v3155_v50 = vsel %vm477_vm0, %v5429_v52, 0 }
  0xc7   : > { %v2891_v2 = vrot.slane %v2889_v30, 1  ;;  %v2894_v45 = vrot.slane %v2892_v60, 2  ;;  %v2728_v29 = vsel %vm700_vm4, %v2726_v20, %v2727_v22  ;;  %v5506_v60 = vld [vmem:[#allocation2 + $0x88] ss:$0 sps:$4 sm:$0x33]  }
  0xc8   : > { %v2963_v15 = vshll.u32 %v5506_v60, 16 }
  0xc9   : > { %v2895_v8 = vor.u32 %v2894_v45, %v2891_v2 }
  0xca   : > { %4573 = vmatmul.mubr.msk.bf16.vlgmr.msra.gmra.mxu0 %vm452_vm2, %v5280_v57  ;;  %v2897_v57 = vshrl.u32 %v5422_v53, 16  ;;  %v2965_v26 = vrot.slane %v2963_v15, 2  ;;  %v3114_v15 = vrot.slane %v5422_v53, 2 }
  0xcb   : > { %4607 = vmatpush3.bf16.msra.mxu0 %v2768_v51  ;;  %4595 = vmatmul.mubr.msk.bf16.gmra.mxu1 %vm452_vm2, %v2516_v32  ;;  %v2954_v51 = vshll.u32 %v5482_v23, 16 }
  0xcc   : > { %4576 = vmatprep.mubr.msk.bf16.mxu0 %vm452_vm2, %v5299_v9  ;;  %4598 = vmatprep.mubr.msk.bf16.mxu1 %vm452_vm2, %v2518_v25  ;;  %v5443_v9 = vld [vmem:[#allocation2 + $0x58] sm:$0xff]   ;;  %v2899_v34 = vrot.slane %v2897_v57, 1 }
  0xcd   : > { %4728 = vmatprep.subr.msk.bf16.mxu0 %vm477_vm0, %v5429_v52  ;;  %v2906_v7 = vshrl.u32 %v5443_v9, 16  ;;  %v2909_v56 = vshll.u32 %v5443_v9, 16  ;;  %v2729_v42 = vrot.slane %v5443_v9, 1  ;;  %v2956_v2 = vrot.slane %v2954_v51, 2  ;;  %v5514_v52 = vld [vmem:[%s6291_s2 + $0xe] sm:$0x3] }
  0xce   : > { %v2903_v44 = vor.u32 %v2902_v41, %v2899_v34 }
  0xcf   : > { %v2908_v4 = vrot.slane %v2906_v7, 1  ;;  %v2911_v18 = vrot.slane %v2909_v56, 2  ;;  %v2730_v25 = vsel %vm700_vm4, %v2727_v22, %v2729_v42  ;;  %v2732_v62 = vsel %vm700_vm4, %v2729_v42, %v2731_v31 }
  0xd1   : > { %v2912_v21 = vor.u32 %v2911_v18, %v2908_v4 }
  0xd2   : > { %4577 = vmatmul.mubr.msk.bf16.gmra.mxu0 %vm452_vm2, %v5303_v13  ;;  %v2524_v13 = vsel %vm700_vm4, %v2521_v27, %v2523_v6  ;;  %v2944_v27 = vrot.slane %v2942_v46, 1  ;;  %v2733_v6 = vrot.slane %v5459_v19, 1 }
  0xd3   : > { %4599 = vmatmul.mubr.msk.bf16.gmra.mxu1 %vm452_vm2, %v2520_v24  ;;  %4580 = vmatprep.mubr.msk.bf16.mxu0 %vm452_vm2, %v5317_v12  ;;  %v2904_v12 = vsel %vm1083_vm6, %v2895_v8, %v2903_v44  ;;  %v2913_v55 = vsel %vm1083_vm6, %v2903_v44, %v2912_v21  ;;  %v2922_v3 = vsel %vm1083_vm6, %v2912_v21, %v2921_v58  ;;  %v2735_v8 = vrot.slane %v5462_v63, 1 }
  0xd4   : > { %4602 = vmatprep.mubr.msk.bf16.mxu1 %vm452_vm2, %v2522_v0  ;;  %v2953_v0 = vrot.slane %v2951_v48, 1  ;;  %v2960_v44 = vshrl.u32 %v5506_v60, 16  ;;  %v2734_v21 = vsel %vm700_vm4, %v2731_v31, %v2733_v6 }
  0xd5   : > { %v2736_v11 = vsel %vm700_vm4, %v2733_v6, %v2735_v8 }
  0xd6   : > { %v2957_v4 = vor.u32 %v2956_v2, %v2953_v0 }
  0xda   : > { %4581 = vmatmul.mubr.msk.bf16.gmra.mxu0 %vm452_vm2, %v5321_v40  ;;  %v2936_v40 = vshll.u32 %v5462_v63, 16 }
  0xdb   : > { %4603 = vmatmul.mubr.msk.bf16.gmra.mxu1 %vm452_vm2, %v2524_v13  ;;  %4584 = vmatprep.mubr.msk.bf16.mxu0 %vm452_vm2, %v5342_v54  ;;  %v2926_v54 = vrot.slane %v2924_v49, 1 }
  0xdc   : > { %4626 = vmatprep.mubr.msk.bf16.mxu1 %vm452_vm2, %v2904_v12  ;;  %v2938_v59 = vrot.slane %v2936_v40, 2  ;;  %v3270_v12 = vld [vmem:[#allocation2 + $0x50] sm:$0xc] }
  0xdd   : > { %v2930_v43 = vor.u32 %v2929_v33, %v2926_v54  ;;  %v5540_v54 = vcombine.low %v3270_v12, %v5529_v1  ;;  %v5542_v33 = vld [vmem:[#allocation2 + $0x58] sm:$0xff]  }
  0xde   : > { %v2939_v47 = vor.u32 %v2938_v59, %v2935_v35  ;;  %v2737_v59 = vrot.slane %v5477_v28, 1  ;;  %v3332_v31 = vrot.slane %v5542_v33, 2 }
  0xdf   : > { %v2931_v39 = vsel %vm1083_vm6, %v2921_v58, %v2930_v43  ;;  %v2962_v58 = vrot.slane %v2960_v44, 1 }
  0xe0   : > { %v2940_v24 = vsel %vm1083_vm6, %v2930_v43, %v2939_v47  ;;  %v2739_v43 = vrot.slane %v5482_v23, 1 }
  0xe1   : > { %v2966_v42 = vor.u32 %v2965_v26, %v2962_v58  ;;  %v5585_v26 = vld [vmem:[#allocation2 + $0x70] sm:$0xff]  }
  0xe2   : > { %4585 = vmatmul.mubr.msk.bf16.gmra.mxu0 %vm452_vm2, %v5346_v61  ;;  %v2945_v61 = vshll.u32 %v5477_v28, 16 }
  0xe3   : > { %v4412_v38 = vpop.f32.mrf.mxu1  ;;  %4627 = vmatmul.mubr.msk.bf16.vlgmr.msra.gmra.mxu1 %vm452_vm2, %v2913_v55  ;;  %4608 = vmatprep.mubr.msk.bf16.mxu0 %vm452_vm2, %v2728_v29 }
  0xe4   : > { %4661 = vmatpush3.bf16.msra.mxu1 %v3373_v36  ;;  %4630 = vmatprep.mubr.msk.bf16.mxu1 %vm452_vm2, %v2922_v3  ;;  %v2947_v30 = vrot.slane %v2945_v61, 2 }
  0xe5   : > { %v631_v10 = vpop.f32.mrf.mxu1  ;;  %4731 = vmatprep.subr.msk.bf16.mxu1 %vm477_vm0, %v5489_v37 }
  0xe6   : > { %v2948_v56 = vor.u32 %v2947_v30, %v2944_v27  ;;  %v2967_v27 = vsel %vm1083_vm6, %v2957_v4, %v2966_v42  ;;  %v2740_v30 = vsel %vm700_vm4, %v2737_v59, %v2739_v43 }
  0xe7   : > { %v4413_v32 = vpop.f32.mrf.mxu1 }
  0xe8   : > { %v2949_v49 = vsel %vm1083_vm6, %v2939_v47, %v2948_v56  ;;  %v2958_v29 = vsel %vm1083_vm6, %v2948_v56, %v2957_v4  ;;  %v3108_v47 = vld [vmem:[#allocation2 + $0x48] sm:$0xc] }
  0xe9   : > { %v634_v57 = vpop.f32.mrf.mxu1 }
  0xea   : > { %v4394_v45 = vpop.f32.mrf.mxu0  ;;  %4609 = vmatmul.mubr.msk.bf16.vlgmr.msra.gmra.mxu0 %vm452_vm2, %v2730_v25  ;;  %v2738_v25 = vsel %vm700_vm4, %v2735_v8, %v2737_v59 }
  0xeb   : > { %v5516_v34 = vadd.f32 %v4412_v38, %v4394_v45  ;;  %4643 = vmatpush3.bf16.msra.mxu0 %v3155_v50  ;;  %v4416_v41 = vpop.f32.mrf.mxu1  ;;  %4631 = vmatmul.mubr.msk.bf16.gmra.mxu1 %vm452_vm2, %v2931_v39  ;;  %v4789_v50 = vld [vmem:[#allocation2 + $0x88] ss:$0 sps:$4 sm:$0x11]  }
  0xec   : > { %v515_v7 = vpop.f32.mrf.mxu0  ;;  %4612 = vmatprep.mubr.msk.bf16.mxu0 %vm452_vm2, %v2732_v62  ;;  %4634 = vmatprep.mubr.msk.bf16.mxu1 %vm452_vm2, %v2940_v24  ;;  %v4179_v62 = vcombine.low %v3108_v47, %v5416_v14  ;;  %v5567_v45 = vld [vmem:[#allocation2 + $0x68] sm:$0xff]   ;;  %v2741_v56 = vrot.slane %v4789_v50, 1  ;;  %v3118_v47 = vrot.slane %v5445_v5, 2 }
  0xed   : > { %v5525_v17 = vadd.f32 %v631_v10, %v515_v7  ;;  %v647_v13 = vpop.f32.mrf.mxu1  ;;  %4730 = vmatprep.subr.msk.bf16.mxu0 %vm477_vm0, %v5514_v52  ;;  %v3331_v10 = vrot.slane %v5540_v54, 2 }
  0xee   : > { %v4395_v18 = vpop.f32.mrf.mxu0  ;;  %v3113_v44 = vrot.slane %v4179_v62, 2  ;;  %v5612_v62 = vld [vmem:[#allocation2 + $0x80] sm:$0xff]  }
  0xef   : > { %v5531_v16 = vadd.f32 %v4413_v32, %v4395_v18  ;;  %v4417_v20 = vpop.f32.mrf.mxu1  ;;  %v3333_v2 = vsel %vm1310_vm5, %v3331_v10, %v3332_v31  ;;  %v3336_v18 = vrot.slane %v5567_v45, 2 }
  0xf0   : > { %v518_v22 = vpop.f32.mrf.mxu0  ;;  %v3115_v58 = vsel %vm1310_vm5, %v3113_v44, %v3114_v15 }
  0xf1   : > { %v5536_v40 = vadd.f32 %v634_v57, %v518_v22  ;;  %v650_v55 = vpop.f32.mrf.mxu1  ;;  %v5561_v57 = vld [vmem:[#allocation2 + $0x60] sm:$0xff]   ;;  %v2742_v22 = vsel %vm700_vm4, %v2739_v43, %v2741_v56  ;;  %v3116_v43 = vrot.slane %v5443_v9, 2 }
  0xf2   : > { %v4398_v36 = vpop.f32.mrf.mxu0  ;;  %4613 = vmatmul.mubr.msk.bf16.gmra.mxu0 %vm452_vm2, %v2734_v21  ;;  %v3334_v14 = vrot.slane %v5561_v57, 2 }
  0xf3   : > { %v5545_v3 = vadd.f32 %v4416_v41, %v4398_v36  ;;  %v4420_v35 = vpop.f32.mrf.mxu1  ;;  %4635 = vmatmul.mubr.msk.bf16.gmra.mxu1 %vm452_vm2, %v2949_v49  ;;  %4616 = vmatprep.mubr.msk.bf16.mxu0 %vm452_vm2, %v2736_v11  ;;  %v3119_v5 = vsel %vm1310_vm5, %v3116_v43, %v3118_v47 }
  0xf4   : > { %v531_v38 = vpop.f32.mrf.mxu0  ;;  %4638 = vmatprep.mubr.msk.bf16.mxu1 %vm452_vm2, %v2958_v29  ;;  %v3335_v11 = vsel %vm1310_vm5, %v3332_v31, %v3334_v14  ;;  %v3760_v29 = vsel %vm477_vm0, %v5489_v37, 0  ;;  %v3337_v36 = vsel %vm1310_vm5, %v3334_v14, %v3336_v18  ;;  %v3338_v37 = vrot.slane %v5585_v26, 2 }
  0xf5   : > { %v5552_v46 = vadd.f32 %v647_v13, %v531_v38  ;;  %v663_v61 = vpop.f32.mrf.mxu1  ;;  %v3120_v14 = vrot.slane %v5459_v19, 2 }
  0xf6   : > { %v4399_v48 = vpop.f32.mrf.mxu0 }
  0xf7   : > { %v5556_v51 = vadd.f32 %v4417_v20, %v4399_v48  ;;  %v4421_v32 = vpop.f32.mrf.mxu1 }
  0xf8   : > { %v534_v39 = vpop.f32.mrf.mxu0 }
  0xf9   : > { %v5564_v24 = vadd.f32 %v650_v55, %v534_v39  ;;  %v666_v0 = vpop.f32.mrf.mxu1  ;;  %v3117_v39 = vsel %vm1310_vm5, %v3114_v15, %v3116_v43  ;;  %v3342_v15 = vrot.slane %v5612_v62, 2 }
  0xfa   : > { %v4402_v41 = vpop.f32.mrf.mxu0  ;;  %4617 = vmatmul.mubr.msk.bf16.gmra.mxu0 %vm452_vm2, %v2738_v25 }
  0xfb   : > { %v5570_v6 = vadd.f32 %v4420_v35, %v4402_v41  ;;  %v4424_v7 = vpop.f32.mrf.mxu1  ;;  %4639 = vmatmul.mubr.msk.bf16.gmra.mxu1 %vm452_vm2, %v2967_v27  ;;  %4620 = vmatprep.mubr.msk.bf16.mxu0 %vm452_vm2, %v2740_v30  ;;  %v5592_v35 = vld [vmem:[#allocation2 + $0x78] sm:$0xff]   ;;  %v3598_v27 = vsel %vm477_vm0, %v5514_v52, 0  ;;  %v3339_v30 = vsel %vm1310_vm5, %v3336_v18, %v3338_v37 }
  0xfc   : > { %v547_v8 = vpop.f32.mrf.mxu0  ;;  %4662 = vmatprep.mubr.msk.bf16.mxu1 %vm452_vm2, %v3333_v2  ;;  %v3340_v48 = vrot.slane %v5592_v35, 2 }
  0xfd   : > { %v5577_v13 = vadd.f32 %v663_v61, %v547_v8  ;;  %v679_v4 = vpop.f32.mrf.mxu1 }
  0xfe   : > { %v4403_v12 = vpop.f32.mrf.mxu0  ;;  %v3341_v41 = vsel %vm1310_vm5, %v3338_v37, %v3340_v48 }
  0xff   : > { %v5580_v20 = vadd.f32 %v4421_v32, %v4403_v12  ;;  %v4425_v21 = vpop.f32.mrf.mxu1 }
 0x100   : > { %v550_v49 = vpop.f32.mrf.mxu0 }
 0x101   : > { %v5587_v55 = vadd.f32 %v666_v0, %v550_v49  ;;  %v682_v53 = vpop.f32.mrf.mxu1  ;;  %v3713_v49 = vld [vmem:[#allocation2 + $0x50] sm:$0x8] }
 0x102   : > { %v4406_v59 = vpop.f32.mrf.mxu0  ;;  %4621 = vmatmul.mubr.msk.bf16.gmra.mxu0 %vm452_vm2, %v2742_v22 }
 0x103   : > { %v5595_v38 = vadd.f32 %v4424_v7, %v4406_v59  ;;  %v4448_v42 = vpop.f32.mrf.mxu1  ;;  %4663 = vmatmul.mubr.msk.bf16.vlgmr.msra.gmra.mxu1 %vm452_vm2, %v3335_v11  ;;  %4644 = vmatprep.mubr.msk.bf16.mxu0 %vm452_vm2, %v3115_v58  ;;  %v5618_v7 = vld [vmem:[#allocation2 + $0x88] sm:$0xff]   ;;  %v3121_v58 = vsel %vm1310_vm5, %v3118_v47, %v3120_v14 }
 0x104   : > { %v563_v61 = vpop.f32.mrf.mxu0  ;;  %4697 = vmatpush3.bf16.msra.mxu1 %v3760_v29  ;;  %4666 = vmatprep.mubr.msk.bf16.mxu1 %vm452_vm2, %v3337_v36 }
 0x105   : > { %v5602_v10 = vadd.f32 %v679_v4, %v563_v61  ;;  %v998_v31 = vpop.f32.mrf.mxu1  ;;  %v3122_v4 = vrot.slane %v5462_v63, 2  ;;  %v3343_v63 = vsel %vm1310_vm5, %v3340_v48, %v3342_v15  ;;  %v4217_v61 = vcombine.low %v3713_v49, %v5529_v1 }
 0x106   : > { %v4407_v32 = vpop.f32.mrf.mxu0  ;;  %v3126_v48 = vrot.slane %v5482_v23, 2 }
 0x107   : > { %v5606_v25 = vadd.f32 %v4425_v21, %v4407_v32  ;;  %v4449_v50 = vpop.f32.mrf.mxu1 }
 0x108   : > { %v566_v9 = vpop.f32.mrf.mxu0 }
 0x109   : > { %v5614_v0 = vadd.f32 %v682_v53, %v566_v9  ;;  %v1001_v2 = vpop.f32.mrf.mxu1  ;;  %v4798_v53 = vld [vmem:[#allocation2 + $0x90] ss:$0 sps:$4 sm:$0x33]   ;;  %v3497_v9 = vshll.u32 %v5540_v54, 16 }
 0x10a   : > { %v4430_v56 = vpop.f32.mrf.mxu0  ;;  %4645 = vmatmul.mubr.msk.bf16.vlgmr.msra.gmra.mxu0 %vm452_vm2, %v3117_v39 }
 0x10b   : > { %v844_v8 = vadd.f32 %v4430_v56, %v5516_v34  ;;  %4679 = vmatpush3.bf16.msra.mxu0 %v3598_v27  ;;  %v4452_v52 = vpop.f32.mrf.mxu1  ;;  %4667 = vmatmul.mubr.msk.bf16.gmra.mxu1 %vm452_vm2, %v3339_v30  ;;  %v3344_v34 = vrot.slane %v5618_v7, 2 }
 0x10c   : > { %v779_v44 = vpop.f32.mrf.mxu0  ;;  %4648 = vmatprep.mubr.msk.bf16.mxu0 %vm452_vm2, %v3119_v5  ;;  %4670 = vmatprep.mubr.msk.bf16.mxu1 %vm452_vm2, %v3341_v41  ;;  %v3718_v5 = vrot.slane %v4217_v61, 3  ;;  %v3719_v41 = vrot.slane %v5542_v33, 3  ;;  %v3520_v61 = vshrl.u32 %v5567_v45, 16 }
 0x10d   : > { %v842_v18 = vadd.f32 %v779_v44, %v5525_v17  ;;  %v1014_v12 = vpop.f32.mrf.mxu1  ;;  %v5630_v21 = vadd.f32 %v4448_v42, %v844_v8  ;;  %v3123_v17 = vsel %vm1310_vm5, %v3120_v14, %v3122_v4  ;;  %v3345_v42 = vsel %vm1310_vm5, %v3342_v15, %v3344_v34 }
 0x10e   : > { %v4431_v22 = vpop.f32.mrf.mxu0 }
 0x10f   : > { %v845_v19 = vadd.f32 %v4431_v22, %v5531_v16  ;;  %v4453_v11 = vpop.f32.mrf.mxu1  ;;  %v5634_v29 = vadd.f32 %v998_v31, %v842_v18  ;;  %v3124_v31 = vrot.slane %v5477_v28, 2  ;;  %v3502_v28 = vshrl.u32 %v5542_v33, 16 }
 0x110   : > { %v782_v36 = vpop.f32.mrf.mxu0  ;;  %v3499_v22 = vrot.slane %v3497_v9, 3 }
 0x111   : > { %v843_v59 = vadd.f32 %v782_v36, %v5536_v40  ;;  %v1017_v43 = vpop.f32.mrf.mxu1  ;;  %v5641_v37 = vadd.f32 %v4449_v50, %v845_v19  ;;  %v3346_v40 = vrot.slane %v4798_v53, 2  ;;  %v3494_v50 = vshrl.u32 %v5540_v54, 16 }
 0x112   : > { %v4434_v16 = vpop.f32.mrf.mxu0  ;;  %4649 = vmatmul.mubr.msk.bf16.gmra.mxu0 %vm452_vm2, %v3121_v58  ;;  %v3125_v56 = vsel %vm1310_vm5, %v3122_v4, %v3124_v31  ;;  %v3127_v44 = vsel %vm1310_vm5, %v3124_v31, %v3126_v48  ;;  %v3504_v49 = vrot.slane %v3502_v28, 2  ;;  %v3720_v58 = vsel %vm1920_vm8, %v3718_v5, %v3719_v41 }
 0x113   : > { %v848_v47 = vadd.f32 %v4434_v16, %v5545_v3  ;;  %v4456_v32 = vpop.f32.mrf.mxu1  ;;  %4671 = vmatmul.mubr.msk.bf16.gmra.mxu1 %vm452_vm2, %v3343_v63  ;;  %4652 = vmatprep.mubr.msk.bf16.mxu0 %vm452_vm2, %v3123_v17  ;;  %v5649_v39 = vadd.f32 %v1001_v2, %v843_v59  ;;  %v3505_v3 = vshll.u32 %v5542_v33, 16  ;;  %v3347_v54 = vsel %vm1310_vm5, %v3344_v34, %v3346_v40 }
 0x114   : > { %v795_v1 = vpop.f32.mrf.mxu0  ;;  %4674 = vmatprep.mubr.msk.bf16.mxu1 %vm452_vm2, %v3345_v42  ;;  %v3511_v34 = vshrl.u32 %v5561_v57, 16  ;;  %v3721_v63 = vrot.slane %v5561_v57, 3  ;;  %v3522_v5 = vrot.slane %v3520_v61, 2 }
 0x115   : > { %v846_v27 = vadd.f32 %v795_v1, %v5552_v46  ;;  %v1030_v30 = vpop.f32.mrf.mxu1  ;;  %v5658_v23 = vadd.f32 %v4452_v52, %v848_v47  ;;  %v3496_v46 = vrot.slane %v3494_v50, 2  ;;  %v3507_v19 = vrot.slane %v3505_v3, 3 }
 0x116   : > { %v4435_v2 = vpop.f32.mrf.mxu0  ;;  %v3723_v47 = vrot.slane %v5567_v45, 3 }
 0x117   : > { %v849_v8 = vadd.f32 %v4435_v2, %v5556_v51  ;;  %v4457_v14 = vpop.f32.mrf.mxu1  ;;  %v5664_v15 = vadd.f32 %v1014_v12, %v846_v27  ;;  %v3514_v12 = vshll.u32 %v5561_v57, 16  ;;  %v3500_v59 = vor.u32 %v3499_v22, %v3496_v46 }
 0x118   : > { %v798_v18 = vpop.f32.mrf.mxu0  ;;  %v3508_v42 = vor.u32 %v3507_v19, %v3504_v49  ;;  %v3513_v57 = vrot.slane %v3511_v34, 2  ;;  %v3722_v27 = vsel %vm1920_vm8, %v3719_v41, %v3721_v63  ;;  %v3529_v41 = vshrl.u32 %v5585_v26, 16 }
 0x119   : > { %v847_v33 = vadd.f32 %v798_v18, %v5564_v24  ;;  %v1033_v52 = vpop.f32.mrf.mxu1  ;;  %v5668_v4 = vadd.f32 %v4453_v11, %v849_v8  ;;  %v3128_v24 = vrot.slane %v5506_v60, 2  ;;  %v3725_v18 = vrot.slane %v5585_v26, 3 }
 0x11a   : > { %v4438_v51 = vpop.f32.mrf.mxu0  ;;  %4653 = vmatmul.mubr.msk.bf16.gmra.mxu0 %vm452_vm2, %v3125_v56  ;;  %v3724_v56 = vsel %vm1920_vm8, %v3721_v63, %v3723_v47  ;;  %v3541_v22 = vshll.u32 %v5592_v35, 16 }
 0x11b   : > { %v852_v53 = vadd.f32 %v4438_v51, %v5570_v6  ;;  %v4460_v36 = vpop.f32.mrf.mxu1  ;;  %4675 = vmatmul.mubr.msk.bf16.gmra.mxu1 %vm452_vm2, %v3347_v54  ;;  %4656 = vmatprep.mubr.msk.bf16.mxu0 %vm452_vm2, %v3127_v44  ;;  %v5678_v11 = vadd.f32 %v1017_v43, %v847_v33  ;;  %v3523_v6 = vshll.u32 %v5567_v45, 16  ;;  %v3516_v43 = vrot.slane %v3514_v12, 3 }
 0x11c   : > { %v811_v17 = vpop.f32.mrf.mxu0  ;;  %4698 = vmatprep.mubr.msk.bf16.mxu1 %vm452_vm2, %v3720_v58  ;;  %v3129_v9 = vsel %vm1310_vm5, %v3126_v48, %v3128_v24  ;;  %v3727_v33 = vrot.slane %v5592_v35, 3 }
 0x11d   : > { %v850_v16 = vadd.f32 %v811_v17, %v5577_v13  ;;  %v1046_v31 = vpop.f32.mrf.mxu1  ;;  %v5685_v40 = vadd.f32 %v4456_v32, %v852_v53  ;;  %v3509_v13 = vsel %vm1693_vm7, %v3500_v59, %v3508_v42  ;;  %v3525_v2 = vrot.slane %v3523_v6, 3 }
 0x11e   : > { %v4439_v60 = vpop.f32.mrf.mxu0  ;;  %v3517_v48 = vor.u32 %v3516_v43, %v3513_v57  ;;  %v3729_v43 = vrot.slane %v5612_v62, 3 }
 0x11f   : > { %v853_v1 = vadd.f32 %v4439_v60, %v5580_v20  ;;  %v4461_v50 = vpop.f32.mrf.mxu1  ;;  %v5689_v28 = vadd.f32 %v1030_v30, %v850_v16  ;;  %v3526_v46 = vor.u32 %v3525_v2, %v3522_v5 }
 0x120   : > { %v814_v3 = vpop.f32.mrf.mxu0  ;;  %v3518_v51 = vsel %vm1693_vm7, %v3508_v42, %v3517_v48  ;;  %v3728_v42 = vsel %vm1920_vm8, %v3725_v18, %v3727_v33 }
 0x121   : > { %v851_v45 = vadd.f32 %v814_v3, %v5587_v55  ;;  %v1049_v32 = vpop.f32.mrf.mxu1  ;;  %v5695_v8 = vadd.f32 %v4457_v14, %v853_v1  ;;  %v3532_v55 = vshll.u32 %v5585_v26, 16  ;;  %v3531_v26 = vrot.slane %v3529_v41, 2 }
 0x122   : > { %v4442_v20 = vpop.f32.mrf.mxu0  ;;  %4657 = vmatmul.mubr.msk.bf16.gmra.mxu0 %vm452_vm2, %v3129_v9  ;;  %v3527_v17 = vsel %vm1693_vm7, %v3517_v48, %v3526_v46  ;;  %v3559_v9 = vshll.u32 %v5618_v7, 16 }
 0x123   : > { %v856_v30 = vadd.f32 %v4442_v20, %v5595_v38  ;;  %v5699_v54 = vpop.f32.mrf.mxu1  ;;  %4699 = vmatmul.mubr.msk.bf16.vlgmr.msra.gmra.mxu1 %vm452_vm2, %v3722_v27  ;;  %4680 = vmatprep.mubr.msk.bf16.mxu0 %vm452_vm2, %v3509_v13  ;;  %v5705_v44 = vadd.f32 %v1033_v52, %v851_v45  ;;  %v3538_v38 = vshrl.u32 %v5592_v35, 16  ;;  %v3534_v53 = vrot.slane %v3532_v55, 3 }
 0x124   : > { %v827_v14 = vpop.f32.mrf.mxu0  ;;  %4702 = vmatprep.mubr.msk.bf16.mxu1 %vm452_vm2, %v3724_v56  ;;  %v3543_v35 = vrot.slane %v3541_v22, 3  ;;  %v3731_v27 = vrot.slane %v5618_v7, 3  ;;  %v4799_v56 = vld [vmem:[#allocation2 + $0x90] ss:$0 sps:$4 sm:$0x77]   ;;  %v3561_v41 = vrot.slane %v3559_v9, 3 }
 0x125   : > { %v854_v49 = vadd.f32 %v827_v14, %v5602_v10  ;;  %v5712_v19 = vpop.f32.mrf.mxu1  ;;  %v5715_v58 = vadd.f32 %v4460_v36, %v856_v30  ;;  %v3726_v10 = vsel %vm1920_vm8, %v3723_v47, %v3725_v18  ;;  %v3540_v59 = vrot.slane %v3538_v38, 2 }
 0x126   : > { %v4443_v52 = vpop.f32.mrf.mxu0  ;;  %v3547_v47 = vshrl.u32 %v5612_v62, 16  ;;  %v3565_v38 = vshrl.u32 %v4799_v56, 16  ;;  %v3568_v22 = vshll.u32 %v4799_v56, 16 }
 0x127   : > { %v857_v34 = vadd.f32 %v4443_v52, %v5606_v25  ;;  %v5719_v12 = vpop.f32.mrf.mxu1  ;;  %v5721_v24 = vadd.f32 %v1046_v31, %v854_v49  ;;  %v3535_v31 = vor.u32 %v3534_v53, %v3531_v26  ;;  %v3544_v1 = vor.u32 %v3543_v35, %v3540_v59 }
 0x128   : > { %v830_v63 = vpop.f32.mrf.mxu0  ;;  %v3549_v45 = vrot.slane %v3547_v47, 2 }
 0x129   : > { %6294 = vst [vmem:[#allocation3_spill] sm:$0xff] %v5721_v24  ;;  %v855_v36 = vadd.f32 %v830_v63, %v5614_v0  ;;  %v5726_v61 = vpop.f32.mrf.mxu1  ;;  %v5729_v25 = vadd.f32 %v4461_v50, %v857_v34  ;;  %v3550_v0 = vshll.u32 %v5612_v62, 16  ;;  %v3556_v50 = vshrl.u32 %v5618_v7, 16 }
 0x12a   : > { %v5731_v6 = vpop.f32.mrf.mxu0  ;;  %4681 = vmatmul.mubr.msk.bf16.vlgmr.msra.gmra.mxu0 %vm452_vm2, %v3518_v51  ;;  %v3536_v2 = vsel %vm1693_vm7, %v3526_v46, %v3535_v31  ;;  %v3730_v62 = vsel %vm1920_vm8, %v3727_v33, %v3729_v43  ;;  %v3545_v48 = vsel %vm1693_vm7, %v3535_v31, %v3544_v1  ;;  %v3732_v7 = vsel %vm1920_vm8, %v3729_v43, %v3731_v27 }
 0x12b   : > { %6295 = vst [vmem:[#allocation4_spill] sm:$0xff] %v5729_v25  ;;  %v5734_v16 = vpop.f32.mrf.mxu1  ;;  %4703 = vmatmul.mubr.msk.bf16.gmra.mxu1 %vm452_vm2, %v3726_v10  ;;  %4684 = vmatprep.mubr.msk.bf16.mxu0 %vm452_vm2, %v3527_v17  ;;  %v5740_v60 = vadd.f32 %v1049_v32, %v855_v36  ;;  %v3552_v32 = vrot.slane %v3550_v0, 3  ;;  %v3558_v30 = vrot.slane %v3556_v50, 2  ;;  %v3733_v33 = vrot.slane %v4799_v56, 3 }
 0x12c   : > { %v5742_v57 = vpop.f32.mrf.mxu0  ;;  %4706 = vmatprep.mubr.msk.bf16.mxu1 %vm452_vm2, %v3728_v42  ;;  %v3567_v63 = vrot.slane %v3565_v38, 2  ;;  %v3570_v10 = vrot.slane %v3568_v22, 3 }
 0x12d   : > { %6296 = vst [vmem:[#allocation5_spill] sm:$0xff] %v5740_v60  ;;  %v5748_v3 = vpop.f32.mrf.mxu1  ;;  %v3553_v46 = vor.u32 %v3552_v32, %v3549_v45  ;;  %v3562_v52 = vor.u32 %v3561_v41, %v3558_v30  ;;  %v3734_v59 = vsel %vm1920_vm8, %v3731_v27, %v3733_v33 }
 0x12e   : > { %v5751_v13 = vpop.f32.mrf.mxu0  ;;  %v3571_v47 = vor.u32 %v3570_v10, %v3567_v63 }
 0x12f   : > { %v5753_v5 = vpop.f32.mrf.mxu1  ;;  %v3554_v53 = vsel %vm1693_vm7, %v3544_v1, %v3553_v46  ;;  %v3563_v35 = vsel %vm1693_vm7, %v3553_v46, %v3562_v52 }
 0x130   : > { %v5756_v20 = vpop.f32.mrf.mxu0  ;;  %v3572_v9 = vsel %vm1693_vm7, %v3562_v52, %v3571_v47 }
 0x131   : > { %v5760_v55 = vpop.f32.mrf.mxu1 }
 0x132   : > { %v5763_v14 = vpop.f32.mrf.mxu0  ;;  %4685 = vmatmul.mubr.msk.bf16.gmra.mxu0 %vm452_vm2, %v3536_v2 }
 0x133   : > { %v5766_v18 = vpop.f32.mrf.mxu1  ;;  %4707 = vmatmul.mubr.msk.bf16.gmra.mxu1 %vm452_vm2, %v3730_v62  ;;  %4688 = vmatprep.mubr.msk.bf16.mxu0 %vm452_vm2, %v3545_v48 }
 0x134   : > { %v5770_v49 = vpop.f32.mrf.mxu0  ;;  %4710 = vmatprep.mubr.msk.bf16.mxu1 %vm452_vm2, %v3732_v7 }
 0x135   : > { %v5773_v51 = vpop.f32.mrf.mxu1 }
 0x136   : > { %v5775_v34 = vpop.f32.mrf.mxu0 }
 0x137   : > { %v5777_v26 = vpop.f32.mrf.mxu1 }
 0x138   : > { %v5780_v17 = vpop.f32.mrf.mxu0 }
 0x139   : > { %v5784_v36 = vpop.f32.mrf.mxu1 }
 0x13a   : > { %6297 = vst [vmem:[#allocation6_spill] sm:$0xff] %v5784_v36  ;;  %v5786_v42 = vpop.f32.mrf.mxu0  ;;  %4689 = vmatmul.mubr.msk.bf16.gmra.mxu0 %vm452_vm2, %v3554_v53 }
 0x13b   : > { %v5789_v31 = vpop.f32.mrf.mxu1  ;;  %4711 = vmatmul.mubr.msk.bf16.gmra.mxu1 %vm452_vm2, %v3734_v59  ;;  %4692 = vmatprep.mubr.msk.bf16.mxu0 %vm452_vm2, %v3563_v35 }
 0x13c   : > { %6298 = vst [vmem:[#allocation7_spill] sm:$0xff] %v5789_v31  ;;  %v5793_v0 = vpop.f32.mrf.mxu0 }
 0x13d   : > { %v5795_v43 = vpop.f32.mrf.mxu1 }
 0x13e   : > { %6299 = vst [vmem:[#allocation8_spill] sm:$0xff] %v5795_v43  ;;  %v5797_v1 = vpop.f32.mrf.mxu0 }
 0x13f   : > { %v5799_v50 = vpop.f32.mrf.mxu1 }
 0x140   : > { %6300 = vst [vmem:[#allocation9_spill] sm:$0xff] %v5799_v50  ;;  %v5802_v27 = vpop.f32.mrf.mxu0 }
 0x141   : > { %v5804_v2 = vpop.f32.mrf.mxu1 }
 0x142   : > { %6301 = vst [vmem:[#allocation10_spill] sm:$0xff] %v5804_v2  ;;  %v5806_v45 = vpop.f32.mrf.mxu0  ;;  %4693 = vmatmul.mubr.msk.bf16.gmra.mxu0 %vm452_vm2, %v3572_v9 }
 0x143   : > { %v4520_v32 = vpop.f32.mrf.mxu1 }
 0x144   : > { %v5809_v56 = vpop.f32.mrf.mxu0 }
 0x145   : > { %6302 = vst [vmem:[#allocation11_spill] sm:$0xff] %v5809_v56  ;;  %v1835_v62 = vpop.f32.mrf.mxu1 }
 0x146   : > { %v5811_v48 = vpop.f32.mrf.mxu0 }
 0x147   : > { %6303 = vst [vmem:[#allocation12_spill] sm:$0xff] %v5811_v48  ;;  %v5813_v30 = vpop.f32.mrf.mxu1 }
 0x148   : > { %v5815_v41 = vpop.f32.mrf.mxu0 }
 0x149   : > { %6304 = vst [vmem:[#allocation13_spill] sm:$0xff] %v5815_v41  ;;  %v5817_v7 = vpop.f32.mrf.mxu1 }
 0x14a   : > { %v4502_v46 = vpop.f32.mrf.mxu0 }
 0x14b   : > { %v5819_v38 = vpop.f32.mrf.mxu1 }
 0x14c   : > { %v1608_v22 = vpop.f32.mrf.mxu0 }
 0x14d   : > { %v5821_v33 = vpop.f32.mrf.mxu1 }
 0x14e   : > { %v4503_v52 = vpop.f32.mrf.mxu0 }
 0x14f   : > { %v5823_v53 = vpop.f32.mrf.mxu1 }
 0x150   : > { %v1611_v63 = vpop.f32.mrf.mxu0 }
 0x151   : > { %v5825_v10 = vpop.f32.mrf.mxu1 }
 0x152   : > { %v4506_v59 = vpop.f32.mrf.mxu0 }
 0x153   : > { %v5827_v35 = vpop.f32.mrf.mxu1 }
 0x154   : > { %6305 = vst [vmem:[#allocation14_spill] sm:$0xff] %v5827_v35  ;;  %v1624_v47 = vpop.f32.mrf.mxu0 }
 0x155   : > { %v5829_v9 = vpop.f32.mrf.mxu1 }
 0x156   : > { %6306 = vst [vmem:[#allocation15_spill] sm:$0xff] %v5829_v9  ;;  %v5831_v2 = vpop.f32.mrf.mxu0  ;;  %v1290_v9 = vadd.f32 %v5731_v6, %v5630_v21  ;;  %v1289_v6 = vadd.f32 %v5756_v20, %v5649_v39  ;;  %v1292_v39 = vadd.f32 %v5770_v49, %v5664_v15 }
 0x157   : > { %v5833_v50 = vpop.f32.mrf.mxu1 }
 0x158   : > { %6307 = vst [vmem:[#allocation16_spill] sm:$0xff] %v5833_v50  ;;  %v5835_v43 = vpop.f32.mrf.mxu0 }
 0x159   : > { %v5837_v41 = vpop.f32.mrf.mxu1 }
 0x15a   : > { %6308 = vst [vmem:[#allocation17_spill] sm:$0xff] %v5837_v41  ;;  %v5839_v60 = vpop.f32.mrf.mxu0  ;;  %v1288_v41 = vadd.f32 %v5742_v57, %v5634_v29 }
 0x15b   : > { %v5841_v31 = vpop.f32.mrf.mxu1 }
 0x15c   : > { %6309 = vst [vmem:[#allocation18_spill] sm:$0xff] %v5841_v31  ;;  %v5843_v48 = vpop.f32.mrf.mxu0  ;;  %v1452_v29 = vadd.f32 %v5712_v19, %v1288_v41  ;;  %v1453_v41 = vadd.f32 %v5726_v61, %v1289_v6  ;;  %v1293_v61 = vadd.f32 %v5780_v17, %v5678_v11 }
 0x15d   : > { %v5845_v25 = vpop.f32.mrf.mxu1 }
 0x15e   : > { %6310 = vst [vmem:[#allocation19_spill] sm:$0xff] %v5845_v25  ;;  %v5847_v35 = vpop.f32.mrf.mxu0  ;;  %v1291_v25 = vadd.f32 %v5751_v13, %v5641_v37  ;;  %v1671_v37 = vadd.f32 %v1608_v22, %v1452_v29  ;;  %v1672_v15 = vadd.f32 %v1611_v63, %v1453_v41  ;;  %v1298_v63 = vadd.f32 %v5786_v42, %v5685_v40 }
 0x15f   : > { %6311 = vst [vmem:[#allocation20_spill] sm:$0xff] %v5847_v35  ;;  %v5851_v36 = vpop.f32.mrf.mxu1  ;;  %v1454_v35 = vadd.f32 %v5699_v54, %v1290_v9  ;;  %v1296_v40 = vadd.f32 %v5793_v0, %v5689_v28  ;;  %v1299_v41 = vadd.f32 %v5797_v1, %v5695_v8 }
 0x160   : > { %6312 = vst [vmem:[#allocation21_spill] sm:$0xff] %v5851_v36  ;;  %v5853_v50 = vpop.f32.mrf.mxu0  ;;  %v1455_v54 = vadd.f32 %v5719_v12, %v1291_v25  ;;  %v5897_v25 = vld [vmem:[%s6292_s3] ss:$0 sm:$0xff]  ;;  %v1462_v28 = vadd.f32 %v5766_v18, %v1298_v63  ;;  %v6318_v63 = vld [vmem:[#allocation14_spill] sm:$0xff] }
 0x161   : > { %v5857_v56 = vpop.f32.mrf.mxu1  ;;  %v1673_v36 = vadd.f32 %v4502_v46, %v1454_v35  ;;  %v1460_v18 = vadd.f32 %v5773_v51, %v1296_v40 }
 0x162   : > { %6313 = vst [vmem:[#allocation22_spill] sm:$0xff] %v5857_v56  ;;  %v5859_v31 = vpop.f32.mrf.mxu0  ;;  %v1294_v56 = vadd.f32 %v5763_v14, %v5658_v23  ;;  %v1674_v19 = vadd.f32 %v4503_v52, %v1455_v54  ;;  %v1295_v14 = vadd.f32 %v5775_v34, %v5668_v4  ;;  %v1898_v52 = vadd.f32 %v1835_v62, %v1671_v37 }
 0x163   : > { %6314 = vst [vmem:[#allocation23_spill] sm:$0xff] %v5859_v31  ;;  %v5864_v24 = vpop.f32.mrf.mxu1  ;;  %v1900_v46 = vadd.f32 %v4520_v32, %v1673_v36  ;;  %v1456_v4 = vadd.f32 %v5748_v3, %v1292_v39  ;;  %v1681_v8 = vadd.f32 %v5839_v60, %v1462_v28  ;;  %v1463_v60 = vadd.f32 %v5777_v26, %v1299_v41 }
 0x164   : > { %v5867_v21 = vpop.f32.mrf.mxu0  ;;  %v1458_v12 = vadd.f32 %v5734_v16, %v1294_v56  ;;  %v1901_v56 = vadd.f32 %v5813_v30, %v1674_v19  ;;  %v1459_v6 = vadd.f32 %v5753_v5, %v1295_v14  ;;  %v1457_v5 = vadd.f32 %v5760_v55, %v1293_v61 }
 0x165   : > { %v5872_v57 = vpop.f32.mrf.mxu1  ;;  %v1675_v62 = vadd.f32 %v1624_v47, %v1456_v4  ;;  %v1302_v61 = vadd.f32 %v5806_v45, %v5715_v58  ;;  %v6317_v58 = vld [vmem:[#allocation6_spill] sm:$0xff]  ;;  %v1908_v26 = vadd.f32 %v6318_v63, %v1681_v8 }
 0x166   : > { %v5876_v31 = vpop.f32.mrf.mxu0  ;;  %v1677_v36 = vadd.f32 %v4506_v59, %v1458_v12  ;;  %v1899_v59 = vadd.f32 %v5817_v7, %v1672_v15  ;;  %v1678_v37 = vadd.f32 %v5831_v2, %v1459_v6 }
 0x167   : > { %v5882_v13 = vpop.f32.mrf.mxu1  ;;  %v1902_v0 = vadd.f32 %v5821_v33, %v1675_v62  ;;  %v6319_v62 = vld [vmem:[#allocation20_spill] sm:$0xff] }
 0x168   : > { %v5886_v20 = vpop.f32.mrf.mxu0  ;;  %v1904_v47 = vadd.f32 %v5819_v38, %v1677_v36  ;;  %v1676_v38 = vadd.f32 %v5835_v43, %v1457_v5  ;;  %v1682_v6 = vadd.f32 %v6319_v62, %v1463_v60  ;;  %v6322_v5 = vld [vmem:[#allocation7_spill] sm:$0xff] }
 0x169   : > { %v5889_v23 = vpop.f32.mrf.mxu1 }
 0x16a   : > { %v4538_v22 = vpop.f32.mrf.mxu0 }
 0x16b   : > { %v2064_v49 = vadd.f32 %v4538_v22, %v1900_v46  ;;  %v5900_v35 = vpop.f32.mrf.mxu1  ;;  %v1297_v22 = vadd.f32 %v5802_v27, %v5705_v44  ;;  %v1679_v44 = vadd.f32 %v5843_v48, %v1460_v18 }
 0x16c   : > { %v1999_v34 = vpop.f32.mrf.mxu0 }
 0x16d   : > { %v2086_v16 = vadd.f32 %v5897_v25, %v2064_v49  ;;  %v2062_v32 = vadd.f32 %v1999_v34, %v1898_v52  ;;  %v5907_v9 = vpop.f32.mrf.mxu1  ;;  %v1905_v49 = vadd.f32 %v5823_v53, %v1678_v37  ;;  %v1903_v34 = vadd.f32 %v5825_v10, %v1676_v38  ;;  %v6323_v37 = vld [vmem:[#allocation15_spill] sm:$0xff]  ;;  %v6325_v38 = vld [vmem:[#allocation13_spill] sm:$0xff] }
 0x16e   : > { %v4539_v11 = vpop.f32.mrf.mxu0  ;;  %v1461_v45 = vadd.f32 %v6317_v58, %v1297_v22  ;;  %v6327_v22 = vld [vmem:[#allocation8_spill] sm:$0xff] }
 0x16f   : > { %v2102_v3 = vmax.f32 %v2086_v16, 0.0  ;;  %v2084_v17 = vadd.f32 %v5897_v25, %v2062_v32  ;;  %v2065_v30 = vadd.f32 %v4539_v11, %v1901_v56  ;;  %v5919_v29 = vpop.f32.mrf.mxu1  ;;  %v6315_v16 = vld [vmem:[#allocation3_spill] sm:$0xff] }
 0x170   : > { %v2002_v42 = vpop.f32.mrf.mxu0  ;;  %v6316_v32 = vld [vmem:[#allocation11_spill] sm:$0xff] }
 0x171   : > { %2119 = vst.msk [vmem:[%s5915_s18 + $0x10] sm:$0xff] %vm2116_vm9, %v2102_v3  ;;  %v2100_v54 = vmax.f32 %v2084_v17, 0.0  ;;  %v2087_v39 = vadd.f32 %v5897_v25, %v2065_v30  ;;  %v2063_v19 = vadd.f32 %v2002_v42, %v1899_v59  ;;  %v5929_v7 = vpop.f32.mrf.mxu1  ;;  %v1300_v56 = vadd.f32 %v6316_v32, %v6315_v16  ;;  %v6320_v30 = vld [vmem:[#allocation4_spill] sm:$0xff] }
 0x172   : > { %v4542_v55 = vpop.f32.mrf.mxu0  ;;  %v6321_v59 = vld [vmem:[#allocation12_spill] sm:$0xff]  ;;  %v1466_v42 = vadd.f32 %v6322_v5, %v1302_v61 }
 0x173   : > { %2117 = vst.msk [vmem:[%s5915_s18] sm:$0xff] %vm2116_vm9, %v2100_v54  ;;  %v2103_v2 = vmax.f32 %v2087_v39, 0.0  ;;  %v2085_v46 = vadd.f32 %v5897_v25, %v2063_v19  ;;  %v2068_v14 = vadd.f32 %v4542_v55, %v1904_v47  ;;  %v5939_v12 = vpop.f32.mrf.mxu1  ;;  %v1303_v40 = vadd.f32 %v6321_v59, %v6320_v30 }
 0x174   : > { %v2015_v1 = vpop.f32.mrf.mxu0  ;;  %v1906_v54 = vadd.f32 %v6323_v37, %v1679_v44  ;;  %v1680_v39 = vadd.f32 %v5853_v50, %v1461_v45  ;;  %v1464_v8 = vadd.f32 %v6327_v22, %v1300_v56  ;;  %v6329_v44 = vld [vmem:[#allocation9_spill] sm:$0xff]  ;;  %v6331_v56 = vld [vmem:[#allocation10_spill] sm:$0xff] }
 0x175   : > { %2120 = vst.msk [vmem:[%s5915_s18 + $0x18] sm:$0xff] %vm2116_vm9, %v2103_v2  ;;  %v2101_v43 = vmax.f32 %v2085_v46, 0.0  ;;  %v2090_v33 = vadd.f32 %v5897_v25, %v2068_v14  ;;  %v2066_v15 = vadd.f32 %v2015_v1, %v1902_v0  ;;  %v5949_v52 = vpop.f32.mrf.mxu1  ;;  %v6324_v0 = vld [vmem:[#allocation5_spill] sm:$0xff]  ;;  %v6326_v46 = vld [vmem:[#allocation23_spill] sm:$0xff]  ;;  %v1467_v60 = vadd.f32 %v6329_v44, %v1303_v40 }
 0x176   : > { %v4543_v51 = vpop.f32.mrf.mxu0  ;;  %v1301_v2 = vadd.f32 %v6325_v38, %v6324_v0  ;;  %v1685_v14 = vadd.f32 %v6326_v46, %v1466_v42  ;;  %v1683_v61 = vadd.f32 %v5867_v21, %v1464_v8  ;;  %v6335_v46 = vld [vmem:[#allocation22_spill] sm:$0xff] }
 0x177   : > { %2118 = vst.msk [vmem:[%s5915_s18 + $0x8] sm:$0xff] %vm2116_vm9, %v2101_v43  ;;  %v2106_v27 = vmax.f32 %v2090_v33, 0.0  ;;  %v2088_v36 = vadd.f32 %v5897_v25, %v2066_v15  ;;  %v2069_v4 = vadd.f32 %v4543_v51, %v1905_v49  ;;  %v5959_v53 = vpop.f32.mrf.mxu1  ;;  %v6328_v33 = vld [vmem:[#allocation16_spill] sm:$0xff]  ;;  %v1686_v21 = vadd.f32 %v5876_v31, %v1467_v60 }
 0x178   : > { %v2018_v48 = vpop.f32.mrf.mxu0  ;;  %v1909_v15 = vadd.f32 %v6328_v33, %v1682_v6  ;;  %v1465_v58 = vadd.f32 %v6331_v56, %v1301_v2 }
 0x179   : > { %2123 = vst.msk [vmem:[%s5915_s18 + $0x30] sm:$0xff] %vm2116_vm9, %v2106_v27  ;;  %v2104_v11 = vmax.f32 %v2088_v36, 0.0  ;;  %v2091_v3 = vadd.f32 %v5897_v25, %v2069_v4  ;;  %v2067_v17 = vadd.f32 %v2018_v48, %v1903_v34  ;;  %v5969_v10 = vpop.f32.mrf.mxu1  ;;  %v6330_v34 = vld [vmem:[#allocation17_spill] sm:$0xff]  ;;  %v6332_v48 = vld [vmem:[#allocation18_spill] sm:$0xff] }
 0x17a   : > { %v4546_v47 = vpop.f32.mrf.mxu0  ;;  %v1907_v16 = vadd.f32 %v6330_v34, %v1680_v39  ;;  %v1912_v63 = vadd.f32 %v6332_v48, %v1685_v14  ;;  %v1684_v59 = vadd.f32 %v5886_v20, %v1465_v58 }
 0x17b   : > { %2121 = vst.msk [vmem:[%s5915_s18 + $0x20] sm:$0xff] %vm2116_vm9, %v2104_v11  ;;  %v2107_v19 = vmax.f32 %v2091_v3, 0.0  ;;  %v2089_v41 = vadd.f32 %v5897_v25, %v2067_v17  ;;  %v2072_v28 = vadd.f32 %v4546_v47, %v1908_v26  ;;  %v5979_v55 = vpop.f32.mrf.mxu1  ;;  %v6333_v17 = vld [vmem:[#allocation19_spill] sm:$0xff] }
 0x17c   : > { %v2031_v18 = vpop.f32.mrf.mxu0  ;;  %v1910_v30 = vadd.f32 %v6333_v17, %v1683_v61  ;;  %v1911_v14 = vadd.f32 %v6335_v46, %v1684_v59 }
 0x17d   : > { %2124 = vst.msk [vmem:[%s5915_s18 + $0x38] sm:$0xff] %vm2116_vm9, %v2107_v19  ;;  %v2105_v50 = vmax.f32 %v2089_v41, 0.0  ;;  %v2094_v1 = vadd.f32 %v5897_v25, %v2072_v28  ;;  %v2070_v43 = vadd.f32 %v2031_v18, %v1906_v54  ;;  %v5989_v49 = vpop.f32.mrf.mxu1  ;;  %v6334_v19 = vld [vmem:[#allocation21_spill] sm:$0xff] }
 0x17e   : > { %v4547_v51 = vpop.f32.mrf.mxu0  ;;  %v1913_v41 = vadd.f32 %v6334_v19, %v1686_v21 }
 0x17f   : > { %2122 = vst.msk [vmem:[%s5915_s18 + $0x28] sm:$0xff] %vm2116_vm9, %v2105_v50  ;;  %v2110_v27 = vmax.f32 %v2094_v1, 0.0  ;;  %v2092_v36 = vadd.f32 %v5897_v25, %v2070_v43  ;;  %v2073_v4 = vadd.f32 %v4547_v51, %v1909_v15  ;;  %v5997_v32 = vpop.f32.mrf.mxu1 }
 0x180   : > { %v2034_v45 = vpop.f32.mrf.mxu0 }
 0x181   : > { %2127 = vst.msk [vmem:[%s5915_s18 + $0x50] sm:$0xff] %vm2116_vm9, %v2110_v27  ;;  %v2108_v26 = vmax.f32 %v2092_v36, 0.0  ;;  %v2095_v62 = vadd.f32 %v5897_v25, %v2073_v4  ;;  %v2071_v6 = vadd.f32 %v2034_v45, %v1907_v16  ;;  %v6005_v11 = vpop.f32.mrf.mxu1 }
 0x182   : > { %v4550_v3 = vpop.f32.mrf.mxu0 }
 0x183   : > { %2125 = vst.msk [vmem:[%s5915_s18 + $0x40] sm:$0xff] %vm2116_vm9, %v2108_v26  ;;  %v2111_v40 = vmax.f32 %v2095_v62, 0.0  ;;  %v2093_v5 = vadd.f32 %v5897_v25, %v2071_v6  ;;  %v2076_v31 = vadd.f32 %v4550_v3, %v1912_v63  ;;  %v4592_v42 = vpop.f32.mrf.mxu1 }
 0x184   : > { %v2047_v47 = vpop.f32.mrf.mxu0 }
 0x185   : > { %2128 = vst.msk [vmem:[%s5915_s18 + $0x58] sm:$0xff] %vm2116_vm9, %v2111_v40  ;;  %v2109_v37 = vmax.f32 %v2093_v5, 0.0  ;;  %v2098_v54 = vadd.f32 %v5897_v25, %v2076_v31  ;;  %v2074_v39 = vadd.f32 %v2047_v47, %v1910_v30  ;;  %v2586_v28 = vpop.f32.mrf.mxu1 }
 0x186   : > { %v4551_v20 = vpop.f32.mrf.mxu0 }
 0x187   : > { %2126 = vst.msk [vmem:[%s5915_s18 + $0x48] sm:$0xff] %vm2116_vm9, %v2109_v37  ;;  %v2114_v0 = vmax.f32 %v2098_v54, 0.0  ;;  %v2096_v38 = vadd.f32 %v5897_v25, %v2074_v39  ;;  %v2077_v2 = vadd.f32 %v4551_v20, %v1913_v41  ;;  %v4593_v22 = vpop.f32.mrf.mxu1 }
 0x188   : > { %v2050_v8 = vpop.f32.mrf.mxu0 }
 0x189   : > { %2131 = vst.msk [vmem:[%s5915_s18 + $0x70] sm:$0xff] %vm2116_vm9, %v2114_v0  ;;  %v2112_v18 = vmax.f32 %v2096_v38, 0.0  ;;  %v2099_v50 = vadd.f32 %v5897_v25, %v2077_v2  ;;  %v2075_v1 = vadd.f32 %v2050_v8, %v1911_v14  ;;  %v2589_v43 = vpop.f32.mrf.mxu1 }
 0x18a   : > { %v4574_v33 = vpop.f32.mrf.mxu0 }
 0x18b   : > { %2129 = vst.msk [vmem:[%s5915_s18 + $0x60] sm:$0xff] %vm2116_vm9, %v2112_v18  ;;  %v2115_v15 = vmax.f32 %v2099_v50, 0.0  ;;  %v2097_v61 = vadd.f32 %v5897_v25, %v2075_v1  ;;  %v2449_v44 = vadd.f32 %v4574_v33, %v5864_v24  ;;  %v4596_v60 = vpop.f32.mrf.mxu1 }
 0x18c   : > { %v2440_v51 = vpop.f32.mrf.mxu0 }
 0x18d   : > { %2132 = vst.msk [vmem:[%s5915_s18 + $0x78] sm:$0xff] %vm2116_vm9, %v2115_v15  ;;  %v2113_v27 = vmax.f32 %v2097_v61, 0.0  ;;  %v2441_v36 = vadd.f32 %v2440_v51, %v5872_v57  ;;  %v2602_v4 = vpop.f32.mrf.mxu1  ;;  %v6030_v34 = vadd.f32 %v4592_v42, %v2449_v44 }
 0x18e   : > { %v4575_v16 = vpop.f32.mrf.mxu0 }
 0x18f   : > { %2130 = vst.msk [vmem:[%s5915_s18 + $0x68] sm:$0xff] %vm2116_vm9, %v2113_v27  ;;  %v2452_v56 = vadd.f32 %v4575_v16, %v5882_v13  ;;  %v4597_v58 = vpop.f32.mrf.mxu1  ;;  %v6035_v45 = vadd.f32 %v2586_v28, %v2441_v36 }
 0x190   : > { %v2443_v48 = vpop.f32.mrf.mxu0 }
 0x191   : > { %v2444_v24 = vadd.f32 %v2443_v48, %v5889_v23  ;;  %v2605_v63 = vpop.f32.mrf.mxu1  ;;  %v6038_v21 = vadd.f32 %v4593_v22, %v2452_v56 }
 0x192   : > { %v4578_v26 = vpop.f32.mrf.mxu0 }
 0x193   : > { %v2465_v57 = vadd.f32 %v4578_v26, %v5900_v35  ;;  %v4600_v62 = vpop.f32.mrf.mxu1  ;;  %v6041_v6 = vadd.f32 %v2589_v43, %v2444_v24 }
 0x194   : > { %v2456_v3 = vpop.f32.mrf.mxu0 }
 0x195   : > { %v2457_v17 = vadd.f32 %v2456_v3, %v5907_v9  ;;  %v2618_v30 = vpop.f32.mrf.mxu1  ;;  %v6044_v13 = vadd.f32 %v4596_v60, %v2465_v57 }
 0x196   : > { %v4579_v59 = vpop.f32.mrf.mxu0 }
 0x197   : > { %v2468_v40 = vadd.f32 %v4579_v59, %v5919_v29  ;;  %v4601_v5 = vpop.f32.mrf.mxu1  ;;  %v6047_v23 = vadd.f32 %v2602_v4, %v2457_v17 }
 0x198   : > { %v2459_v31 = vpop.f32.mrf.mxu0 }
 0x199   : > { %v2460_v42 = vadd.f32 %v2459_v31, %v5929_v7  ;;  %v2621_v47 = vpop.f32.mrf.mxu1  ;;  %v6050_v35 = vadd.f32 %v4597_v58, %v2468_v40 }
 0x19a   : > { %v4582_v37 = vpop.f32.mrf.mxu0 }
 0x19b   : > { %v2481_v54 = vadd.f32 %v4582_v37, %v5939_v12  ;;  %v4604_v39 = vpop.f32.mrf.mxu1  ;;  %v6053_v9 = vadd.f32 %v2605_v63, %v2460_v42 }
 0x19c   : > { %v2472_v19 = vpop.f32.mrf.mxu0 }
 0x19d   : > { %v2473_v41 = vadd.f32 %v2472_v19, %v5949_v52  ;;  %v2634_v28 = vpop.f32.mrf.mxu1  ;;  %v6056_v29 = vadd.f32 %v4600_v62, %v2481_v54 }
 0x19e   : > { %v4583_v20 = vpop.f32.mrf.mxu0 }
 0x19f   : > { %v2484_v0 = vadd.f32 %v4583_v20, %v5959_v53  ;;  %v4605_v38 = vpop.f32.mrf.mxu1  ;;  %v6059_v7 = vadd.f32 %v2618_v30, %v2473_v41 }
 0x1a0   : > { %v2475_v2 = vpop.f32.mrf.mxu0 }
 0x1a1   : > { %v2476_v46 = vadd.f32 %v2475_v2, %v5969_v10  ;;  %v2637_v14 = vpop.f32.mrf.mxu1  ;;  %v6062_v12 = vadd.f32 %v4601_v5, %v2484_v0 }
 0x1a2   : > { %v4586_v22 = vpop.f32.mrf.mxu0 }
 0x1a3   : > { %v2497_v8 = vadd.f32 %v4586_v22, %v5979_v55  ;;  %v6065_v18 = vpop.f32.mrf.mxu1  ;;  %v6067_v52 = vadd.f32 %v2621_v47, %v2476_v46 }
 0x1a4   : > { %v2488_v50 = vpop.f32.mrf.mxu0 }
 0x1a5   : > { %v2489_v1 = vadd.f32 %v2488_v50, %v5989_v49  ;;  %v6070_v53 = vpop.f32.mrf.mxu1  ;;  %v6072_v43 = vadd.f32 %v4604_v39, %v2497_v8 }
 0x1a6   : > { %v4587_v33 = vpop.f32.mrf.mxu0 }
 0x1a7   : > { %v2500_v10 = vadd.f32 %v4587_v33, %v5997_v32  ;;  %v6075_v15 = vpop.f32.mrf.mxu1  ;;  %v6077_v61 = vadd.f32 %v2634_v28, %v2489_v1 }
 0x1a8   : > { %v2491_v44 = vpop.f32.mrf.mxu0 }
 0x1a9   : > { %6336 = vst [vmem:[#allocation3_spill] sm:$0xff] %v6077_v61  ;;  %v2492_v55 = vadd.f32 %v2491_v44, %v6005_v11  ;;  %v6080_v60 = vpop.f32.mrf.mxu1  ;;  %v6082_v51 = vadd.f32 %v4605_v38, %v2500_v10 }
 0x1aa   : > { %v4610_v27 = vpop.f32.mrf.mxu0 }
 0x1ab   : > { %6337 = vst [vmem:[#allocation11_spill] sm:$0xff] %v6082_v51  ;;  %v6084_v49 = vpop.f32.mrf.mxu1  ;;  %v6086_v36 = vadd.f32 %v2637_v14, %v2492_v55 }
 0x1ac   : > { %v2804_v4 = vpop.f32.mrf.mxu0 }
 0x1ad   : > { %6338 = vst [vmem:[#allocation6_spill] sm:$0xff] %v6086_v36  ;;  %v6088_v16 = vpop.f32.mrf.mxu1 }
 0x1ae   : > { %v4611_v32 = vpop.f32.mrf.mxu0 }
 0x1af   : > { %v6090_v56 = vpop.f32.mrf.mxu1 }
 0x1b0   : > { %v2807_v58 = vpop.f32.mrf.mxu0 }
 0x1b1   : > { %v6092_v48 = vpop.f32.mrf.mxu1 }
 0x1b2   : > { %v4614_v24 = vpop.f32.mrf.mxu0 }
 0x1b3   : > { %v6094_v11 = vpop.f32.mrf.mxu1 }
 0x1b4   : > { %v2820_v63 = vpop.f32.mrf.mxu0 }
 0x1b5   : > { %v6096_v26 = vpop.f32.mrf.mxu1 }
 0x1b6   : > { %v6098_v57 = vpop.f32.mrf.mxu0 }
 0x1b7   : > { %v6100_v62 = vpop.f32.mrf.mxu1 }
 0x1b8   : > { %6339 = vst [vmem:[#allocation14_spill] sm:$0xff] %v6100_v62  ;;  %v6102_v3 = vpop.f32.mrf.mxu0 }
 0x1b9   : > { %v6104_v17 = vpop.f32.mrf.mxu1 }
 0x1ba   : > { %6340 = vst [vmem:[#allocation20_spill] sm:$0xff] %v6104_v17  ;;  %v6106_v30 = vpop.f32.mrf.mxu0 }
 0x1bb   : > { %v6108_v59 = vpop.f32.mrf.mxu1 }
 0x1bc   : > { %6341 = vst [vmem:[#allocation4_spill] sm:$0xff] %v6108_v59  ;;  %v6110_v40 = vpop.f32.mrf.mxu0 }
 0x1bd   : > { %v6112_v5 = vpop.f32.mrf.mxu1 }
 0x1be   : > { %6342 = vst [vmem:[#allocation12_spill] sm:$0xff] %v6112_v5  ;;  %v6114_v31 = vpop.f32.mrf.mxu0 }
 0x1bf   : > { %v6116_v42 = vpop.f32.mrf.mxu1 }
 0x1c0   : > { %6343 = vst [vmem:[#allocation7_spill] sm:$0xff] %v6116_v42  ;;  %v6118_v47 = vpop.f32.mrf.mxu0 }
 0x1c1   : > { %v6120_v37 = vpop.f32.mrf.mxu1 }
 0x1c2   : > { %6344 = vst [vmem:[#allocation15_spill] sm:$0xff] %v6120_v37  ;;  %v6122_v54 = vpop.f32.mrf.mxu0 }
 0x1c3   : > { %v4664_v39 = vpop.f32.mrf.mxu1 }
 0x1c4   : > { %v6124_v19 = vpop.f32.mrf.mxu0 }
 0x1c5   : > { %6345 = vst [vmem:[#allocation5_spill] sm:$0xff] %v6124_v19  ;;  %v3409_v41 = vpop.f32.mrf.mxu1 }
 0x1c6   : > { %v6126_v28 = vpop.f32.mrf.mxu0 }
 0x1c7   : > { %6346 = vst [vmem:[#allocation13_spill] sm:$0xff] %v6126_v28  ;;  %v4665_v20 = vpop.f32.mrf.mxu1 }
 0x1c8   : > { %v6128_v0 = vpop.f32.mrf.mxu0 }
 0x1c9   : > { %6347 = vst [vmem:[#allocation23_spill] sm:$0xff] %v6128_v0  ;;  %v6130_v38 = vpop.f32.mrf.mxu1 }
 0x1ca   : > { %v4646_v2 = vpop.f32.mrf.mxu0 }
 0x1cb   : > { %v6132_v46 = vpop.f32.mrf.mxu1 }
 0x1cc   : > { %v3191_v14 = vpop.f32.mrf.mxu0 }
 0x1cd   : > { %v6134_v22 = vpop.f32.mrf.mxu1 }
 0x1ce   : > { %v4647_v8 = vpop.f32.mrf.mxu0 }
 0x1cf   : > { %v6136_v50 = vpop.f32.mrf.mxu1 }
 0x1d0   : > { %v3194_v1 = vpop.f32.mrf.mxu0 }
 0x1d1   : > { %v6138_v33 = vpop.f32.mrf.mxu1 }
 0x1d2   : > { %6348 = vst [vmem:[#allocation8_spill] sm:$0xff] %v6138_v33  ;;  %v4650_v10 = vpop.f32.mrf.mxu0 }
 0x1d3   : > { %v6140_v44 = vpop.f32.mrf.mxu1 }
 0x1d4   : > { %6349 = vst [vmem:[#allocation16_spill] sm:$0xff] %v6140_v44  ;;  %v3207_v55 = vpop.f32.mrf.mxu0  ;;  %v2869_v44 = vadd.f32 %v4610_v27, %v6030_v34 }
 0x1d5   : > { %v6142_v37 = vpop.f32.mrf.mxu1 }
 0x1d6   : > { %6350 = vst [vmem:[#allocation9_spill] sm:$0xff] %v6142_v37  ;;  %v4651_v42 = vpop.f32.mrf.mxu0  ;;  %v3094_v62 = vadd.f32 %v6065_v18, %v2869_v44 }
 0x1d7   : > { %v6144_v5 = vpop.f32.mrf.mxu1 }
 0x1d8   : > { %6351 = vst [vmem:[#allocation17_spill] sm:$0xff] %v6144_v5  ;;  %v6146_v0 = vpop.f32.mrf.mxu0  ;;  %v2867_v5 = vadd.f32 %v2804_v4, %v6035_v45  ;;  %v3256_v34 = vadd.f32 %v4646_v2, %v3094_v62 }
 0x1d9   : > { %v6148_v36 = vpop.f32.mrf.mxu1 }
 0x1da   : > { %6352 = vst [vmem:[#allocation10_spill] sm:$0xff] %v6148_v36  ;;  %v6150_v59 = vpop.f32.mrf.mxu0  ;;  %v3092_v27 = vadd.f32 %v6070_v53, %v2867_v5  ;;  %v2874_v53 = vadd.f32 %v6098_v57, %v6050_v35  ;;  %v2877_v35 = vadd.f32 %v6106_v30, %v6056_v29 }
 0x1db   : > { %v6152_v28 = vpop.f32.mrf.mxu1 }
 0x1dc   : > { %6353 = vst [vmem:[#allocation18_spill] sm:$0xff] %v6152_v28  ;;  %v6154_v51 = vpop.f32.mrf.mxu0  ;;  %v2870_v28 = vadd.f32 %v4611_v32, %v6038_v21  ;;  %v3254_v4 = vadd.f32 %v3191_v14, %v3092_v27  ;;  %v2871_v21 = vadd.f32 %v2820_v63, %v6047_v23  ;;  %v2872_v23 = vadd.f32 %v6102_v3, %v6053_v9 }
 0x1dd   : > { %6354 = vst [vmem:[#allocation19_spill] sm:$0xff] %v6154_v51  ;;  %v6156_v17 = vpop.f32.mrf.mxu1 }
 0x1de   : > { %6355 = vst [vmem:[#allocation21_spill] sm:$0xff] %v6156_v17  ;;  %v6158_v19 = vpop.f32.mrf.mxu0  ;;  %v3472_v2 = vadd.f32 %v3409_v41, %v3254_v4 }
 0x1df   : > { %6356 = vst [vmem:[#allocation22_spill] sm:$0xff] %v6158_v19  ;;  %v6161_v37 = vpop.f32.mrf.mxu1  ;;  %v2868_v19 = vadd.f32 %v2807_v58, %v6041_v6  ;;  %v3474_v6 = vadd.f32 %v4664_v39, %v3256_v34 }
 0x1e0   : > { %6357 = vst [vmem:[#allocation24_spill] sm:$0xff] %v6161_v37  ;;  %v6163_v61 = vpop.f32.mrf.mxu0 }
 0x1e1   : > { %6358 = vst [vmem:[#allocation25_spill] sm:$0xff] %v6163_v61  ;;  %v6166_v33 = vpop.f32.mrf.mxu1  ;;  %v2873_v61 = vadd.f32 %v4614_v24, %v6044_v13  ;;  %v3093_v44 = vadd.f32 %v6080_v60, %v2868_v19 }
 0x1e2   : > { %6359 = vst [vmem:[#allocation26_spill] sm:$0xff] %v6166_v33  ;;  %v6168_v36 = vpop.f32.mrf.mxu0  ;;  %v3095_v33 = vadd.f32 %v6075_v15, %v2870_v28  ;;  %v3096_v28 = vadd.f32 %v6088_v16, %v2871_v21 }
 0x1e3   : > { %6360 = vst [vmem:[#allocation27_spill] sm:$0xff] %v6168_v36  ;;  %v4700_v51 = vpop.f32.mrf.mxu1  ;;  %v3098_v13 = vadd.f32 %v6084_v49, %v2873_v61  ;;  %v3255_v62 = vadd.f32 %v3194_v1, %v3093_v44  ;;  %v3099_v49 = vadd.f32 %v6090_v56, %v2874_v53 }
 0x1e4   : > { %v6172_v17 = vpop.f32.mrf.mxu0  ;;  %v3257_v32 = vadd.f32 %v4647_v8, %v3095_v33  ;;  %v3258_v61 = vadd.f32 %v3207_v55, %v3096_v28  ;;  %v6364_v28 = vld [vmem:[#allocation3_spill] sm:$0xff] }
 0x1e5   : > { %v3796_v37 = vpop.f32.mrf.mxu1  ;;  %v3260_v63 = vadd.f32 %v4650_v10, %v3098_v13  ;;  %v3473_v9 = vadd.f32 %v6130_v38, %v3255_v62  ;;  %v3261_v16 = vadd.f32 %v4651_v42, %v3099_v49  ;;  %v2878_v38 = vadd.f32 %v6114_v31, %v6062_v12  ;;  %v6363_v62 = vld [vmem:[#allocation8_spill] sm:$0xff] }
 0x1e6   : > { %v6177_v45 = vpop.f32.mrf.mxu0  ;;  %v3475_v19 = vadd.f32 %v4665_v20, %v3257_v32  ;;  %v3097_v20 = vadd.f32 %v6092_v48, %v2872_v23  ;;  %v3476_v48 = vadd.f32 %v6134_v22, %v3258_v61  ;;  %v2876_v32 = vadd.f32 %v6118_v47, %v6067_v52  ;;  %v6361_v52 = vld [vmem:[#allocation19_spill] sm:$0xff]  ;;  %v6368_v61 = vld [vmem:[#allocation16_spill] sm:$0xff] }
 0x1e7   : > { %v4701_v36 = vpop.f32.mrf.mxu1  ;;  %v3478_v29 = vadd.f32 %v6132_v46, %v3260_v63  ;;  %v2881_v13 = vadd.f32 %v6122_v54, %v6072_v43  ;;  %v6366_v43 = vld [vmem:[#allocation22_spill] sm:$0xff] }
 0x1e8   : > { %v6181_v18 = vpop.f32.mrf.mxu0  ;;  %v3259_v27 = vadd.f32 %v6146_v0, %v3097_v20  ;;  %v3479_v0 = vadd.f32 %v6136_v50, %v3261_v16  ;;  %v6371_v16 = vld [vmem:[#allocation25_spill] sm:$0xff] }
 0x1e9   : > { %v3799_v58 = vpop.f32.mrf.mxu1 }
 0x1ea   : > { %v4682_v24 = vpop.f32.mrf.mxu0 }
 0x1eb   : > { %v3699_v5 = vadd.f32 %v4682_v24, %v3474_v6  ;;  %v4704_v15 = vpop.f32.mrf.mxu1 }
 0x1ec   : > { %v3634_v14 = vpop.f32.mrf.mxu0 }
 0x1ed   : > { %v3861_v60 = vadd.f32 %v4700_v51, %v3699_v5  ;;  %v3697_v39 = vadd.f32 %v3634_v14, %v3472_v2  ;;  %v3812_v8 = vpop.f32.mrf.mxu1  ;;  %v2875_v51 = vadd.f32 %v6110_v40, %v6059_v7  ;;  %v3102_v7 = vadd.f32 %v6094_v11, %v2877_v35  ;;  %v6365_v14 = vld [vmem:[#allocation5_spill] sm:$0xff] }
 0x1ee   : > { %v4683_v57 = vpop.f32.mrf.mxu0  ;;  %v3477_v5 = vadd.f32 %v6363_v62, %v3259_v27 }
 0x1ef   : > { %v3877_v41 = vadd.f32 %v5897_v25, %v3861_v60  ;;  %v3859_v1 = vadd.f32 %v3796_v37, %v3697_v39  ;;  %v3700_v33 = vadd.f32 %v4683_v57, %v3475_v19  ;;  %v4705_v3 = vpop.f32.mrf.mxu1  ;;  %v3264_v12 = vadd.f32 %v6150_v59, %v3102_v7  ;;  %v6362_v59 = vld [vmem:[#allocation14_spill] sm:$0xff]  ;;  %v6367_v39 = vld [vmem:[#allocation20_spill] sm:$0xff] }
 0x1f0   : > { %v3637_v10 = vpop.f32.mrf.mxu0  ;;  %v3100_v31 = vadd.f32 %v6096_v26, %v2875_v51  ;;  %v3103_v24 = vadd.f32 %v6362_v59, %v2878_v38  ;;  %v2879_v60 = vadd.f32 %v6365_v14, %v6364_v28  ;;  %v3101_v19 = vadd.f32 %v6367_v39, %v2876_v32  ;;  %v6380_v59 = vld [vmem:[#allocation10_spill] sm:$0xff] }
 0x1f1   : > { %v3893_v30 = vmax.f32 %v3877_v41, 0.0  ;;  %v3875_v56 = vadd.f32 %v5897_v25, %v3859_v1  ;;  %v3862_v55 = vadd.f32 %v4701_v36, %v3700_v33  ;;  %v3698_v34 = vadd.f32 %v3637_v10, %v3473_v9  ;;  %v3815_v37 = vpop.f32.mrf.mxu1  ;;  %v6369_v33 = vld [vmem:[#allocation11_spill] sm:$0xff]  ;;  %v6370_v9 = vld [vmem:[#allocation13_spill] sm:$0xff]  ;;  %v6372_v10 = vld [vmem:[#allocation4_spill] sm:$0xff] }
 0x1f2   : > { %v4686_v40 = vpop.f32.mrf.mxu0  ;;  %v3262_v47 = vadd.f32 %v6361_v52, %v3100_v31  ;;  %v3265_v54 = vadd.f32 %v6366_v43, %v3103_v24  ;;  %v3482_v49 = vadd.f32 %v6368_v61, %v3264_v12  ;;  %v2882_v51 = vadd.f32 %v6370_v9, %v6369_v33  ;;  %v6378_v31 = vld [vmem:[#allocation17_spill] sm:$0xff] }
 0x1f3   : > { %3909 = vst.msk [vmem:[%s5915_s18 + $0x90] sm:$0xff] %vm2116_vm9, %v3893_v30  ;;  %v3891_v42 = vmax.f32 %v3875_v56, 0.0  ;;  %v3878_v46 = vadd.f32 %v5897_v25, %v3862_v55  ;;  %v3860_v4 = vadd.f32 %v3799_v58, %v3698_v34  ;;  %v3703_v36 = vadd.f32 %v4686_v40, %v3478_v29  ;;  %v4708_v21 = vpop.f32.mrf.mxu1  ;;  %v6373_v56 = vld [vmem:[#allocation9_spill] sm:$0xff]  ;;  %v6374_v40 = vld [vmem:[#allocation6_spill] sm:$0xff] }
 0x1f4   : > { %v3650_v11 = vpop.f32.mrf.mxu0  ;;  %v3263_v20 = vadd.f32 %v6371_v16, %v3101_v19  ;;  %v3106_v29 = vadd.f32 %v6372_v10, %v2881_v13  ;;  %v3480_v55 = vadd.f32 %v6373_v56, %v3262_v47  ;;  %v6385_v10 = vld [vmem:[#allocation26_spill] sm:$0xff] }
 0x1f5   : > { %3907 = vst.msk [vmem:[%s5915_s18 + $0x80] sm:$0xff] %vm2116_vm9, %v3891_v42  ;;  %v3894_v22 = vmax.f32 %v3878_v46, 0.0  ;;  %v3876_v44 = vadd.f32 %v5897_v25, %v3860_v4  ;;  %v3865_v6 = vadd.f32 %v4704_v15, %v3703_v36  ;;  %v3701_v58 = vadd.f32 %v3650_v11, %v3476_v48  ;;  %v3828_v53 = vpop.f32.mrf.mxu1  ;;  %v6375_v48 = vld [vmem:[#allocation23_spill] sm:$0xff]  ;;  %v6377_v36 = vld [vmem:[#allocation12_spill] sm:$0xff] }
 0x1f6   : > { %v4687_v26 = vpop.f32.mrf.mxu0  ;;  %v2880_v42 = vadd.f32 %v6375_v48, %v6374_v40  ;;  %v6376_v46 = vld [vmem:[#allocation27_spill] sm:$0xff]  ;;  %v3104_v32 = vadd.f32 %v6377_v36, %v2879_v60  ;;  %v3483_v11 = vadd.f32 %v6378_v31, %v3265_v54  ;;  %v3481_v24 = vadd.f32 %v6380_v59, %v3263_v20 }
 0x1f7   : > { %3910 = vst.msk [vmem:[%s5915_s18 + $0x98] sm:$0xff] %vm2116_vm9, %v3894_v22  ;;  %v3892_v50 = vmax.f32 %v3876_v44, 0.0  ;;  %v3881_v2 = vadd.f32 %v5897_v25, %v3865_v6  ;;  %v3863_v23 = vadd.f32 %v3812_v8, %v3701_v58  ;;  %v3704_v15 = vadd.f32 %v4687_v26, %v3479_v0  ;;  %v4709_v63 = vpop.f32.mrf.mxu1  ;;  %v6379_v58 = vld [vmem:[#allocation7_spill] sm:$0xff] }
 0x1f8   : > { %v3653_v35 = vpop.f32.mrf.mxu0  ;;  %v3268_v4 = vadd.f32 %v6376_v46, %v3106_v29  ;;  %v3266_v6 = vadd.f32 %v6172_v17, %v3104_v32  ;;  %v3107_v13 = vadd.f32 %v6379_v58, %v2882_v51  ;;  %v6382_v17 = vld [vmem:[#allocation18_spill] sm:$0xff] }
 0x1f9   : > { %3908 = vst.msk [vmem:[%s5915_s18 + $0x88] sm:$0xff] %vm2116_vm9, %v3892_v50  ;;  %v3897_v57 = vmax.f32 %v3881_v2, 0.0  ;;  %v3879_v41 = vadd.f32 %v5897_v25, %v3863_v23  ;;  %v3866_v1 = vadd.f32 %v4705_v3, %v3704_v15  ;;  %v3702_v8 = vadd.f32 %v3653_v35, %v3477_v5  ;;  %v3831_v34 = vpop.f32.mrf.mxu1  ;;  %v6381_v2 = vld [vmem:[#allocation15_spill] sm:$0xff]  ;;  %v6383_v35 = vld [vmem:[#allocation21_spill] sm:$0xff] }
 0x1fa   : > { %v4690_v30 = vpop.f32.mrf.mxu0  ;;  %v3105_v23 = vadd.f32 %v6381_v2, %v2880_v42  ;;  %v3486_v28 = vadd.f32 %v6382_v17, %v3268_v4  ;;  %v3484_v61 = vadd.f32 %v6383_v35, %v3266_v6 }
 0x1fb   : > { %3913 = vst.msk [vmem:[%s5915_s18 + $0xb0] sm:$0xff] %vm2116_vm9, %v3897_v57  ;;  %v3895_v38 = vmax.f32 %v3879_v41, 0.0  ;;  %v3882_v27 = vadd.f32 %v5897_v25, %v3866_v1  ;;  %v3864_v7 = vadd.f32 %v3815_v37, %v3702_v8  ;;  %v3707_v3 = vadd.f32 %v4690_v30, %v3482_v49  ;;  %v4712_v47 = vpop.f32.mrf.mxu1  ;;  %v6384_v8 = vld [vmem:[#allocation24_spill] sm:$0xff] }
 0x1fc   : > { %v3666_v12 = vpop.f32.mrf.mxu0  ;;  %v3267_v39 = vadd.f32 %v6181_v18, %v3105_v23 }
 0x1fd   : > { %3911 = vst.msk [vmem:[%s5915_s18 + $0xa0] sm:$0xff] %vm2116_vm9, %v3895_v38  ;;  %v3898_v0 = vmax.f32 %v3882_v27, 0.0  ;;  %v3880_v22 = vadd.f32 %v5897_v25, %v3864_v7  ;;  %v3869_v44 = vadd.f32 %v4708_v21, %v3707_v3  ;;  %v3705_v37 = vadd.f32 %v3666_v12, %v3480_v55  ;;  %v3844_v19 = vpop.f32.mrf.mxu1 }
 0x1fe   : > { %v4691_v52 = vpop.f32.mrf.mxu0  ;;  %v3269_v21 = vadd.f32 %v6177_v45, %v3107_v13  ;;  %v3485_v29 = vadd.f32 %v6385_v10, %v3267_v39 }
 0x1ff   : > { %3914 = vst.msk [vmem:[%s5915_s18 + $0xb8] sm:$0xff] %vm2116_vm9, %v3898_v0  ;;  %v3896_v26 = vmax.f32 %v3880_v22, 0.0  ;;  %v3885_v62 = vadd.f32 %v5897_v25, %v3869_v44  ;;  %v3867_v5 = vadd.f32 %v3828_v53, %v3705_v37  ;;  %v3708_v50 = vadd.f32 %v4691_v52, %v3483_v11  ;;  %v4713_v16 = vpop.f32.mrf.mxu1 }
 0x200   : > { %v3669_v15 = vpop.f32.mrf.mxu0  ;;  %v3487_v33 = vadd.f32 %v6384_v8, %v3269_v21 }
 0x201   : > { %3912 = vst.msk [vmem:[%s5915_s18 + $0xa8] sm:$0xff] %vm2116_vm9, %v3896_v26  ;;  %v3901_v14 = vmax.f32 %v3885_v62, 0.0  ;;  %v3883_v60 = vadd.f32 %v5897_v25, %v3867_v5  ;;  %v3870_v43 = vadd.f32 %v4709_v63, %v3708_v50  ;;  %v3706_v54 = vadd.f32 %v3669_v15, %v3481_v24  ;;  %v3847_v48 = vpop.f32.mrf.mxu1 }
 0x202   : > { %v4694_v53 = vpop.f32.mrf.mxu0 }
 0x203   : > { %3917 = vst.msk [vmem:[%s5915_s18 + $0xd0] sm:$0xff] %vm2116_vm9, %v3901_v14  ;;  %v3899_v45 = vmax.f32 %v3883_v60, 0.0  ;;  %v3886_v49 = vadd.f32 %v5897_v25, %v3870_v43  ;;  %v3868_v57 = vadd.f32 %v3831_v34, %v3706_v54  ;;  %v3711_v41 = vadd.f32 %v4694_v53, %v3486_v28 }
 0x204   : > { %v3682_v1 = vpop.f32.mrf.mxu0 }
 0x205   : > { %3915 = vst.msk [vmem:[%s5915_s18 + $0xc0] sm:$0xff] %vm2116_vm9, %v3899_v45  ;;  %v3902_v63 = vmax.f32 %v3886_v49, 0.0  ;;  %v3884_v18 = vadd.f32 %v5897_v25, %v3868_v57  ;;  %v3873_v9 = vadd.f32 %v4712_v47, %v3711_v41  ;;  %v3709_v51 = vadd.f32 %v3682_v1, %v3484_v61 }
 0x206   : > { %v4695_v20 = vpop.f32.mrf.mxu0 }
 0x207   : > { %3918 = vst.msk [vmem:[%s5915_s18 + $0xd8] sm:$0xff] %vm2116_vm9, %v3902_v63  ;;  %v3900_v30 = vmax.f32 %v3884_v18, 0.0  ;;  %v3889_v56 = vadd.f32 %v5897_v25, %v3873_v9  ;;  %v3871_v55 = vadd.f32 %v3844_v19, %v3709_v51  ;;  %v3712_v34 = vadd.f32 %v4695_v20, %v3487_v33 }
 0x208   : > { %v3685_v38 = vpop.f32.mrf.mxu0 }
 0x209   : > { %3916 = vst.msk [vmem:[%s5915_s18 + $0xc8] sm:$0xff] %vm2116_vm9, %v3900_v30  ;;  %v3905_v27 = vmax.f32 %v3889_v56, 0.0  ;;  %v3887_v7 = vadd.f32 %v5897_v25, %v3871_v55  ;;  %v3874_v3 = vadd.f32 %v4713_v16, %v3712_v34  ;;  %v3710_v40 = vadd.f32 %v3685_v38, %v3485_v29 }
 0x20b   : > { %3921 = vst.msk [vmem:[%s5915_s18 + $0xf0] sm:$0xff] %vm2116_vm9, %v3905_v27  ;;  %v3903_v42 = vmax.f32 %v3887_v7, 0.0  ;;  %v3890_v46 = vadd.f32 %v5897_v25, %v3874_v3  ;;  %v3872_v4 = vadd.f32 %v3847_v48, %v3710_v40 }
 0x20d   : > { %3919 = vst.msk [vmem:[%s5915_s18 + $0xe0] sm:$0xff] %vm2116_vm9, %v3903_v42  ;;  %v3906_v36 = vmax.f32 %v3890_v46, 0.0  ;;  %v3888_v32 = vadd.f32 %v5897_v25, %v3872_v4 }
 0x20f   : > { %3922 = vst.msk [vmem:[%s5915_s18 + $0xf8] sm:$0xff] %vm2116_vm9, %v3906_v36  ;;  %v3904_v12 = vmax.f32 %v3888_v32, 0.0 }
 0x211   : > { %3920 = vst.msk [vmem:[%s5915_s18 + $0xe8] sm:$0xff] %vm2116_vm9, %v3904_v12 }
 0x212 PF: > { %s14_s15 = sadd.s32 1, %s4806_s15  }
 0x213   : > { %p11_p6 = scmp.ge.s32.totalorder %s14_s15, 5  }
 0x215   :  { %13 = sbr.rel (!%p11_p6) target bundleno = 1 (0x1), region = 77 }

// kernel: tpu_custom_call.1
= control target key start
LH: loop header
LB: loop body
LE: loop exit
PB: predicated region body
PF: predicated region fallthrough
CT: control target
= control target key end

     0   :  { %9 = vsyncpa [#allocation4], 0  ;;  %s6443_s0 = inlined_call_operand.vmem [shape: bf16[816,4], index: 0, kind: input, shape index: {}]   ;;  %s6444_s1 = inlined_call_operand.vmem [shape: bf16[3,48,4], index: 1, kind: input, shape index: {}]   ;;  %s6445_s2 = inlined_call_operand.vmem [shape: bf16[9,4,128], index: 2, kind: input, shape index: {}]   ;;  %s6446_s3 = inlined_call_operand.vmem [shape: f32[1,128], index: 3, kind: input, shape index: {}]   ;;  %s6447_s4 = inlined_call_operand.hbm [shape: f32[768,128], index: 4, kind: output, shape index: {}]  }
   0x1   :  { %11 = vsyncpa [#allocation4 + $0x1], 0  ;;  %s4942_s15 = smov 0   ;;  %s4944_s16 = smov 0  }
   0x2   :  { %s4946_s17 = smov 0   ;;  %s4948_s18 = smov 0  }
   0x3 LB: > { %s4963_s19 = sadd.s32 4294967295, %s4912_s18   ;;  %s4008_s20 = sadd.s32 4294967294, %s4912_s18   ;;  %s4912_s18 = sphi %s4948_s18, %s6545_s18   ;;  %s4908_s17 = sphi %s4946_s17, %s6544_s17   ;;  %s4904_s16 = sphi %s4944_s16, %s6543_s16   ;;  %s4900_s15 = sphi %s4942_s15, %s6542_s15  }
   0x4   : > { %s4967_s21 = sadd.s32 1, %s4912_s18   ;;  %s118_s22 = sadd.s32 1, %s4908_s17 }
   0x5   : > { %s115_s23 = ssub.s32 %s4912_s18, %s4967_s21  ;;  %p128_p0 = scmp.ne.s32.totalorder %s4908_s17, %s4904_s16 }
   0x6   : > { %p116_p1 = scmp.eq.s32.totalorder %s115_s23, 0  ;;  %p129_p2 = scmp.eq.s32.totalorder %s4963_s19, 2 }
   0x7   : > { %p134_p3 = scmp.ne.s32.totalorder %s4904_s16, %s4900_s15  ;;  %p135_p4 = scmp.eq.s32.totalorder %s4008_s20, 2 }
   0x8   : > { %s4978_s24 = scalar_select %p116_p1, %s4908_s17, %s118_s22  }
   0x9   : > { %p4980_p5 = por %p129_p2, %p128_p0  ;;  %p4984_p6 = por %p135_p4, %p134_p3 }
   0xa   : > { %p4011_p7 = scmp.ge.s32.totalorder %s4912_s18, 1  ;;  %p184_p8 = scmp.lt.s32.totalorder %s4912_s18, 4 }
   0xc   : > { %p185_p9 = pnand %p4011_p7, %p184_p8 }
   0xe   : > { %188 = sbr.rel (%p185_p9) target bundleno = 550 (0x226), region = 36 }
  0x13   : > { %v334_v0 = vld [vmem:[%s6445_s2] sm:$0x3]  ;;  %vm475_vm0 = vcmask 1041408   ;;  %v4016_v1 = vld [vmem:[%s6445_s2 + $0x2] sm:$0x3]  ;;  %s4013_s5 = sshll.u32 %s4963_s19, 5 }
  0x14   : > { %4734 = vmatprep.subr.msk.bf16.mxu1 %vm475_vm0, %v334_v0  ;;  %v593_v2 = vsel %vm475_vm0, %v334_v0, 0  ;;  %4733 = vmatprep.subr.msk.bf16.mxu0 %vm475_vm0, %v4016_v1  ;;  %p224_p10 = scmp.lt.s32.totalorder %s4013_s5, 101  ;;  %v477_v3 = vsel %vm475_vm0, %v4016_v1, 0  ;;  %v5004_v4 = vld [vmem:[%s6445_s2 + $0x4] sm:$0x3]  ;;  %vm272_vm1 = vcmask 27648  }
  0x15   : > { %4428 = vmatpush3.bf16.msra.mxu1 %v593_v2  ;;  %4410 = vmatpush3.bf16.msra.mxu0 %v477_v3  ;;  %v4052_v5 = vld [vmem:[%s6445_s2 + $0x6] sm:$0x3]  ;;  %vm450_vm2 = vcmask 31744   ;;  %vm381_vm3 = vsmask.f32 7424  ;;  %v741_v48 = vsel %vm475_vm0, %v5004_v4, 0 }
  0x16   : > { %s6547_s5 = smov (!%p224_p10, %s4013_s5), 101  ;;  %4735 = vmatprep.subr.msk.bf16.mxu0 %vm475_vm0, %v5004_v4  ;;  %4736 = vmatprep.subr.msk.bf16.mxu1 %vm475_vm0, %v4052_v5  ;;  %v5067_v31 = vld [vmem:[%s6445_s2 + $0xa] sm:$0x3]  ;;  %v960_v33 = vsel %vm475_vm0, %v4052_v5, 0  ;;  %v5106_v61 = vld [vmem:[%s6445_s2 + $0x8] sm:$0x3] }
  0x17   : > { %s4014_s10 = sshll.u32 %s6547_s5, 2  ;;  %vm698_vm4 = vcmask 1046528   ;;  %p233_p11 = scmp.lt.s32.totalorder %s4963_s19, 2  ;;  %vm1308_vm5 = vcmask 1045504   ;;  %vm1081_vm6 = vsmask.f32 6400 }
  0x18   : > { %s5015_s13 = scalar_lea.vmem %s6443_s0, %s4014_s10  ;;  %vm1691_vm7 = vsmask.f32 5376  ;;  %vm1918_vm8 = vcmask 1044480   ;;  %s4246_s27 = sshll.u32 %s4963_s19, 12 }
  0x19   : > { %v240_v6 = vld [vmem:[%s5015_s13] sm:$0xf]  ;;  %v241_v7 = vld [vmem:[%s5015_s13 + $0x4] sm:$0xf]  ;;  %v242_v8 = vld [vmem:[%s5015_s13 + $0x8] sm:$0xf] }
  0x1a   : > { %273 = vst.msk [vmem:[#allocation2] sm:$0xf] %vm272_vm1, %v240_v6  ;;  %274 = vst.msk [vmem:[#allocation2 + $0x4] sm:$0xf] %vm272_vm1, %v241_v7  ;;  %v243_v9 = vld [vmem:[%s5015_s13 + $0xc] sm:$0xf] }
  0x1b   : > { %275 = vst.msk [vmem:[#allocation2 + $0x8] sm:$0xf] %vm272_vm1, %v242_v8  ;;  %v244_v10 = vld [vmem:[%s5015_s13 + $0x10] sm:$0xf]  ;;  %v245_v11 = vld [vmem:[%s5015_s13 + $0x14] sm:$0xf] }
  0x1c   : > { %276 = vst.msk [vmem:[#allocation2 + $0xc] sm:$0xf] %vm272_vm1, %v243_v9  ;;  %277 = vst.msk [vmem:[#allocation2 + $0x10] sm:$0xf] %vm272_vm1, %v244_v10  ;;  %v246_v12 = vld [vmem:[%s5015_s13 + $0x18] sm:$0xf] }
  0x1d   : > { %278 = vst.msk [vmem:[#allocation2 + $0x14] sm:$0xf] %vm272_vm1, %v245_v11  ;;  %v247_v13 = vld [vmem:[%s5015_s13 + $0x1c] sm:$0xf]  ;;  %v248_v14 = vld [vmem:[%s5015_s13 + $0x20] sm:$0xf] }
  0x1e   : > { %279 = vst.msk [vmem:[#allocation2 + $0x18] sm:$0xf] %vm272_vm1, %v246_v12  ;;  %280 = vst.msk [vmem:[#allocation2 + $0x1c] sm:$0xf] %vm272_vm1, %v247_v13  ;;  %v249_v15 = vld [vmem:[%s5015_s13 + $0x24] sm:$0xf] }
  0x1f   : > { %281 = vst.msk [vmem:[#allocation2 + $0x20] sm:$0xf] %vm272_vm1, %v248_v14  ;;  %v250_v16 = vld [vmem:[%s5015_s13 + $0x28] sm:$0xf]  ;;  %v251_v17 = vld [vmem:[%s5015_s13 + $0x2c] sm:$0xf] }
  0x20   : > { %282 = vst.msk [vmem:[#allocation2 + $0x24] sm:$0xf] %vm272_vm1, %v249_v15  ;;  %283 = vst.msk [vmem:[#allocation2 + $0x28] sm:$0xf] %vm272_vm1, %v250_v16  ;;  %v252_v18 = vld [vmem:[%s5015_s13 + $0x30] sm:$0xf] }
  0x21   : > { %284 = vst.msk [vmem:[#allocation2 + $0x2c] sm:$0xf] %vm272_vm1, %v251_v17  ;;  %v253_v19 = vld [vmem:[%s5015_s13 + $0x34] sm:$0xf]  ;;  %v254_v20 = vld [vmem:[%s5015_s13 + $0x38] sm:$0xf] }
  0x22   : > { %285 = vst.msk [vmem:[#allocation2 + $0x30] sm:$0xf] %vm272_vm1, %v252_v18  ;;  %286 = vst.msk [vmem:[#allocation2 + $0x34] sm:$0xf] %vm272_vm1, %v253_v19  ;;  %v255_v21 = vld [vmem:[%s5015_s13 + $0x3c] sm:$0xf] }
  0x23   : > { %287 = vst.msk [vmem:[#allocation2 + $0x38] sm:$0xf] %vm272_vm1, %v254_v20  ;;  %v256_v22 = vld [vmem:[%s5015_s13 + $0x40] sm:$0xf]  ;;  %v257_v23 = vld [vmem:[%s5015_s13 + $0x44] sm:$0xf] }
  0x24   : > { %288 = vst.msk [vmem:[#allocation2 + $0x3c] sm:$0xf] %vm272_vm1, %v255_v21  ;;  %289 = vst.msk [vmem:[#allocation2 + $0x40] sm:$0xf] %vm272_vm1, %v256_v22  ;;  %v258_v24 = vld [vmem:[%s5015_s13 + $0x48] sm:$0xf] }
  0x25   : > { %290 = vst.msk [vmem:[#allocation2 + $0x44] sm:$0xf] %vm272_vm1, %v257_v23  ;;  %291 = vst.msk [vmem:[#allocation2 + $0x48] sm:$0xf] %vm272_vm1, %v258_v24  ;;  %v259_v25 = vld [vmem:[%s5015_s13 + $0x4c] sm:$0xf] }
  0x26   : > { %v260_v26 = vld [vmem:[%s5015_s13 + $0x50] sm:$0xf]  ;;  %v318_v27 = vld [vmem:[#allocation2] sm:$0xf]  ;;  %v5057_v28 = vld [vmem:[#allocation2 + $0x4] sm:$0xf] }
  0x27   : > { %292 = vst.msk [vmem:[#allocation2 + $0x4c] sm:$0xf] %vm272_vm1, %v259_v25  ;;  %293 = vst.msk [vmem:[#allocation2 + $0x50] sm:$0xf] %vm272_vm1, %v260_v26  ;;  %v4017_v29 = vcombine.low %v318_v27, %v5057_v28  ;;  %v5062_v30 = vld [vmem:[#allocation2 + $0x8] sm:$0xff]   ;;  %v5069_v32 = vld [vmem:[#allocation2 + $0x10] sm:$0xff]  }
  0x28   : > { %v390_v36 = vshll.u32 %v5062_v30, 16  ;;  %v394_v37 = vshrl.u32 %v5062_v30, 16  ;;  %v398_v38 = vshll.u32 %v5069_v32, 16  ;;  %v5078_v39 = vld [vmem:[#allocation2 + $0x18] sm:$0xff]   ;;  %v402_v40 = vshrl.u32 %v5069_v32, 16  ;;  %v5084_v45 = vld [vmem:[#allocation2 + $0x20] sm:$0xff]  }
  0x29   : > { %4429 = vmatprep.mubr.msk.bf16.mxu1 %vm450_vm2, %v4017_v29  ;;  %v383_v34 = vshrl.u32 %v4017_v29, 16  ;;  %v385_v35 = vshll.u32 %v4017_v29, 16  ;;  %v406_v44 = vshll.u32 %v5078_v39, 16  ;;  %v5090_v49 = vld [vmem:[#allocation2 + $0x28] sm:$0xff]   ;;  %v410_v52 = vshrl.u32 %v5078_v39, 16  ;;  %v5100_v59 = vld [vmem:[#allocation2 + $0x30] sm:$0xff]  }
  0x2a   : > { %4430 = vmatmul.mubr.msk.bf16.vlgmr.msra.gmra.mxu1 %vm450_vm2, %v5062_v30  ;;  %v392_v42 = vrot.slane %v390_v36, 1  ;;  %v400_v43 = vrot.slane %v398_v38, 1  ;;  %v414_v53 = vshll.u32 %v5084_v45, 16  ;;  %v418_v56 = vshrl.u32 %v5084_v45, 16  ;;  %v856_v3 = vld [vmem:[#allocation2 + $0x8] sm:$0xe] }
  0x2b   : > { %v387_v41 = vrot.slane %v385_v35, 1  ;;  %4464 = vmatpush3.bf16.msra.mxu1 %v960_v33  ;;  %4433 = vmatprep.mubr.msk.bf16.mxu1 %vm450_vm2, %v5069_v32  ;;  %v408_v51 = vrot.slane %v406_v44, 1  ;;  %v422_v57 = vshll.u32 %v5090_v49, 16  ;;  %v5113_v1 = vld [vmem:[#allocation2 + $0x38] sm:$0xff]   ;;  %v430_v2 = vshll.u32 %v5100_v59, 16  ;;  %v5130_v12 = vld [vmem:[#allocation2 + $0x10] sm:$0xff]  }
  0x2c   : > { %4738 = vmatprep.subr.msk.bf16.mxu1 %vm475_vm0, %v5067_v31  ;;  %v396_v47 = vor.u32 %v394_v37, %v392_v42  ;;  %v404_v50 = vor.u32 %v402_v40, %v400_v43  ;;  %v416_v60 = vrot.slane %v414_v53, 1  ;;  %v5118_v4 = vld [vmem:[#allocation2 + $0xc] sm:$0xf]  ;;  %v426_v6 = vshrl.u32 %v5090_v49, 16  ;;  %v692_v17 = vld [vmem:[#allocation2] sm:$0xe] }
  0x2d   : > { %v388_v46 = vor.u32 %v387_v41, %v383_v34  ;;  %v412_v62 = vor.u32 %v410_v52, %v408_v51  ;;  %v424_v0 = vrot.slane %v422_v57, 1  ;;  %v434_v8 = vshrl.u32 %v5100_v59, 16  ;;  %v5125_v10 = vld [vmem:[#allocation2 + $0x40] ss:$0 sps:$4 sm:$0x11]   ;;  %v5145_v25 = vld [vmem:[#allocation2 + $0x18] sm:$0xff]  }
  0x2e   : > { %v401_v55 = vsel %vm381_vm3, %v396_v47, %v400_v43  ;;  %v409_v58 = vsel %vm381_vm3, %v404_v50, %v408_v51  ;;  %v420_v63 = vor.u32 %v418_v56, %v416_v60  ;;  %v438_v9 = vshll.u32 %v5113_v1, 16  ;;  %v5148_v27 = vld [vmem:[#allocation2 + $0x20] sm:$0xff]   ;;  %v5161_v41 = vld [vmem:[#allocation2 + $0x28] sm:$0xff]   ;;  %v5166_v44 = vld [vmem:[#allocation2 + $0x30] sm:$0xff]   ;;  %s5217_s5 = scalar_select %p233_p11, %s4963_s19, 2 }
  0x2f   : > { %v393_v54 = vsel %vm381_vm3, %v388_v46, %v392_v42  ;;  %v417_v5 = vsel %vm381_vm3, %v412_v62, %v416_v60  ;;  %v5128_v11 = vcombine.low %v856_v3, %v5118_v4  ;;  %v432_v13 = vrot.slane %v430_v2, 1  ;;  %v5187_v52 = vld [vmem:[#allocation2 + $0x38] sm:$0xff]   ;;  %v5198_v56 = vld [vmem:[%s6445_s2 + $0xc] sm:$0x3]  ;;  %v265_v3 = vld [vmem:[%s5015_s13 + $0x64] sm:$0xf] }
  0x30   : > { %4411 = vmatprep.mubr.msk.bf16.mxu0 %vm450_vm2, %v393_v54  ;;  %v425_v7 = vsel %vm381_vm3, %v420_v63, %v424_v0  ;;  %v428_v14 = vor.u32 %v426_v6, %v424_v0  ;;  %v440_v16 = vrot.slane %v438_v9, 1  ;;  %v919_v19 = vrot.slane %v5130_v12, 1  ;;  %v4811_v62 = vld [vmem:[#allocation2 + $0x48] ss:$0 sps:$4 sm:$0x11]   ;;  %s4751_s6 = smul.u32 24, %s5217_s5  ;;  %s6395_s5 = scalar_lea.hbm %s6447_s4, %s4246_s27 }
  0x31   : > { %4412 = vmatmul.mubr.msk.bf16.vlgmr.msra.gmra.mxu0 %vm450_vm2, %v401_v55  ;;  %v436_v15 = vor.u32 %v434_v8, %v432_v13  ;;  %v918_v18 = vrot.slane %v5128_v11, 1  ;;  %v442_v21 = vshrl.u32 %v5113_v1, 16  ;;  %v446_v22 = vshll.u32 %v5125_v10, 16  ;;  %v5191_v55 = vld [vmem:[#allocation2 + $0x40] sm:$0xff]   ;;  %v262_v63 = vld [vmem:[%s5015_s13 + $0x58] sm:$0xf] }
  0x32   : > { %4446 = vmatpush3.bf16.msra.mxu0 %v741_v48  ;;  %4434 = vmatmul.mubr.msk.bf16.gmra.mxu1 %vm450_vm2, %v5078_v39  ;;  %v433_v20 = vsel %vm381_vm3, %v428_v14, %v432_v13  ;;  %v4043_v23 = vcombine.low %v692_v17, %v5057_v28  ;;  %v921_v28 = vrot.slane %v5145_v25, 1  ;;  %v700_v35 = vrot.slane %v5062_v30, 1  ;;  %v5172_v30 = vld [vmem:[%s6445_s2 + $0xe] sm:$0x3]  ;;  %v1302_v0 = vld [vmem:[#allocation2 + $0x8] sm:$0xc]  ;;  %s5256_s9 = scalar_lea.vmem %s6444_s1, %s4751_s6 }
  0x33   : > { %4415 = vmatprep.mubr.msk.bf16.mxu0 %vm450_vm2, %v409_v58  ;;  %4437 = vmatprep.mubr.msk.bf16.mxu1 %vm450_vm2, %v5084_v45  ;;  %v441_v24 = vsel %vm381_vm3, %v436_v15, %v440_v16  ;;  %v920_v26 = vsel %vm698_vm4, %v918_v18, %v919_v19  ;;  %v444_v29 = vor.u32 %v442_v21, %v440_v16  ;;  %v448_v33 = vrot.slane %v446_v22, 1  ;;  %v263_v2 = vld [vmem:[%s5015_s13 + $0x5c] sm:$0xf]  ;;  %v267_v16 = vld [vmem:[%s5015_s13 + $0x6c] sm:$0xf]  ;;  %s4914_s7 = smov [#allocation3]  }
  0x34   : > { %4737 = vmatprep.subr.msk.bf16.mxu0 %vm475_vm0, %v5106_v61  ;;  %v699_v34 = vrot.slane %v4043_v23, 1  ;;  %v923_v36 = vrot.slane %v5148_v27, 1  ;;  %v922_v38 = vsel %vm698_vm4, %v919_v19, %v921_v28  ;;  %v1351_v42 = vsel %vm475_vm0, %v5067_v31, 0  ;;  %295 = vst.msk [vmem:[#allocation2 + $0x58] sm:$0xf] %vm272_vm1, %v262_v63  ;;  %s4856_s8 = sshll.u32 %s4914_s7, 4  ;;  %s4857_s8 = int_to_ptr.vmem [resolvable:$false] %s4856_s8 }
  0x35   : > { %v449_v37 = vsel %vm381_vm3, %v444_v29, %v448_v33  ;;  %v702_v46 = vrot.slane %v5069_v32, 1  ;;  %v925_v31 = vrot.slane %v5161_v41, 1  ;;  %v704_v47 = vrot.slane %v5078_v39, 1  ;;  %v261_v39 = vld [vmem:[%s5015_s13 + $0x54] sm:$0xf] }
  0x36   : > { %v701_v40 = vsel %vm698_vm4, %v699_v34, %v700_v35  ;;  %v924_v43 = vsel %vm698_vm4, %v921_v28, %v923_v36  ;;  %v927_v48 = vrot.slane %v5166_v44, 1  ;;  %v1187_v51 = vsel %vm475_vm0, %v5106_v61, 0  ;;  %294 = vst.msk [vmem:[#allocation2 + $0x54] sm:$0xf] %vm272_vm1, %v261_v39  ;;  %296 = vst.msk [vmem:[#allocation2 + $0x5c] sm:$0xf] %vm272_vm1, %v263_v2 }
  0x37   : > { %v703_v50 = vsel %vm698_vm4, %v700_v35, %v702_v46  ;;  %v926_v32 = vsel %vm698_vm4, %v923_v36, %v925_v31  ;;  %v705_v53 = vsel %vm698_vm4, %v702_v46, %v704_v47  ;;  %v706_v57 = vrot.slane %v5084_v45, 1  ;;  %298 = vst.msk [vmem:[#allocation2 + $0x64] sm:$0xf] %vm272_vm1, %v265_v3  ;;  %300 = vst.msk [vmem:[#allocation2 + $0x6c] sm:$0xf] %vm272_vm1, %v267_v16 }
  0x38   : > { %v928_v54 = vsel %vm698_vm4, %v925_v31, %v927_v48  ;;  %v929_v58 = vrot.slane %v5187_v52, 1  ;;  %v708_v60 = vrot.slane %v5090_v49, 1  ;;  %v931_v61 = vrot.slane %v5191_v55, 1  ;;  %v268_v18 = vld [vmem:[%s5015_s13 + $0x70] sm:$0xf] }
  0x39   : > { %4416 = vmatmul.mubr.msk.bf16.gmra.mxu0 %vm450_vm2, %v417_v5  ;;  %v707_v45 = vsel %vm698_vm4, %v704_v47, %v706_v57  ;;  %v4081_v9 = vcombine.low %v1302_v0, %v5118_v4  ;;  %v710_v13 = vrot.slane %v5100_v59, 1  ;;  %v933_v14 = vrot.slane %v4811_v62, 1  ;;  %v269_v19 = vld [vmem:[%s5015_s13 + $0x74] sm:$0xf]  ;;  %301 = vst.msk [vmem:[#allocation2 + $0x70] sm:$0xf] %vm272_vm1, %v268_v18 }
  0x3a   : > { %4438 = vmatmul.mubr.msk.bf16.gmra.mxu1 %vm450_vm2, %v5090_v49  ;;  %4419 = vmatprep.mubr.msk.bf16.mxu0 %vm450_vm2, %v425_v7  ;;  %v264_v49 = vld [vmem:[%s5015_s13 + $0x60] sm:$0xf]  ;;  %v930_v5 = vsel %vm698_vm4, %v927_v48, %v929_v58  ;;  %v709_v6 = vsel %vm698_vm4, %v706_v57, %v708_v60  ;;  %v266_v7 = vld [vmem:[%s5015_s13 + $0x68] sm:$0xf]  ;;  %v932_v8 = vsel %vm698_vm4, %v929_v58, %v931_v61  ;;  %v712_v15 = vrot.slane %v5113_v1, 1 }
  0x3b   : > { %4441 = vmatprep.mubr.msk.bf16.mxu1 %vm450_vm2, %v5100_v59  ;;  %297 = vst.msk [vmem:[#allocation2 + $0x60] sm:$0xf] %vm272_vm1, %v264_v49  ;;  %299 = vst.msk [vmem:[#allocation2 + $0x68] sm:$0xf] %vm272_vm1, %v266_v7  ;;  %v1083_v17 = vshrl.u32 %v5128_v11, 16  ;;  %v1086_v4 = vshll.u32 %v5128_v11, 16  ;;  %v711_v11 = vsel %vm698_vm4, %v708_v60, %v710_v13 }
  0x3c   : > { %v1091_v59 = vshrl.u32 %v5130_v12, 16  ;;  %302 = vst.msk [vmem:[#allocation2 + $0x74] sm:$0xf] %vm272_vm1, %v269_v19  ;;  %v271_v21 = vld [vmem:[%s5015_s13 + $0x7c] sm:$0xf]  ;;  %v1309_v22 = vrot.slane %v4081_v9, 2 }
  0x3d   : > { %v1310_v23 = vrot.slane %v5130_v12, 2  ;;  %304 = vst.msk [vmem:[#allocation2 + $0x7c] sm:$0xf] %vm272_vm1, %v271_v21  ;;  %v1085_v29 = vrot.slane %v1083_v17, 1  ;;  %v1088_v33 = vrot.slane %v1086_v4, 2  ;;  %v714_v36 = vrot.slane %v5125_v10, 1 }
  0x3e   : > { %v305_v35 = vld [vmem:[%s5256_s9] sm:$0xf]  ;;  %v1314_v46 = vrot.slane %v5148_v27, 2  ;;  %v1109_v10 = vshrl.u32 %v5148_v27, 16  ;;  %v1112_v31 = vshll.u32 %v5148_v27, 16  ;;  %v1118_v57 = vshrl.u32 %v5161_v41, 16 }
  0x3f   : > { %v1311_v28 = vsel %vm1308_vm5, %v1309_v22, %v1310_v23  ;;  %311 = vst.msk [vmem:[#allocation2 + $0x80] sm:$0xf] %vm272_vm1, %v305_v35  ;;  %v715_v47 = vsel %vm698_vm4, %v712_v15, %v714_v36  ;;  %v1121_v27 = vshll.u32 %v5161_v41, 16  ;;  %v5287_v58 = vld [vmem:[%s6445_s2 + $0x2] sm:$0x3]  ;;  %v1316_v60 = vrot.slane %v5161_v41, 2 }
  0x40   : > { %v1114_v39 = vrot.slane %v1112_v31, 2  ;;  %v1130_v62 = vshll.u32 %v5166_v44, 16  ;;  %v1318_v0 = vrot.slane %v5166_v44, 2  ;;  %v1120_v2 = vrot.slane %v1118_v57, 1  ;;  %v1466_v49 = vld [vmem:[#allocation2 + $0x10] sm:$0xc] }
  0x41   : > { %4420 = vmatmul.mubr.msk.bf16.gmra.mxu0 %vm450_vm2, %v433_v20  ;;  %v270_v20 = vld [vmem:[%s5015_s13 + $0x78] sm:$0xf]  ;;  %v5298_v3 = vld [vmem:[#allocation2 + $0x14] sm:$0xf]  ;;  %v1320_v16 = vrot.slane %v5187_v52, 2  ;;  %v1136_v17 = vshrl.u32 %v5187_v52, 16 }
  0x42   : > { %4442 = vmatmul.mubr.msk.bf16.gmra.mxu1 %vm450_vm2, %v5113_v1  ;;  %4423 = vmatprep.mubr.msk.bf16.mxu0 %vm450_vm2, %v441_v24  ;;  %v1094_v1 = vshll.u32 %v5130_v12, 16  ;;  %303 = vst.msk [vmem:[#allocation2 + $0x78] sm:$0xf] %vm272_vm1, %v270_v20  ;;  %v934_v24 = vsel %vm698_vm4, %v931_v61, %v933_v14  ;;  %v1093_v12 = vrot.slane %v1091_v59, 1  ;;  %v1127_v61 = vshrl.u32 %v5166_v44, 16  ;;  %v5309_v14 = vld [vmem:[#allocation2 + $0x18] sm:$0xff]  }
  0x43   : > { %4465 = vmatprep.mubr.msk.bf16.mxu1 %vm450_vm2, %v920_v26  ;;  %v713_v26 = vsel %vm698_vm4, %v710_v13, %v712_v15  ;;  %v1319_v44 = vsel %vm1308_vm5, %v1316_v60, %v1318_v0  ;;  %v5307_v13 = vcombine.low %v1466_v49, %v5298_v3  ;;  %v1139_v4 = vshll.u32 %v5187_v52, 16  ;;  %v306_v20 = vld [vmem:[%s5256_s9 + $0x4] sm:$0xf]  ;;  %v4812_v21 = vld [vmem:[#allocation2 + $0x48] ss:$0 sps:$4 sm:$0x33]  }
  0x44   : > { %v1096_v34 = vrot.slane %v1094_v1, 2  ;;  %v1129_v7 = vrot.slane %v1127_v61, 1  ;;  %v1322_v19 = vrot.slane %v5191_v55, 2  ;;  %v1145_v59 = vshrl.u32 %v5191_v55, 16  ;;  %312 = vst.msk [vmem:[#allocation2 + $0x84] sm:$0xf] %vm272_vm1, %v306_v20 }
  0x45   : > { %v1148_v1 = vshll.u32 %v5191_v55, 16  ;;  %v1693_v22 = vshrl.u32 %v5307_v13, 16  ;;  %v1701_v52 = vshrl.u32 %v5309_v14, 16  ;;  %v1157_v31 = vshll.u32 %v4812_v21, 16  ;;  %v5358_v49 = vld [vmem:[#allocation2 + $0x38] sm:$0xff]   ;;  %s216_s13 = sand.u32 1, %s4904_s16  }
  0x46   : > { %v1323_v35 = vsel %vm1308_vm5, %v1320_v16, %v1322_v19  ;;  %v1147_v36 = vrot.slane %v1145_v59, 1  ;;  %v5373_v59 = vld [vmem:[#allocation2 + $0x40] sm:$0xff]   ;;  %s4012_s22 = sshll.u32 %s216_s13, 8  ;;  %s6403_s19 = scalar_lea.sflag [#allocation4], %s216_s13 }
  0x47   : > { %s6062_s23 = scalar_lea.vmem [#allocation3], %s4012_s22 }
  0x48   : > { %s3934_s28 = sshll.u32 %s6062_s23, 4  ;;  %s6397_s28 = int_to_ptr.vmem [resolvable:$true] %s3934_s28 }
  0x49   : > { %4424 = vmatmul.mubr.msk.bf16.gmra.mxu0 %vm450_vm2, %v449_v37  ;;  %v1100_v37 = vshrl.u32 %v5145_v25, 16  ;;  %s4852_s6 = scalar_lea.vmem %s6397_s28, 4096  ;;  %p4859_p1 = scmp.lt.s32.totalorder %s6397_s28, %s4857_s8 }
  0x4a   : > { %4466 = vmatmul.mubr.msk.bf16.vlgmr.msra.gmra.mxu1 %vm450_vm2, %v922_v38  ;;  %4447 = vmatprep.mubr.msk.bf16.mxu0 %vm450_vm2, %v701_v40  ;;  %v1103_v38 = vshll.u32 %v5145_v25, 16  ;;  %v1312_v40 = vrot.slane %v5145_v25, 2  ;;  %v1797_v25 = vsel %vm475_vm0, %v5172_v30, 0  ;;  %p4853_p12 = scmp.ne.s32.totalorder %s6397_s28, %s4852_s6 }
  0x4b   : > { %4500 = vmatpush3.bf16.msra.mxu1 %v1351_v42  ;;  %4469 = vmatprep.mubr.msk.bf16.mxu1 %vm450_vm2, %v924_v43  ;;  %v1089_v42 = vor.u32 %v1088_v33, %v1085_v29  ;;  %v1097_v43 = vor.u32 %v1096_v34, %v1093_v12  ;;  %v1102_v48 = vrot.slane %v1100_v37, 1  ;;  %v1321_v29 = vsel %vm1308_vm5, %v1318_v0, %v1320_v16  ;;  %v5339_v34 = vld [vmem:[#allocation2 + $0x28] sm:$0xff]  }
  0x4c   : > { %4740 = vmatprep.subr.msk.bf16.mxu1 %vm475_vm0, %v5172_v30  ;;  %v1138_v33 = vrot.slane %v1136_v17, 1  ;;  %v1141_v12 = vrot.slane %v1139_v4, 2  ;;  %v1150_v37 = vrot.slane %v1148_v1, 2  ;;  %v1740_v16 = vshll.u32 %v5358_v49, 16  ;;  %p4854_p13 = pnand %p4853_p12, %p4980_p5 }
  0x4d   : > { %v2285_v1 = vsel %vm475_vm0, %v5287_v58, 0 }
  0x4e   : > { %p4855_p0 = pneg %p4854_p13 }
  0x51   : > { %4448 = vmatmul.mubr.msk.bf16.vlgmr.msra.gmra.mxu0 %vm450_vm2, %v703_v50  ;;  %v1105_v50 = vrot.slane %v1103_v38, 2  ;;  %v1695_v38 = vrot.slane %v1693_v22, 2  ;;  %v1742_v22 = vrot.slane %v1740_v16, 3 }
  0x52   : > { %4482 = vmatpush3.bf16.msra.mxu0 %v1187_v51  ;;  %4470 = vmatmul.mubr.msk.bf16.gmra.mxu1 %vm450_vm2, %v926_v32  ;;  %v1313_v51 = vsel %vm1308_vm5, %v1310_v23, %v1312_v40  ;;  %v1098_v32 = vsel %vm1081_vm6, %v1089_v42, %v1097_v43  ;;  %v1696_v23 = vshll.u32 %v5307_v13, 16  ;;  %v1703_v42 = vrot.slane %v1701_v52, 2  ;;  %v5384_v52 = vld [vmem:[%s6445_s2 + $0x4] sm:$0x3] }
  0x53   : > { %4451 = vmatprep.mubr.msk.bf16.mxu0 %vm450_vm2, %v705_v53  ;;  %4473 = vmatprep.mubr.msk.bf16.mxu1 %vm450_vm2, %v928_v54  ;;  %v1315_v53 = vsel %vm1308_vm5, %v1312_v40, %v1314_v46  ;;  %v1111_v54 = vrot.slane %v1109_v10, 1  ;;  %v1106_v30 = vor.u32 %v1105_v50, %v1102_v48  ;;  %v1154_v10 = vshrl.u32 %v4812_v21, 16 }
  0x54   : > { %4739 = vmatprep.subr.msk.bf16.mxu0 %vm475_vm0, %v5198_v56  ;;  %v1698_v40 = vrot.slane %v1696_v23, 3  ;;  %v1151_v48 = vor.u32 %v1150_v37, %v1147_v36  ;;  %v5378_v23 = vld [vmem:[#allocation2 + $0x48] sm:$0xff]   ;;  %v5397_v36 = vld [vmem:[#allocation2 + $0x44] sm:$0xf] }
  0x55   : > { %v1115_v63 = vor.u32 %v1114_v39, %v1111_v54  ;;  %v1107_v41 = vsel %vm1081_vm6, %v1097_v43, %v1106_v30  ;;  %v1722_v54 = vshll.u32 %v5339_v34, 16  ;;  %v1156_v57 = vrot.slane %v1154_v10, 1  ;;  %v5404_v10 = vld [vmem:[#allocation2 + $0x50] ss:$0 sps:$4 sm:$0x77]  }
  0x57   : > { %v1116_v9 = vsel %vm1081_vm6, %v1106_v30, %v1115_v63 }
  0x59   : > { %4452 = vmatmul.mubr.msk.bf16.gmra.mxu0 %vm450_vm2, %v707_v45  ;;  %v1123_v45 = vrot.slane %v1121_v27, 2  ;;  %v1159_v27 = vrot.slane %v1157_v31, 2 }
  0x5a   : > { %4474 = vmatmul.mubr.msk.bf16.gmra.mxu1 %vm450_vm2, %v930_v5  ;;  %4455 = vmatprep.mubr.msk.bf16.mxu0 %vm450_vm2, %v709_v6  ;;  %v1570_v5 = vsel %vm475_vm0, %v5198_v56, 0  ;;  %v1317_v6 = vsel %vm1308_vm5, %v1314_v46, %v1316_v60  ;;  %v5315_v56 = vld [vmem:[%s6445_s2 + $0x10] sm:$0x3]  ;;  %v1142_v46 = vor.u32 %v1141_v12, %v1138_v33  ;;  %v1755_v12 = vshrl.u32 %v5378_v23, 16 }
  0x5b   : > { %4477 = vmatprep.mubr.msk.bf16.mxu1 %vm450_vm2, %v932_v8  ;;  %v1132_v8 = vrot.slane %v1130_v62, 2  ;;  %v1124_v15 = vor.u32 %v1123_v45, %v1120_v2  ;;  %v1724_v45 = vrot.slane %v1722_v54, 3  ;;  %v1767_v54 = vshll.u32 %v5404_v10, 16 }
  0x5c   : > { %v1152_v60 = vsel %vm1081_vm6, %v1142_v46, %v1151_v48 }
  0x5d   : > { %v1133_v18 = vor.u32 %v1132_v8, %v1129_v7  ;;  %v1125_v55 = vsel %vm1081_vm6, %v1115_v63, %v1124_v15  ;;  %v5355_v63 = vld [vmem:[#allocation2 + $0x30] sm:$0xff]   ;;  %v1529_v7 = vrot.slane %v5309_v14, 2 }
  0x5e   : > { %v1728_v8 = vshrl.u32 %v5355_v63, 16 }
  0x5f   : > { %v1143_v39 = vsel %vm1081_vm6, %v1133_v18, %v1142_v46 }
  0x61   : > { %4456 = vmatmul.mubr.msk.bf16.gmra.mxu0 %vm450_vm2, %v711_v11  ;;  %v1704_v11 = vshll.u32 %v5309_v14, 16 }
  0x62   : > { %4478 = vmatmul.mubr.msk.bf16.gmra.mxu1 %vm450_vm2, %v934_v24  ;;  %4459 = vmatprep.mubr.msk.bf16.mxu0 %vm450_vm2, %v713_v26  ;;  %v5334_v24 = vld [vmem:[#allocation2 + $0x20] sm:$0xff]   ;;  %v307_v26 = vld [vmem:[%s5256_s9 + $0x8] sm:$0xf] }
  0x63   : > { %4501 = vmatprep.mubr.msk.bf16.mxu1 %vm450_vm2, %v1311_v28  ;;  %313 = vst.msk [vmem:[#allocation2 + $0x88] sm:$0xf] %vm272_vm1, %v307_v26  ;;  %v1134_v28 = vsel %vm1081_vm6, %v1124_v15, %v1133_v18  ;;  %v1706_v43 = vrot.slane %v1704_v11, 3  ;;  %v1710_v50 = vshrl.u32 %v5334_v24, 16  ;;  %v1737_v15 = vshrl.u32 %v5358_v49, 16 }
  0x64   : > { %v1730_v18 = vrot.slane %v1728_v8, 2  ;;  %v1531_v11 = vrot.slane %v5334_v24, 2  ;;  %v1533_v26 = vrot.slane %v5339_v34, 2  ;;  %v1539_v8 = vrot.slane %v5373_v59, 2 }
  0x65   : > { %v1712_v61 = vrot.slane %v1710_v50, 2 }
  0x66   : > { %v1532_v37 = vsel %vm1308_vm5, %v1529_v7, %v1531_v11 }
  0x69   : > { %4460 = vmatmul.mubr.msk.bf16.gmra.mxu0 %vm450_vm2, %v715_v47  ;;  %v1324_v47 = vrot.slane %v4812_v21, 2  ;;  %v1739_v21 = vrot.slane %v1737_v15, 2  ;;  %v1541_v15 = vrot.slane %v5378_v23, 2 }
  0x6a   : > { %4502 = vmatmul.mubr.msk.bf16.vlgmr.msra.gmra.mxu1 %vm450_vm2, %v1313_v51  ;;  %4483 = vmatprep.mubr.msk.bf16.mxu0 %vm450_vm2, %v1098_v32  ;;  %v1713_v51 = vshll.u32 %v5334_v24, 16  ;;  %v1699_v32 = vor.u32 %v1698_v40, %v1695_v38  ;;  %v1961_v38 = vsel %vm475_vm0, %v5315_v56, 0 }
  0x6b   : > { %4536 = vmatpush3.bf16.msra.mxu1 %v1797_v25  ;;  %4505 = vmatprep.mubr.msk.bf16.mxu1 %vm450_vm2, %v1315_v53  ;;  %v1707_v25 = vor.u32 %v1706_v43, %v1703_v42  ;;  %v1719_v53 = vshrl.u32 %v5339_v34, 16  ;;  %v1325_v30 = vsel %vm1308_vm5, %v1322_v19, %v1324_v47  ;;  %v1743_v33 = vor.u32 %v1742_v22, %v1739_v21 }
  0x6c   : > { %4742 = vmatprep.subr.msk.bf16.mxu1 %vm475_vm0, %v5287_v58  ;;  %v1715_v62 = vrot.slane %v1713_v51, 3  ;;  %v1534_v42 = vsel %vm1308_vm5, %v1531_v11, %v1533_v26  ;;  %v1757_v47 = vrot.slane %v1755_v12, 2  ;;  %v1535_v51 = vrot.slane %v5355_v63, 2  ;;  %v5460_v12 = vld [vmem:[#allocation2 + $0x60] sm:$0xff]  }
  0x6d   : > { %v1708_v0 = vsel %vm1691_vm7, %v1699_v32, %v1707_v25  ;;  %v1721_v2 = vrot.slane %v1719_v53, 2  ;;  %v1764_v53 = vshrl.u32 %v5404_v10, 16  ;;  %v1542_v21 = vsel %vm1308_vm5, %v1539_v8, %v1541_v15 }
  0x71   : > { %4484 = vmatmul.mubr.msk.bf16.vlgmr.msra.gmra.mxu0 %vm450_vm2, %v1107_v41  ;;  %v1160_v41 = vor.u32 %v1159_v27, %v1156_v57  ;;  %v5423_v57 = vld [vmem:[#allocation2 + $0x48] sm:$0xff]  }
  0x72   : > { %4518 = vmatpush3.bf16.msra.mxu0 %v1570_v5  ;;  %4506 = vmatmul.mubr.msk.bf16.gmra.mxu1 %vm450_vm2, %v1317_v6  ;;  %v1528_v5 = vrot.slane %v5307_v13, 2  ;;  %v1716_v6 = vor.u32 %v1715_v62, %v1712_v61  ;;  %v1766_v62 = vrot.slane %v1764_v53, 2  ;;  %v2204_v22 = vshrl.u32 %v5423_v57, 16 }
  0x73   : > { %4487 = vmatprep.mubr.msk.bf16.mxu0 %vm450_vm2, %v1116_v9  ;;  %4509 = vmatprep.mubr.msk.bf16.mxu1 %vm450_vm2, %v1319_v44  ;;  %v1731_v9 = vshll.u32 %v5355_v63, 16  ;;  %v1725_v44 = vor.u32 %v1724_v45, %v1721_v2  ;;  %v1161_v17 = vsel %vm1081_vm6, %v1151_v48, %v1160_v41  ;;  %v308_v2 = vld [vmem:[%s5256_s9 + $0xc] sm:$0xf]  ;;  %v1922_v53 = vrot.slane %v5334_v24, 3 }
  0x74   : > { %4741 = vmatprep.subr.msk.bf16.mxu0 %vm475_vm0, %v5315_v56  ;;  %v1717_v4 = vsel %vm1691_vm7, %v1707_v25, %v1716_v6  ;;  %v1530_v13 = vsel %vm1308_vm5, %v1528_v5, %v1529_v7  ;;  %v5414_v56 = vld [vmem:[%s6445_s2] sm:$0x3]  ;;  %v1537_v25 = vrot.slane %v5358_v49, 2  ;;  %314 = vst.msk [vmem:[#allocation2 + $0x8c] sm:$0xf] %vm272_vm1, %v308_v2 }
  0x75   : > { %v1733_v19 = vrot.slane %v1731_v9, 3  ;;  %v1726_v20 = vsel %vm1691_vm7, %v1716_v6, %v1725_v44  ;;  %v2200_v6 = vshll.u32 %v5423_v57, 16  ;;  %v309_v7 = vld [vmem:[%s5256_s9 + $0x10] sm:$0xf]  ;;  %s4858_s9 = scalar_lea.vmem %s4857_s8, 8192 }
  0x76   : > { %v1538_v61 = vsel %vm1308_vm5, %v1535_v51, %v1537_v25  ;;  %315 = vst.msk [vmem:[#allocation2 + $0x90] sm:$0xf] %vm272_vm1, %v309_v7  ;;  %v5442_v9 = vld [vmem:[#allocation2 + $0x50] sm:$0xff]   ;;  %v4165_v7 = vld [vmem:[%s6445_s2 + $0x6] sm:$0x3]  ;;  %p4860_p2 = scmp.lt.s32.totalorder %s4858_s9, %s4852_s6 }
  0x77   : > { %v1734_v58 = vor.u32 %v1733_v19, %v1730_v18  ;;  %v1540_v18 = vsel %vm1308_vm5, %v1537_v25, %v1539_v8  ;;  %v4822_v19 = vld [vmem:[#allocation2 + $0x50] ss:$0 sps:$4 sm:$0x33]   ;;  %v5480_v25 = vld [vmem:[%s6445_s2 + $0x8] sm:$0x3] }
  0x78   : > { %p4861_p3 = por %p4860_p2, %p4859_p1 }
  0x79   : > { %4488 = vmatmul.mubr.msk.bf16.gmra.mxu0 %vm450_vm2, %v1125_v55  ;;  %v1746_v55 = vshrl.u32 %v5373_v59, 16  ;;  %v1735_v40 = vsel %vm1691_vm7, %v1725_v44, %v1734_v58  ;;  %v1744_v31 = vsel %vm1691_vm7, %v1734_v58, %v1743_v33 }
  0x7a   : > { %4510 = vmatmul.mubr.msk.bf16.gmra.mxu1 %vm450_vm2, %v1321_v29  ;;  %4491 = vmatprep.mubr.msk.bf16.mxu0 %vm450_vm2, %v1134_v28  ;;  %v1749_v29 = vshll.u32 %v5373_v59, 16  ;;  %v1758_v28 = vshll.u32 %v5378_v23, 16  ;;  %p4862_p4 = pnand %p4861_p3, %p4855_p0 }
  0x7b   : > { %4513 = vmatprep.mubr.msk.bf16.mxu1 %vm450_vm2, %v1323_v35  ;;  %v2130_v35 = vld [vmem:[#allocation2 + $0x40] sm:$0xf]  ;;  %v1748_v43 = vrot.slane %v1746_v55, 2 }
  0x7c   : > { %v1751_v46 = vrot.slane %v1749_v29, 3  ;;  %v1760_v48 = vrot.slane %v1758_v28, 3  ;;  %v5408_v50 = vcombine.low %v2130_v35, %v5397_v36  ;;  %v1543_v29 = vrot.slane %v4822_v19, 2 }
  0x7d   : > { %v1920_v35 = vrot.slane %v5309_v14, 3 }
  0x7e   : > { %v1752_v32 = vor.u32 %v1751_v46, %v1748_v43  ;;  %v2195_v27 = vshll.u32 %v5408_v50, 16  ;;  %v2193_v41 = vshrl.u32 %v5408_v50, 16  ;;  %v2224_v43 = vshll.u32 %v5460_v12, 16 }
  0x80   : > { %v2197_v5 = vrot.slane %v2195_v27, 1  ;;  %v1924_v27 = vrot.slane %v5339_v34, 3 }
  0x81   : > { %4492 = vmatmul.mubr.msk.bf16.gmra.mxu0 %vm450_vm2, %v1143_v39  ;;  %v1761_v39 = vor.u32 %v1760_v48, %v1757_v47  ;;  %v2547_v48 = vsel %vm475_vm0, %v5384_v52, 0 }
  0x82   : > { %4514 = vmatmul.mubr.msk.bf16.gmra.mxu1 %vm450_vm2, %v1325_v30  ;;  %4495 = vmatprep.mubr.msk.bf16.mxu0 %vm450_vm2, %v1152_v60  ;;  %v1536_v30 = vsel %vm1308_vm5, %v1533_v26, %v1535_v51  ;;  %v1753_v60 = vsel %vm1691_vm7, %v1743_v33, %v1752_v32  ;;  %v2198_v16 = vor.u32 %v2197_v5, %v2193_v41  ;;  %v2212_v26 = vshrl.u32 %v5442_v9, 16 }
  0x83   : > { %4537 = vmatprep.mubr.msk.bf16.mxu1 %vm450_vm2, %v1708_v0  ;;  %v1769_v0 = vrot.slane %v1767_v54, 3  ;;  %v1762_v45 = vsel %vm1691_vm7, %v1752_v32, %v1761_v39  ;;  %v2228_v51 = vshrl.u32 %v5460_v12, 16  ;;  %v5485_v54 = vld [vmem:[#allocation2 + $0x70] sm:$0xff]   ;;  %v1925_v34 = vsel %vm1918_vm8, %v1922_v53, %v1924_v27 }
  0x84   : > { %v2240_v24 = vshll.u32 %v5485_v54, 16  ;;  %v2244_v5 = vshrl.u32 %v5485_v54, 16 }
  0x85   : > { %v1770_v44 = vor.u32 %v1769_v0, %v1766_v62  ;;  %v1923_v62 = vsel %vm1918_vm8, %v1920_v35, %v1922_v53  ;;  %v2401_v0 = vsel %vm475_vm0, %v5414_v56, 0  ;;  %v5565_v53 = vld [vmem:[#allocation2 + $0x50] sm:$0xff]  }
  0x86   : > { %v2242_v8 = vrot.slane %v2240_v24, 1 }
  0x89   : > { %4496 = vmatmul.mubr.msk.bf16.gmra.mxu0 %vm450_vm2, %v1161_v17  ;;  %v2202_v17 = vrot.slane %v2200_v6, 1 }
  0x8a   : > { %4538 = vmatmul.mubr.msk.bf16.vlgmr.msra.gmra.mxu1 %vm450_vm2, %v1717_v4  ;;  %4519 = vmatprep.mubr.msk.bf16.mxu0 %vm450_vm2, %v1530_v13  ;;  %v1912_v4 = vld [vmem:[#allocation2 + $0x10] sm:$0x8]  ;;  %v5446_v13 = vld [vmem:[#allocation2 + $0x58] sm:$0xff]  }
  0x8b   : > { %4572 = vmatpush3.bf16.msra.mxu1 %v2285_v1  ;;  %4541 = vmatprep.mubr.msk.bf16.mxu1 %vm450_vm2, %v1726_v20  ;;  %v2208_v1 = vshll.u32 %v5442_v9, 16  ;;  %v1771_v20 = vsel %vm1691_vm7, %v1761_v39, %v1770_v44  ;;  %v4119_v11 = vcombine.low %v1912_v4, %v5298_v3  ;;  %v2203_v58 = vsel %vm381_vm3, %v2198_v16, %v2202_v17  ;;  %v5512_v16 = vld [vmem:[#allocation2 + $0x80] ss:$0 sps:$4 sm:$0x11]  }
  0x8c   : > { %4744 = vmatprep.subr.msk.bf16.mxu1 %vm475_vm0, %v5384_v52  ;;  %v2216_v55 = vshll.u32 %v5446_v13, 16  ;;  %v2206_v28 = vor.u32 %v2204_v22, %v2202_v17  ;;  %v2220_v47 = vshrl.u32 %v5446_v13, 16  ;;  %v2226_v52 = vrot.slane %v2224_v43, 1 }
  0x8d   : > { %v2210_v33 = vrot.slane %v2208_v1, 1  ;;  %v1919_v3 = vrot.slane %v4119_v11, 3  ;;  %v2246_v17 = vor.u32 %v2244_v5, %v2242_v8  ;;  %v1930_v11 = vrot.slane %v5373_v59, 3  ;;  %v5588_v5 = vld [vmem:[#allocation2 + $0x60] sm:$0xff]  }
  0x8e   : > { %v1934_v59 = vrot.slane %v5404_v10, 3  ;;  %v2990_v43 = vsel %vm475_vm0, %v5480_v25, 0  ;;  %v5549_v10 = vld [vmem:[%s6445_s2 + $0xc] sm:$0x3] }
  0x8f   : > { %v2211_v46 = vsel %vm381_vm3, %v2206_v28, %v2210_v33 }
  0x91   : > { %4520 = vmatmul.mubr.msk.bf16.vlgmr.msra.gmra.mxu0 %vm450_vm2, %v1532_v37  ;;  %v2214_v37 = vor.u32 %v2212_v26, %v2210_v33  ;;  %v2506_v33 = vrot.slane %v5423_v57, 1 }
  0x92   : > { %4554 = vmatpush3.bf16.msra.mxu0 %v1961_v38  ;;  %4542 = vmatmul.mubr.msk.bf16.gmra.mxu1 %vm450_vm2, %v1735_v40  ;;  %v2218_v38 = vrot.slane %v2216_v55, 1  ;;  %v5464_v40 = vld [vmem:[#allocation2 + $0x68] sm:$0xff]   ;;  %v1932_v55 = vrot.slane %v5378_v23, 3  ;;  %v2508_v23 = vrot.slane %v5442_v9, 1 }
  0x93   : > { %4523 = vmatprep.mubr.msk.bf16.mxu0 %vm450_vm2, %v1534_v42  ;;  %4545 = vmatprep.mubr.msk.bf16.mxu1 %vm450_vm2, %v1744_v31  ;;  %v1544_v42 = vsel %vm1308_vm5, %v1541_v15, %v1543_v29  ;;  %v1921_v31 = vsel %vm1918_vm8, %v1919_v3, %v1920_v35  ;;  %v2232_v32 = vshll.u32 %v5464_v40, 16  ;;  %v1928_v15 = vrot.slane %v5358_v49, 3 }
  0x94   : > { %4743 = vmatprep.subr.msk.bf16.mxu0 %vm475_vm0, %v5414_v56  ;;  %v2219_v14 = vsel %vm381_vm3, %v2214_v37, %v2218_v38  ;;  %v2222_v39 = vor.u32 %v2220_v47, %v2218_v38  ;;  %v1926_v56 = vrot.slane %v5355_v63, 3  ;;  %v1933_v3 = vsel %vm1918_vm8, %v1930_v11, %v1932_v55 }
  0x95   : > { %v1931_v28 = vsel %vm1918_vm8, %v1928_v15, %v1930_v11  ;;  %v2510_v37 = vrot.slane %v5446_v13, 1  ;;  %v1935_v38 = vsel %vm1918_vm8, %v1932_v55, %v1934_v59  ;;  %v2514_v47 = vrot.slane %v5464_v40, 1 }
  0x96   : > { %v2227_v2 = vsel %vm381_vm3, %v2222_v39, %v2226_v52  ;;  %v1927_v19 = vsel %vm1918_vm8, %v1924_v27, %v1926_v56  ;;  %v1929_v63 = vsel %vm1918_vm8, %v1926_v56, %v1928_v15  ;;  %v2516_v39 = vrot.slane %v5485_v54, 1 }
  0x97   : > { %v2912_v15 = vshrl.u32 %v5588_v5, 16 }
  0x98   : > { %v2517_v24 = vsel %vm698_vm4, %v2514_v47, %v2516_v39 }
  0x99   : > { %4524 = vmatmul.mubr.msk.bf16.gmra.mxu0 %vm450_vm2, %v1536_v30  ;;  %v2230_v30 = vor.u32 %v2228_v51, %v2226_v52  ;;  %v2765_v51 = vsel %vm475_vm0, %v4165_v7, 0  ;;  %v5572_v52 = vld [vmem:[%s6445_s2 + $0xa] sm:$0x3] }
  0x9a   : > { %4546 = vmatmul.mubr.msk.bf16.gmra.mxu1 %vm450_vm2, %v1753_v60  ;;  %4527 = vmatprep.mubr.msk.bf16.mxu0 %vm450_vm2, %v1538_v61  ;;  %v2234_v60 = vrot.slane %v2232_v32, 1  ;;  %v5489_v61 = vld [vmem:[#allocation2 + $0x78] sm:$0xff]  }
  0x9b   : > { %4549 = vmatprep.mubr.msk.bf16.mxu1 %vm450_vm2, %v1762_v45  ;;  %v2236_v45 = vshrl.u32 %v5464_v40, 16  ;;  %v2248_v6 = vshll.u32 %v5489_v61, 16  ;;  %v2518_v27 = vrot.slane %v5489_v61, 1 }
  0x9c   : > { %v2235_v41 = vsel %vm381_vm3, %v2230_v30, %v2234_v60 }
  0x9d   : > { %v2238_v44 = vor.u32 %v2236_v45, %v2234_v60  ;;  %v2250_v4 = vrot.slane %v2248_v6, 1  ;;  %v2520_v6 = vrot.slane %v5512_v16, 1 }
  0x9f   : > { %v2243_v1 = vsel %vm381_vm3, %v2238_v44, %v2242_v8  ;;  %v2251_v22 = vsel %vm381_vm3, %v2246_v17, %v2250_v4  ;;  %v2915_v17 = vshll.u32 %v5588_v5, 16 }
  0xa1   : > { %4528 = vmatmul.mubr.msk.bf16.gmra.mxu0 %vm450_vm2, %v1540_v18  ;;  %v2500_v18 = vld [vmem:[#allocation2 + $0x40] sm:$0xe] }
  0xa2   : > { %4550 = vmatmul.mubr.msk.bf16.gmra.mxu1 %vm450_vm2, %v1771_v20  ;;  %4531 = vmatprep.mubr.msk.bf16.mxu0 %vm450_vm2, %v1542_v21  ;;  %v2252_v20 = vshrl.u32 %v5489_v61, 16  ;;  %v2256_v21 = vshll.u32 %v5512_v16, 16  ;;  %v4156_v49 = vcombine.low %v2500_v18, %v5397_v36  ;;  %v2917_v16 = vrot.slane %v2915_v17, 2 }
  0xa3   : > { %4573 = vmatprep.mubr.msk.bf16.mxu1 %vm450_vm2, %v2203_v58 }
  0xa4   : > { %v2254_v58 = vor.u32 %v2252_v20, %v2250_v4  ;;  %v2258_v26 = vrot.slane %v2256_v21, 1  ;;  %v2505_v29 = vrot.slane %v4156_v49, 1 }
  0xa6   : > { %v2259_v36 = vsel %vm381_vm3, %v2254_v58, %v2258_v26  ;;  %v2507_v35 = vsel %vm698_vm4, %v2505_v29, %v2506_v33 }
  0xa9   : > { %4532 = vmatmul.mubr.msk.bf16.gmra.mxu0 %vm450_vm2, %v1544_v42  ;;  %v2509_v42 = vsel %vm698_vm4, %v2506_v33, %v2508_v23 }
  0xaa   : > { %4574 = vmatmul.mubr.msk.bf16.vlgmr.msra.gmra.mxu1 %vm450_vm2, %v2211_v46  ;;  %4555 = vmatprep.mubr.msk.bf16.mxu0 %vm450_vm2, %v1921_v31  ;;  %v2511_v46 = vsel %vm698_vm4, %v2508_v23, %v2510_v37  ;;  %v2512_v31 = vrot.slane %v5460_v12, 1  ;;  %v5625_v23 = vld [vmem:[#allocation2 + $0x80] sm:$0xff]  }
  0xab   : > { %4608 = vmatpush3.bf16.msra.mxu1 %v2547_v48  ;;  %4577 = vmatprep.mubr.msk.bf16.mxu1 %vm450_vm2, %v2219_v14  ;;  %v2662_v48 = vld [vmem:[#allocation2 + $0x48] sm:$0xe]  ;;  %v5559_v14 = vld [vmem:[#allocation2 + $0x4c] sm:$0xf] }
  0xac   : > { %4746 = vmatprep.subr.msk.bf16.mxu1 %vm475_vm0, %v5480_v25  ;;  %v2513_v32 = vsel %vm698_vm4, %v2510_v37, %v2512_v31  ;;  %v2515_v25 = vsel %vm698_vm4, %v2512_v31, %v2514_v47  ;;  %v5632_v37 = vld [vmem:[%s6445_s2 + $0x10] sm:$0x3]  ;;  %v2728_v31 = vrot.slane %v5588_v5, 1 }
  0xb1   : > { %4556 = vmatmul.mubr.msk.bf16.vlgmr.msra.gmra.mxu0 %vm450_vm2, %v1923_v62  ;;  %v2897_v62 = vshll.u32 %v5565_v53, 16 }
  0xb2   : > { %4590 = vmatpush3.bf16.msra.mxu0 %v2401_v0  ;;  %4578 = vmatmul.mubr.msk.bf16.gmra.mxu1 %vm450_vm2, %v2227_v2  ;;  %v2519_v0 = vsel %vm698_vm4, %v2516_v39, %v2518_v27 }
  0xb3   : > { %4559 = vmatprep.mubr.msk.bf16.mxu0 %vm450_vm2, %v1925_v34  ;;  %4581 = vmatprep.mubr.msk.bf16.mxu1 %vm450_vm2, %v2235_v41  ;;  %v2899_v41 = vrot.slane %v2897_v62, 2 }
  0xb4   : > { %4745 = vmatprep.subr.msk.bf16.mxu0 %vm475_vm0, %v4165_v7 }
  0xb9   : > { %4560 = vmatmul.mubr.msk.bf16.gmra.mxu0 %vm450_vm2, %v1927_v19  ;;  %v5602_v19 = vld [vmem:[#allocation2 + $0x68] sm:$0xff]  }
  0xba   : > { %4582 = vmatmul.mubr.msk.bf16.gmra.mxu1 %vm450_vm2, %v2243_v1  ;;  %4563 = vmatprep.mubr.msk.bf16.mxu0 %vm450_vm2, %v1929_v63  ;;  %v2914_v1 = vrot.slane %v2912_v15, 1  ;;  %v5605_v63 = vld [vmem:[#allocation2 + $0x70] sm:$0xff]   ;;  %v2921_v49 = vshrl.u32 %v5602_v19, 16  ;;  %v2924_v11 = vshll.u32 %v5602_v19, 16 }
  0xbb   : > { %4585 = vmatprep.mubr.msk.bf16.mxu1 %vm450_vm2, %v2251_v22  ;;  %v2724_v22 = vrot.slane %v5565_v53, 1  ;;  %v2930_v26 = vshrl.u32 %v5605_v63, 16 }
  0xbc   : > { %v2918_v58 = vor.u32 %v2917_v16, %v2914_v1  ;;  %v2926_v33 = vrot.slane %v2924_v11, 2  ;;  %v5672_v1 = vld [vmem:[#allocation2 + $0x54] sm:$0xf] }
  0xc1   : > { %4564 = vmatmul.mubr.msk.bf16.gmra.mxu0 %vm450_vm2, %v1931_v28  ;;  %v5620_v28 = vld [vmem:[#allocation2 + $0x78] sm:$0xff]  }
  0xc2   : > { %4586 = vmatmul.mubr.msk.bf16.gmra.mxu1 %vm450_vm2, %v2259_v36  ;;  %4567 = vmatprep.mubr.msk.bf16.mxu0 %vm450_vm2, %v1933_v3  ;;  %v3370_v36 = vsel %vm475_vm0, %v5549_v10, 0 }
  0xc3   : > { %4609 = vmatprep.mubr.msk.bf16.mxu1 %vm450_vm2, %v2507_v35  ;;  %v2932_v35 = vrot.slane %v2930_v26, 1 }
  0xc9   : > { %4568 = vmatmul.mubr.msk.bf16.gmra.mxu0 %vm450_vm2, %v1935_v38 }
  0xca   : > { %4610 = vmatmul.mubr.msk.bf16.vlgmr.msra.gmra.mxu1 %vm450_vm2, %v2509_v42  ;;  %4591 = vmatprep.mubr.msk.bf16.mxu0 %vm450_vm2, %v5408_v50  ;;  %v4166_v50 = vcombine.low %v2662_v48, %v5559_v14  ;;  %v2948_v48 = vshrl.u32 %v5625_v23, 16 }
  0xcb   : > { %4644 = vmatpush3.bf16.msra.mxu1 %v2990_v43  ;;  %4613 = vmatprep.mubr.msk.bf16.mxu1 %vm450_vm2, %v2511_v46  ;;  %v2939_v46 = vshrl.u32 %v5620_v28, 16 }
  0xcc   : > { %4748 = vmatprep.subr.msk.bf16.mxu1 %vm475_vm0, %v5549_v10  ;;  %v2886_v30 = vshrl.u32 %v4166_v50, 16  ;;  %v2889_v60 = vshll.u32 %v4166_v50, 16  ;;  %v2723_v20 = vrot.slane %v4166_v50, 1  ;;  %v3152_v50 = vsel %vm475_vm0, %v5572_v52, 0 }
  0xce   : > { %v2888_v2 = vrot.slane %v2886_v30, 1  ;;  %v2891_v45 = vrot.slane %v2889_v60, 2  ;;  %v2725_v29 = vsel %vm698_vm4, %v2723_v20, %v2724_v22  ;;  %v5649_v60 = vld [vmem:[#allocation2 + $0x88] ss:$0 sps:$4 sm:$0x33]  }
  0xcf   : > { %v2960_v15 = vshll.u32 %v5649_v60, 16 }
  0xd0   : > { %v2892_v8 = vor.u32 %v2891_v45, %v2888_v2 }
  0xd1   : > { %4592 = vmatmul.mubr.msk.bf16.vlgmr.msra.gmra.mxu0 %vm450_vm2, %v5423_v57  ;;  %v2894_v57 = vshrl.u32 %v5565_v53, 16  ;;  %v2962_v26 = vrot.slane %v2960_v15, 2  ;;  %v3111_v15 = vrot.slane %v5565_v53, 2 }
  0xd2   : > { %4626 = vmatpush3.bf16.msra.mxu0 %v2765_v51  ;;  %4614 = vmatmul.mubr.msk.bf16.gmra.mxu1 %vm450_vm2, %v2513_v32  ;;  %v2951_v51 = vshll.u32 %v5625_v23, 16 }
  0xd3   : > { %4595 = vmatprep.mubr.msk.bf16.mxu0 %vm450_vm2, %v5442_v9  ;;  %4617 = vmatprep.mubr.msk.bf16.mxu1 %vm450_vm2, %v2515_v25  ;;  %v5586_v9 = vld [vmem:[#allocation2 + $0x58] sm:$0xff]   ;;  %v2896_v34 = vrot.slane %v2894_v57, 1 }
  0xd4   : > { %4747 = vmatprep.subr.msk.bf16.mxu0 %vm475_vm0, %v5572_v52  ;;  %v2903_v7 = vshrl.u32 %v5586_v9, 16  ;;  %v2906_v56 = vshll.u32 %v5586_v9, 16  ;;  %v2726_v42 = vrot.slane %v5586_v9, 1  ;;  %v2953_v2 = vrot.slane %v2951_v51, 2  ;;  %v5657_v52 = vld [vmem:[%s6445_s2 + $0xe] sm:$0x3] }
  0xd5   : > { %v2900_v44 = vor.u32 %v2899_v41, %v2896_v34 }
  0xd6   : > { %v2905_v4 = vrot.slane %v2903_v7, 1  ;;  %v2908_v18 = vrot.slane %v2906_v56, 2  ;;  %v2727_v25 = vsel %vm698_vm4, %v2724_v22, %v2726_v42  ;;  %v2729_v62 = vsel %vm698_vm4, %v2726_v42, %v2728_v31 }
  0xd8   : > { %v2909_v21 = vor.u32 %v2908_v18, %v2905_v4 }
  0xd9   : > { %4596 = vmatmul.mubr.msk.bf16.gmra.mxu0 %vm450_vm2, %v5446_v13  ;;  %v2521_v13 = vsel %vm698_vm4, %v2518_v27, %v2520_v6  ;;  %v2941_v27 = vrot.slane %v2939_v46, 1  ;;  %v2730_v6 = vrot.slane %v5602_v19, 1 }
  0xda   : > { %4618 = vmatmul.mubr.msk.bf16.gmra.mxu1 %vm450_vm2, %v2517_v24  ;;  %4599 = vmatprep.mubr.msk.bf16.mxu0 %vm450_vm2, %v5460_v12  ;;  %v2901_v12 = vsel %vm1081_vm6, %v2892_v8, %v2900_v44  ;;  %v2910_v55 = vsel %vm1081_vm6, %v2900_v44, %v2909_v21  ;;  %v2919_v3 = vsel %vm1081_vm6, %v2909_v21, %v2918_v58  ;;  %v2732_v8 = vrot.slane %v5605_v63, 1 }
  0xdb   : > { %4621 = vmatprep.mubr.msk.bf16.mxu1 %vm450_vm2, %v2519_v0  ;;  %v2950_v0 = vrot.slane %v2948_v48, 1  ;;  %v2957_v44 = vshrl.u32 %v5649_v60, 16  ;;  %v2731_v21 = vsel %vm698_vm4, %v2728_v31, %v2730_v6 }
  0xdc   : > { %v2733_v11 = vsel %vm698_vm4, %v2730_v6, %v2732_v8 }
  0xdd   : > { %v2954_v4 = vor.u32 %v2953_v2, %v2950_v0 }
  0xe1   : > { %4600 = vmatmul.mubr.msk.bf16.gmra.mxu0 %vm450_vm2, %v5464_v40  ;;  %v2933_v40 = vshll.u32 %v5605_v63, 16 }
  0xe2   : > { %4622 = vmatmul.mubr.msk.bf16.gmra.mxu1 %vm450_vm2, %v2521_v13  ;;  %4603 = vmatprep.mubr.msk.bf16.mxu0 %vm450_vm2, %v5485_v54  ;;  %v2923_v54 = vrot.slane %v2921_v49, 1 }
  0xe3   : > { %4645 = vmatprep.mubr.msk.bf16.mxu1 %vm450_vm2, %v2901_v12  ;;  %v2935_v59 = vrot.slane %v2933_v40, 2  ;;  %v3267_v12 = vld [vmem:[#allocation2 + $0x50] sm:$0xc] }
  0xe4   : > { %v2927_v43 = vor.u32 %v2926_v33, %v2923_v54  ;;  %v5683_v54 = vcombine.low %v3267_v12, %v5672_v1  ;;  %v5685_v33 = vld [vmem:[#allocation2 + $0x58] sm:$0xff]  }
  0xe5   : > { %v2936_v47 = vor.u32 %v2935_v59, %v2932_v35  ;;  %v2734_v59 = vrot.slane %v5620_v28, 1  ;;  %v3329_v31 = vrot.slane %v5685_v33, 2 }
  0xe6   : > { %v2928_v39 = vsel %vm1081_vm6, %v2918_v58, %v2927_v43  ;;  %v2959_v58 = vrot.slane %v2957_v44, 1 }
  0xe7   : > { %v2937_v24 = vsel %vm1081_vm6, %v2927_v43, %v2936_v47  ;;  %v2736_v43 = vrot.slane %v5625_v23, 1 }
  0xe8   : > { %v2963_v42 = vor.u32 %v2962_v26, %v2959_v58  ;;  %v5728_v26 = vld [vmem:[#allocation2 + $0x70] sm:$0xff]  }
  0xe9   : > { %4604 = vmatmul.mubr.msk.bf16.gmra.mxu0 %vm450_vm2, %v5489_v61  ;;  %v2942_v61 = vshll.u32 %v5620_v28, 16 }
  0xea   : > { %v4431_v38 = vpop.f32.mrf.mxu1  ;;  %4646 = vmatmul.mubr.msk.bf16.vlgmr.msra.gmra.mxu1 %vm450_vm2, %v2910_v55  ;;  %4627 = vmatprep.mubr.msk.bf16.mxu0 %vm450_vm2, %v2725_v29 }
  0xeb   : > { %4680 = vmatpush3.bf16.msra.mxu1 %v3370_v36  ;;  %4649 = vmatprep.mubr.msk.bf16.mxu1 %vm450_vm2, %v2919_v3  ;;  %v2944_v30 = vrot.slane %v2942_v61, 2 }
  0xec   : > { %v629_v10 = vpop.f32.mrf.mxu1  ;;  %4750 = vmatprep.subr.msk.bf16.mxu1 %vm475_vm0, %v5632_v37 }
  0xed   : > { %v2945_v56 = vor.u32 %v2944_v30, %v2941_v27  ;;  %v2964_v27 = vsel %vm1081_vm6, %v2954_v4, %v2963_v42  ;;  %v2737_v30 = vsel %vm698_vm4, %v2734_v59, %v2736_v43 }
  0xee   : > { %v4432_v32 = vpop.f32.mrf.mxu1 }
  0xef   : > { %v2946_v49 = vsel %vm1081_vm6, %v2936_v47, %v2945_v56  ;;  %v2955_v29 = vsel %vm1081_vm6, %v2945_v56, %v2954_v4  ;;  %v3105_v47 = vld [vmem:[#allocation2 + $0x48] sm:$0xc] }
  0xf0   : > { %v632_v57 = vpop.f32.mrf.mxu1 }
  0xf1   : > { %v4413_v45 = vpop.f32.mrf.mxu0  ;;  %4628 = vmatmul.mubr.msk.bf16.vlgmr.msra.gmra.mxu0 %vm450_vm2, %v2727_v25  ;;  %v2735_v25 = vsel %vm698_vm4, %v2732_v8, %v2734_v59 }
  0xf2   : > { %v5659_v34 = vadd.f32 %v4431_v38, %v4413_v45  ;;  %4662 = vmatpush3.bf16.msra.mxu0 %v3152_v50  ;;  %v4435_v41 = vpop.f32.mrf.mxu1  ;;  %4650 = vmatmul.mubr.msk.bf16.gmra.mxu1 %vm450_vm2, %v2928_v39  ;;  %v4841_v50 = vld [vmem:[#allocation2 + $0x88] ss:$0 sps:$4 sm:$0x11]  }
  0xf3   : > { %v513_v7 = vpop.f32.mrf.mxu0  ;;  %4631 = vmatprep.mubr.msk.bf16.mxu0 %vm450_vm2, %v2729_v62  ;;  %4653 = vmatprep.mubr.msk.bf16.mxu1 %vm450_vm2, %v2937_v24  ;;  %v4194_v62 = vcombine.low %v3105_v47, %v5559_v14  ;;  %v5710_v45 = vld [vmem:[#allocation2 + $0x68] sm:$0xff]   ;;  %v2738_v56 = vrot.slane %v4841_v50, 1  ;;  %v3115_v47 = vrot.slane %v5588_v5, 2 }
  0xf4   : > { %v5668_v17 = vadd.f32 %v629_v10, %v513_v7  ;;  %v645_v13 = vpop.f32.mrf.mxu1  ;;  %4749 = vmatprep.subr.msk.bf16.mxu0 %vm475_vm0, %v5657_v52  ;;  %v3328_v10 = vrot.slane %v5683_v54, 2 }
  0xf5   : > { %v4414_v18 = vpop.f32.mrf.mxu0  ;;  %v3110_v44 = vrot.slane %v4194_v62, 2  ;;  %v5755_v62 = vld [vmem:[#allocation2 + $0x80] sm:$0xff]  }
  0xf6   : > { %v5674_v16 = vadd.f32 %v4432_v32, %v4414_v18  ;;  %v4436_v20 = vpop.f32.mrf.mxu1  ;;  %v3330_v2 = vsel %vm1308_vm5, %v3328_v10, %v3329_v31  ;;  %v3333_v18 = vrot.slane %v5710_v45, 2 }
  0xf7   : > { %v516_v22 = vpop.f32.mrf.mxu0  ;;  %v3112_v58 = vsel %vm1308_vm5, %v3110_v44, %v3111_v15 }
  0xf8   : > { %v5679_v40 = vadd.f32 %v632_v57, %v516_v22  ;;  %v648_v55 = vpop.f32.mrf.mxu1  ;;  %v5704_v57 = vld [vmem:[#allocation2 + $0x60] sm:$0xff]   ;;  %v2739_v22 = vsel %vm698_vm4, %v2736_v43, %v2738_v56  ;;  %v3113_v43 = vrot.slane %v5586_v9, 2 }
  0xf9   : > { %v4417_v36 = vpop.f32.mrf.mxu0  ;;  %4632 = vmatmul.mubr.msk.bf16.gmra.mxu0 %vm450_vm2, %v2731_v21  ;;  %v3331_v14 = vrot.slane %v5704_v57, 2 }
  0xfa   : > { %v5688_v3 = vadd.f32 %v4435_v41, %v4417_v36  ;;  %v4439_v35 = vpop.f32.mrf.mxu1  ;;  %4654 = vmatmul.mubr.msk.bf16.gmra.mxu1 %vm450_vm2, %v2946_v49  ;;  %4635 = vmatprep.mubr.msk.bf16.mxu0 %vm450_vm2, %v2733_v11  ;;  %v3116_v5 = vsel %vm1308_vm5, %v3113_v43, %v3115_v47 }
  0xfb   : > { %v529_v38 = vpop.f32.mrf.mxu0  ;;  %4657 = vmatprep.mubr.msk.bf16.mxu1 %vm450_vm2, %v2955_v29  ;;  %v3332_v11 = vsel %vm1308_vm5, %v3329_v31, %v3331_v14  ;;  %v3757_v29 = vsel %vm475_vm0, %v5632_v37, 0  ;;  %v3334_v36 = vsel %vm1308_vm5, %v3331_v14, %v3333_v18  ;;  %v3335_v37 = vrot.slane %v5728_v26, 2 }
  0xfc   : > { %v5695_v46 = vadd.f32 %v645_v13, %v529_v38  ;;  %v661_v61 = vpop.f32.mrf.mxu1  ;;  %v3117_v14 = vrot.slane %v5602_v19, 2 }
  0xfd   : > { %v4418_v48 = vpop.f32.mrf.mxu0 }
  0xfe   : > { %v5699_v51 = vadd.f32 %v4436_v20, %v4418_v48  ;;  %v4440_v32 = vpop.f32.mrf.mxu1 }
  0xff   : > { %v532_v39 = vpop.f32.mrf.mxu0 }
 0x100   : > { %v5707_v24 = vadd.f32 %v648_v55, %v532_v39  ;;  %v664_v0 = vpop.f32.mrf.mxu1  ;;  %v3114_v39 = vsel %vm1308_vm5, %v3111_v15, %v3113_v43  ;;  %v3339_v15 = vrot.slane %v5755_v62, 2 }
 0x101   : > { %v4421_v41 = vpop.f32.mrf.mxu0  ;;  %4636 = vmatmul.mubr.msk.bf16.gmra.mxu0 %vm450_vm2, %v2735_v25 }
 0x102   : > { %v5713_v6 = vadd.f32 %v4439_v35, %v4421_v41  ;;  %v4443_v7 = vpop.f32.mrf.mxu1  ;;  %4658 = vmatmul.mubr.msk.bf16.gmra.mxu1 %vm450_vm2, %v2964_v27  ;;  %4639 = vmatprep.mubr.msk.bf16.mxu0 %vm450_vm2, %v2737_v30  ;;  %v5735_v35 = vld [vmem:[#allocation2 + $0x78] sm:$0xff]   ;;  %v3595_v27 = vsel %vm475_vm0, %v5657_v52, 0  ;;  %v3336_v30 = vsel %vm1308_vm5, %v3333_v18, %v3335_v37 }
 0x103   : > { %v545_v8 = vpop.f32.mrf.mxu0  ;;  %4681 = vmatprep.mubr.msk.bf16.mxu1 %vm450_vm2, %v3330_v2  ;;  %v3337_v48 = vrot.slane %v5735_v35, 2 }
 0x104   : > { %v5720_v13 = vadd.f32 %v661_v61, %v545_v8  ;;  %v677_v4 = vpop.f32.mrf.mxu1 }
 0x105   : > { %v4422_v12 = vpop.f32.mrf.mxu0  ;;  %v3338_v41 = vsel %vm1308_vm5, %v3335_v37, %v3337_v48 }
 0x106   : > { %v5723_v20 = vadd.f32 %v4440_v32, %v4422_v12  ;;  %v4444_v21 = vpop.f32.mrf.mxu1 }
 0x107   : > { %v548_v49 = vpop.f32.mrf.mxu0 }
 0x108   : > { %v5730_v55 = vadd.f32 %v664_v0, %v548_v49  ;;  %v680_v53 = vpop.f32.mrf.mxu1  ;;  %v3710_v49 = vld [vmem:[#allocation2 + $0x50] sm:$0x8] }
 0x109   : > { %v4425_v59 = vpop.f32.mrf.mxu0  ;;  %4640 = vmatmul.mubr.msk.bf16.gmra.mxu0 %vm450_vm2, %v2739_v22 }
 0x10a   : > { %v5738_v38 = vadd.f32 %v4443_v7, %v4425_v59  ;;  %v4467_v42 = vpop.f32.mrf.mxu1  ;;  %4682 = vmatmul.mubr.msk.bf16.vlgmr.msra.gmra.mxu1 %vm450_vm2, %v3332_v11  ;;  %4663 = vmatprep.mubr.msk.bf16.mxu0 %vm450_vm2, %v3112_v58  ;;  %v5761_v7 = vld [vmem:[#allocation2 + $0x88] sm:$0xff]   ;;  %v3118_v58 = vsel %vm1308_vm5, %v3115_v47, %v3117_v14 }
 0x10b   : > { %v561_v61 = vpop.f32.mrf.mxu0  ;;  %4716 = vmatpush3.bf16.msra.mxu1 %v3757_v29  ;;  %4685 = vmatprep.mubr.msk.bf16.mxu1 %vm450_vm2, %v3334_v36 }
 0x10c   : > { %v5745_v10 = vadd.f32 %v677_v4, %v561_v61  ;;  %v996_v31 = vpop.f32.mrf.mxu1  ;;  %v3119_v4 = vrot.slane %v5605_v63, 2  ;;  %v3340_v63 = vsel %vm1308_vm5, %v3337_v48, %v3339_v15  ;;  %v4232_v61 = vcombine.low %v3710_v49, %v5672_v1 }
 0x10d   : > { %v4426_v32 = vpop.f32.mrf.mxu0  ;;  %v3123_v48 = vrot.slane %v5625_v23, 2 }
 0x10e   : > { %v5749_v25 = vadd.f32 %v4444_v21, %v4426_v32  ;;  %v4468_v50 = vpop.f32.mrf.mxu1 }
 0x10f   : > { %v564_v9 = vpop.f32.mrf.mxu0 }
 0x110   : > { %v5757_v0 = vadd.f32 %v680_v53, %v564_v9  ;;  %v999_v2 = vpop.f32.mrf.mxu1  ;;  %v4850_v53 = vld [vmem:[#allocation2 + $0x90] ss:$0 sps:$4 sm:$0x33]   ;;  %v3494_v9 = vshll.u32 %v5683_v54, 16 }
 0x111   : > { %v4449_v56 = vpop.f32.mrf.mxu0  ;;  %4664 = vmatmul.mubr.msk.bf16.vlgmr.msra.gmra.mxu0 %vm450_vm2, %v3114_v39 }
 0x112   : > { %v842_v8 = vadd.f32 %v4449_v56, %v5659_v34  ;;  %4698 = vmatpush3.bf16.msra.mxu0 %v3595_v27  ;;  %v4471_v52 = vpop.f32.mrf.mxu1  ;;  %4686 = vmatmul.mubr.msk.bf16.gmra.mxu1 %vm450_vm2, %v3336_v30  ;;  %v3341_v34 = vrot.slane %v5761_v7, 2 }
 0x113   : > { %v777_v44 = vpop.f32.mrf.mxu0  ;;  %4667 = vmatprep.mubr.msk.bf16.mxu0 %vm450_vm2, %v3116_v5  ;;  %4689 = vmatprep.mubr.msk.bf16.mxu1 %vm450_vm2, %v3338_v41  ;;  %v3715_v5 = vrot.slane %v4232_v61, 3  ;;  %v3716_v41 = vrot.slane %v5685_v33, 3  ;;  %v3517_v61 = vshrl.u32 %v5710_v45, 16 }
 0x114   : > { %v840_v18 = vadd.f32 %v777_v44, %v5668_v17  ;;  %v1012_v12 = vpop.f32.mrf.mxu1  ;;  %v5773_v21 = vadd.f32 %v4467_v42, %v842_v8  ;;  %v3120_v17 = vsel %vm1308_vm5, %v3117_v14, %v3119_v4  ;;  %v3342_v42 = vsel %vm1308_vm5, %v3339_v15, %v3341_v34 }
 0x115   : > { %v4450_v22 = vpop.f32.mrf.mxu0 }
 0x116   : > { %v843_v19 = vadd.f32 %v4450_v22, %v5674_v16  ;;  %v4472_v11 = vpop.f32.mrf.mxu1  ;;  %v5777_v29 = vadd.f32 %v996_v31, %v840_v18  ;;  %v3121_v31 = vrot.slane %v5620_v28, 2  ;;  %v3499_v28 = vshrl.u32 %v5685_v33, 16 }
 0x117   : > { %v780_v36 = vpop.f32.mrf.mxu0  ;;  %v3496_v22 = vrot.slane %v3494_v9, 3 }
 0x118   : > { %v841_v59 = vadd.f32 %v780_v36, %v5679_v40  ;;  %v1015_v43 = vpop.f32.mrf.mxu1  ;;  %v5784_v37 = vadd.f32 %v4468_v50, %v843_v19  ;;  %v3343_v40 = vrot.slane %v4850_v53, 2  ;;  %v3491_v50 = vshrl.u32 %v5683_v54, 16 }
 0x119   : > { %v4453_v16 = vpop.f32.mrf.mxu0  ;;  %4668 = vmatmul.mubr.msk.bf16.gmra.mxu0 %vm450_vm2, %v3118_v58  ;;  %v3122_v56 = vsel %vm1308_vm5, %v3119_v4, %v3121_v31  ;;  %v3124_v44 = vsel %vm1308_vm5, %v3121_v31, %v3123_v48  ;;  %v3501_v49 = vrot.slane %v3499_v28, 2  ;;  %v3717_v58 = vsel %vm1918_vm8, %v3715_v5, %v3716_v41 }
 0x11a   : > { %v846_v47 = vadd.f32 %v4453_v16, %v5688_v3  ;;  %v4475_v32 = vpop.f32.mrf.mxu1  ;;  %4690 = vmatmul.mubr.msk.bf16.gmra.mxu1 %vm450_vm2, %v3340_v63  ;;  %4671 = vmatprep.mubr.msk.bf16.mxu0 %vm450_vm2, %v3120_v17  ;;  %v5792_v39 = vadd.f32 %v999_v2, %v841_v59  ;;  %v3502_v3 = vshll.u32 %v5685_v33, 16  ;;  %v3344_v54 = vsel %vm1308_vm5, %v3341_v34, %v3343_v40 }
 0x11b   : > { %v793_v1 = vpop.f32.mrf.mxu0  ;;  %4693 = vmatprep.mubr.msk.bf16.mxu1 %vm450_vm2, %v3342_v42  ;;  %v3508_v34 = vshrl.u32 %v5704_v57, 16  ;;  %v3718_v63 = vrot.slane %v5704_v57, 3  ;;  %v3519_v5 = vrot.slane %v3517_v61, 2 }
 0x11c   : > { %v844_v27 = vadd.f32 %v793_v1, %v5695_v46  ;;  %v1028_v30 = vpop.f32.mrf.mxu1  ;;  %v5801_v23 = vadd.f32 %v4471_v52, %v846_v47  ;;  %v3493_v46 = vrot.slane %v3491_v50, 2  ;;  %v3504_v19 = vrot.slane %v3502_v3, 3 }
 0x11d   : > { %v4454_v2 = vpop.f32.mrf.mxu0  ;;  %v3720_v47 = vrot.slane %v5710_v45, 3 }
 0x11e   : > { %v847_v8 = vadd.f32 %v4454_v2, %v5699_v51  ;;  %v4476_v14 = vpop.f32.mrf.mxu1  ;;  %v5807_v15 = vadd.f32 %v1012_v12, %v844_v27  ;;  %v3511_v12 = vshll.u32 %v5704_v57, 16  ;;  %v3497_v59 = vor.u32 %v3496_v22, %v3493_v46 }
 0x11f   : > { %v796_v18 = vpop.f32.mrf.mxu0  ;;  %v3505_v42 = vor.u32 %v3504_v19, %v3501_v49  ;;  %v3510_v57 = vrot.slane %v3508_v34, 2  ;;  %v3719_v27 = vsel %vm1918_vm8, %v3716_v41, %v3718_v63  ;;  %v3526_v41 = vshrl.u32 %v5728_v26, 16 }
 0x120   : > { %v845_v33 = vadd.f32 %v796_v18, %v5707_v24  ;;  %v1031_v52 = vpop.f32.mrf.mxu1  ;;  %v5811_v4 = vadd.f32 %v4472_v11, %v847_v8  ;;  %v3125_v24 = vrot.slane %v5649_v60, 2  ;;  %v3722_v18 = vrot.slane %v5728_v26, 3 }
 0x121   : > { %v4457_v51 = vpop.f32.mrf.mxu0  ;;  %4672 = vmatmul.mubr.msk.bf16.gmra.mxu0 %vm450_vm2, %v3122_v56  ;;  %v3721_v56 = vsel %vm1918_vm8, %v3718_v63, %v3720_v47  ;;  %v3538_v22 = vshll.u32 %v5735_v35, 16 }
 0x122   : > { %v850_v53 = vadd.f32 %v4457_v51, %v5713_v6  ;;  %v4479_v36 = vpop.f32.mrf.mxu1  ;;  %4694 = vmatmul.mubr.msk.bf16.gmra.mxu1 %vm450_vm2, %v3344_v54  ;;  %4675 = vmatprep.mubr.msk.bf16.mxu0 %vm450_vm2, %v3124_v44  ;;  %v5821_v11 = vadd.f32 %v1015_v43, %v845_v33  ;;  %v3520_v6 = vshll.u32 %v5710_v45, 16  ;;  %v3513_v43 = vrot.slane %v3511_v12, 3 }
 0x123   : > { %v809_v17 = vpop.f32.mrf.mxu0  ;;  %4717 = vmatprep.mubr.msk.bf16.mxu1 %vm450_vm2, %v3717_v58  ;;  %v3126_v9 = vsel %vm1308_vm5, %v3123_v48, %v3125_v24  ;;  %v3724_v33 = vrot.slane %v5735_v35, 3 }
 0x124   : > { %v848_v16 = vadd.f32 %v809_v17, %v5720_v13  ;;  %v1044_v31 = vpop.f32.mrf.mxu1  ;;  %v5828_v40 = vadd.f32 %v4475_v32, %v850_v53  ;;  %v3506_v13 = vsel %vm1691_vm7, %v3497_v59, %v3505_v42  ;;  %v3522_v2 = vrot.slane %v3520_v6, 3 }
 0x125   : > { %v4458_v60 = vpop.f32.mrf.mxu0  ;;  %v3514_v48 = vor.u32 %v3513_v43, %v3510_v57  ;;  %v3726_v43 = vrot.slane %v5755_v62, 3 }
 0x126   : > { %v851_v1 = vadd.f32 %v4458_v60, %v5723_v20  ;;  %v4480_v50 = vpop.f32.mrf.mxu1  ;;  %v5832_v28 = vadd.f32 %v1028_v30, %v848_v16  ;;  %v3523_v46 = vor.u32 %v3522_v2, %v3519_v5 }
 0x127   : > { %v812_v3 = vpop.f32.mrf.mxu0  ;;  %v3515_v51 = vsel %vm1691_vm7, %v3505_v42, %v3514_v48  ;;  %v3725_v42 = vsel %vm1918_vm8, %v3722_v18, %v3724_v33 }
 0x128   : > { %v849_v45 = vadd.f32 %v812_v3, %v5730_v55  ;;  %v1047_v32 = vpop.f32.mrf.mxu1  ;;  %v5838_v8 = vadd.f32 %v4476_v14, %v851_v1  ;;  %v3529_v55 = vshll.u32 %v5728_v26, 16  ;;  %v3528_v26 = vrot.slane %v3526_v41, 2 }
 0x129   : > { %v4461_v20 = vpop.f32.mrf.mxu0  ;;  %4676 = vmatmul.mubr.msk.bf16.gmra.mxu0 %vm450_vm2, %v3126_v9  ;;  %v3524_v17 = vsel %vm1691_vm7, %v3514_v48, %v3523_v46  ;;  %v3556_v9 = vshll.u32 %v5761_v7, 16 }
 0x12a   : > { %v854_v30 = vadd.f32 %v4461_v20, %v5738_v38  ;;  %v5842_v54 = vpop.f32.mrf.mxu1  ;;  %4718 = vmatmul.mubr.msk.bf16.vlgmr.msra.gmra.mxu1 %vm450_vm2, %v3719_v27  ;;  %4699 = vmatprep.mubr.msk.bf16.mxu0 %vm450_vm2, %v3506_v13  ;;  %v5848_v44 = vadd.f32 %v1031_v52, %v849_v45  ;;  %v3535_v38 = vshrl.u32 %v5735_v35, 16  ;;  %v3531_v53 = vrot.slane %v3529_v55, 3 }
 0x12b   : > { %v825_v14 = vpop.f32.mrf.mxu0  ;;  %4721 = vmatprep.mubr.msk.bf16.mxu1 %vm450_vm2, %v3721_v56  ;;  %v3540_v35 = vrot.slane %v3538_v22, 3  ;;  %v3728_v27 = vrot.slane %v5761_v7, 3  ;;  %v4851_v56 = vld [vmem:[#allocation2 + $0x90] ss:$0 sps:$4 sm:$0x77]   ;;  %v3558_v41 = vrot.slane %v3556_v9, 3 }
 0x12c   : > { %v852_v49 = vadd.f32 %v825_v14, %v5745_v10  ;;  %v5855_v19 = vpop.f32.mrf.mxu1  ;;  %v5858_v58 = vadd.f32 %v4479_v36, %v854_v30  ;;  %v3723_v10 = vsel %vm1918_vm8, %v3720_v47, %v3722_v18  ;;  %v3537_v59 = vrot.slane %v3535_v38, 2 }
 0x12d   : > { %v4462_v52 = vpop.f32.mrf.mxu0  ;;  %v3544_v47 = vshrl.u32 %v5755_v62, 16  ;;  %v3562_v38 = vshrl.u32 %v4851_v56, 16  ;;  %v3565_v22 = vshll.u32 %v4851_v56, 16 }
 0x12e   : > { %v855_v34 = vadd.f32 %v4462_v52, %v5749_v25  ;;  %v5862_v12 = vpop.f32.mrf.mxu1  ;;  %v5864_v24 = vadd.f32 %v1044_v31, %v852_v49  ;;  %v3532_v31 = vor.u32 %v3531_v53, %v3528_v26  ;;  %v3541_v1 = vor.u32 %v3540_v35, %v3537_v59 }
 0x12f   : > { %v828_v63 = vpop.f32.mrf.mxu0  ;;  %v3546_v45 = vrot.slane %v3544_v47, 2 }
 0x130   : > { %6450 = vst [vmem:[#allocation6_spill] sm:$0xff] %v5864_v24  ;;  %v853_v36 = vadd.f32 %v828_v63, %v5757_v0  ;;  %v5869_v61 = vpop.f32.mrf.mxu1  ;;  %v5872_v25 = vadd.f32 %v4480_v50, %v855_v34  ;;  %v3547_v0 = vshll.u32 %v5755_v62, 16  ;;  %v3553_v50 = vshrl.u32 %v5761_v7, 16 }
 0x131   : > { %v5874_v6 = vpop.f32.mrf.mxu0  ;;  %4700 = vmatmul.mubr.msk.bf16.vlgmr.msra.gmra.mxu0 %vm450_vm2, %v3515_v51  ;;  %v3533_v2 = vsel %vm1691_vm7, %v3523_v46, %v3532_v31  ;;  %v3727_v62 = vsel %vm1918_vm8, %v3724_v33, %v3726_v43  ;;  %v3542_v48 = vsel %vm1691_vm7, %v3532_v31, %v3541_v1  ;;  %v3729_v7 = vsel %vm1918_vm8, %v3726_v43, %v3728_v27 }
 0x132   : > { %6451 = vst [vmem:[#allocation7_spill] sm:$0xff] %v5872_v25  ;;  %v5877_v16 = vpop.f32.mrf.mxu1  ;;  %4722 = vmatmul.mubr.msk.bf16.gmra.mxu1 %vm450_vm2, %v3723_v10  ;;  %4703 = vmatprep.mubr.msk.bf16.mxu0 %vm450_vm2, %v3524_v17  ;;  %v5883_v60 = vadd.f32 %v1047_v32, %v853_v36  ;;  %v3549_v32 = vrot.slane %v3547_v0, 3  ;;  %v3555_v30 = vrot.slane %v3553_v50, 2  ;;  %v3730_v33 = vrot.slane %v4851_v56, 3 }
 0x133   : > { %v5885_v57 = vpop.f32.mrf.mxu0  ;;  %4725 = vmatprep.mubr.msk.bf16.mxu1 %vm450_vm2, %v3725_v42  ;;  %v3564_v63 = vrot.slane %v3562_v38, 2  ;;  %v3567_v10 = vrot.slane %v3565_v22, 3 }
 0x134   : > { %6452 = vst [vmem:[#allocation8_spill] sm:$0xff] %v5883_v60  ;;  %v5891_v3 = vpop.f32.mrf.mxu1  ;;  %v3550_v46 = vor.u32 %v3549_v32, %v3546_v45  ;;  %v3559_v52 = vor.u32 %v3558_v41, %v3555_v30  ;;  %v3731_v59 = vsel %vm1918_vm8, %v3728_v27, %v3730_v33 }
 0x135   : > { %v5894_v13 = vpop.f32.mrf.mxu0  ;;  %v3568_v47 = vor.u32 %v3567_v10, %v3564_v63 }
 0x136   : > { %v5896_v5 = vpop.f32.mrf.mxu1  ;;  %v3551_v53 = vsel %vm1691_vm7, %v3541_v1, %v3550_v46  ;;  %v3560_v35 = vsel %vm1691_vm7, %v3550_v46, %v3559_v52 }
 0x137   : > { %v5899_v20 = vpop.f32.mrf.mxu0  ;;  %v3569_v9 = vsel %vm1691_vm7, %v3559_v52, %v3568_v47 }
 0x138   : > { %v5903_v55 = vpop.f32.mrf.mxu1 }
 0x139   : > { %v5906_v14 = vpop.f32.mrf.mxu0  ;;  %4704 = vmatmul.mubr.msk.bf16.gmra.mxu0 %vm450_vm2, %v3533_v2 }
 0x13a   : > { %v5909_v18 = vpop.f32.mrf.mxu1  ;;  %4726 = vmatmul.mubr.msk.bf16.gmra.mxu1 %vm450_vm2, %v3727_v62  ;;  %4707 = vmatprep.mubr.msk.bf16.mxu0 %vm450_vm2, %v3542_v48 }
 0x13b   : > { %v5913_v49 = vpop.f32.mrf.mxu0  ;;  %4729 = vmatprep.mubr.msk.bf16.mxu1 %vm450_vm2, %v3729_v7 }
 0x13c   : > { %v5916_v51 = vpop.f32.mrf.mxu1 }
 0x13d   : > { %v5918_v34 = vpop.f32.mrf.mxu0 }
 0x13e   : > { %v5920_v26 = vpop.f32.mrf.mxu1 }
 0x13f   : > { %v5923_v17 = vpop.f32.mrf.mxu0 }
 0x140   : > { %v5927_v36 = vpop.f32.mrf.mxu1 }
 0x141   : > { %6453 = vst [vmem:[#allocation9_spill] sm:$0xff] %v5927_v36  ;;  %v5929_v42 = vpop.f32.mrf.mxu0  ;;  %4708 = vmatmul.mubr.msk.bf16.gmra.mxu0 %vm450_vm2, %v3551_v53 }
 0x142   : > { %v5932_v31 = vpop.f32.mrf.mxu1  ;;  %4730 = vmatmul.mubr.msk.bf16.gmra.mxu1 %vm450_vm2, %v3731_v59  ;;  %4711 = vmatprep.mubr.msk.bf16.mxu0 %vm450_vm2, %v3560_v35 }
 0x143   : > { %6454 = vst [vmem:[#allocation10_spill] sm:$0xff] %v5932_v31  ;;  %v5936_v0 = vpop.f32.mrf.mxu0 }
 0x144   : > { %v5938_v43 = vpop.f32.mrf.mxu1 }
 0x145   : > { %6455 = vst [vmem:[#allocation11_spill] sm:$0xff] %v5938_v43  ;;  %v5940_v1 = vpop.f32.mrf.mxu0 }
 0x146   : > { %v5942_v50 = vpop.f32.mrf.mxu1 }
 0x147   : > { %6456 = vst [vmem:[#allocation12_spill] sm:$0xff] %v5942_v50  ;;  %v5945_v27 = vpop.f32.mrf.mxu0 }
 0x148   : > { %v5947_v2 = vpop.f32.mrf.mxu1 }
 0x149   : > { %6457 = vst [vmem:[#allocation13_spill] sm:$0xff] %v5947_v2  ;;  %v5949_v45 = vpop.f32.mrf.mxu0  ;;  %4712 = vmatmul.mubr.msk.bf16.gmra.mxu0 %vm450_vm2, %v3569_v9 }
 0x14a   : > { %v4539_v32 = vpop.f32.mrf.mxu1 }
 0x14b   : > { %v5952_v56 = vpop.f32.mrf.mxu0 }
 0x14c   : > { %6458 = vst [vmem:[#allocation14_spill] sm:$0xff] %v5952_v56  ;;  %v1833_v62 = vpop.f32.mrf.mxu1 }
 0x14d   : > { %v5954_v48 = vpop.f32.mrf.mxu0 }
 0x14e   : > { %6459 = vst [vmem:[#allocation15_spill] sm:$0xff] %v5954_v48  ;;  %v5956_v30 = vpop.f32.mrf.mxu1 }
 0x14f   : > { %v5958_v41 = vpop.f32.mrf.mxu0 }
 0x150   : > { %6460 = vst [vmem:[#allocation16_spill] sm:$0xff] %v5958_v41  ;;  %v5960_v7 = vpop.f32.mrf.mxu1 }
 0x151   : > { %v4521_v46 = vpop.f32.mrf.mxu0 }
 0x152   : > { %v5962_v38 = vpop.f32.mrf.mxu1 }
 0x153   : > { %v1606_v22 = vpop.f32.mrf.mxu0 }
 0x154   : > { %v5964_v33 = vpop.f32.mrf.mxu1 }
 0x155   : > { %v4522_v52 = vpop.f32.mrf.mxu0 }
 0x156   : > { %v5966_v53 = vpop.f32.mrf.mxu1 }
 0x157   : > { %v1609_v63 = vpop.f32.mrf.mxu0 }
 0x158   : > { %v5968_v10 = vpop.f32.mrf.mxu1 }
 0x159   : > { %v4525_v59 = vpop.f32.mrf.mxu0 }
 0x15a   : > { %v5970_v35 = vpop.f32.mrf.mxu1 }
 0x15b   : > { %6461 = vst [vmem:[#allocation17_spill] sm:$0xff] %v5970_v35  ;;  %v1622_v47 = vpop.f32.mrf.mxu0 }
 0x15c   : > { %v5972_v9 = vpop.f32.mrf.mxu1 }
 0x15d   : > { %6462 = vst [vmem:[#allocation18_spill] sm:$0xff] %v5972_v9  ;;  %v5974_v2 = vpop.f32.mrf.mxu0  ;;  %v1288_v9 = vadd.f32 %v5874_v6, %v5773_v21  ;;  %v1287_v6 = vadd.f32 %v5899_v20, %v5792_v39 }
 0x15e   : > { %v5976_v50 = vpop.f32.mrf.mxu1 }
 0x15f   : > { %6463 = vst [vmem:[#allocation19_spill] sm:$0xff] %v5976_v50  ;;  %v5978_v43 = vpop.f32.mrf.mxu0  ;;  %v1451_v20 = vadd.f32 %v5869_v61, %v1287_v6 }
 0x160   : > { %v5980_v41 = vpop.f32.mrf.mxu1 }
 0x161   : > { %6464 = vst [vmem:[#allocation20_spill] sm:$0xff] %v5980_v41  ;;  %v5982_v60 = vpop.f32.mrf.mxu0  ;;  %v1286_v41 = vadd.f32 %v5885_v57, %v5777_v29 }
 0x162   : > { %v5984_v31 = vpop.f32.mrf.mxu1 }
 0x163   : > { %6465 = vst [vmem:[#allocation21_spill] sm:$0xff] %v5984_v31  ;;  %v5986_v48 = vpop.f32.mrf.mxu0  ;;  %v1452_v31 = vadd.f32 %v5842_v54, %v1288_v9  ;;  %v1450_v29 = vadd.f32 %v5855_v19, %v1286_v41  ;;  %v1290_v9 = vadd.f32 %v5913_v49, %v5807_v15 }
 0x164   : > { %v5988_v25 = vpop.f32.mrf.mxu1 }
 0x165   : > { %6466 = vst [vmem:[#allocation22_spill] sm:$0xff] %v5988_v25  ;;  %v5990_v35 = vpop.f32.mrf.mxu0  ;;  %v1289_v25 = vadd.f32 %v5894_v13, %v5784_v37  ;;  %v1669_v37 = vadd.f32 %v1606_v22, %v1450_v29 }
 0x166   : > { %6467 = vst [vmem:[#allocation23_spill] sm:$0xff] %v5990_v35  ;;  %v5994_v36 = vpop.f32.mrf.mxu1 }
 0x167   : > { %6468 = vst [vmem:[#allocation24_spill] sm:$0xff] %v5994_v36  ;;  %v5996_v50 = vpop.f32.mrf.mxu0  ;;  %v1671_v36 = vadd.f32 %v4521_v46, %v1452_v31  ;;  %v1453_v54 = vadd.f32 %v5862_v12, %v1289_v25  ;;  %v6037_v12 = vld [vmem:[%s6446_s3] ss:$0 sm:$0xff]  ;;  %v1670_v25 = vadd.f32 %v1609_v63, %v1451_v20  ;;  %v1896_v46 = vadd.f32 %v1833_v62, %v1669_v37 }
 0x168   : > { %v6000_v56 = vpop.f32.mrf.mxu1  ;;  %v1296_v63 = vadd.f32 %v5929_v42, %v5828_v40 }
 0x169   : > { %6469 = vst [vmem:[#allocation25_spill] sm:$0xff] %v6000_v56  ;;  %v6002_v24 = vpop.f32.mrf.mxu0  ;;  %v1292_v56 = vadd.f32 %v5906_v14, %v5801_v23  ;;  %v1672_v19 = vadd.f32 %v4522_v52, %v1453_v54  ;;  %v1898_v31 = vadd.f32 %v4539_v32, %v1671_v36  ;;  %v1293_v23 = vadd.f32 %v5918_v34, %v5811_v4 }
 0x16a   : > { %6470 = vst [vmem:[#allocation26_spill] sm:$0xff] %v6002_v24  ;;  %v6007_v35 = vpop.f32.mrf.mxu1  ;;  %v1291_v36 = vadd.f32 %v5923_v17, %v5821_v11  ;;  %v1454_v4 = vadd.f32 %v5891_v3, %v1290_v9  ;;  %v1897_v3 = vadd.f32 %v5960_v7, %v1670_v25 }
 0x16b   : > { %v6009_v21 = vpop.f32.mrf.mxu0  ;;  %v1456_v14 = vadd.f32 %v5877_v16, %v1292_v56  ;;  %v1899_v22 = vadd.f32 %v5956_v30, %v1672_v19  ;;  %v1457_v6 = vadd.f32 %v5896_v5, %v1293_v23  ;;  %v1294_v30 = vadd.f32 %v5936_v0, %v5832_v28 }
 0x16c   : > { %v6014_v57 = vpop.f32.mrf.mxu1  ;;  %v1673_v62 = vadd.f32 %v1622_v47, %v1454_v4  ;;  %v1455_v54 = vadd.f32 %v5903_v55, %v1291_v36  ;;  %v1297_v28 = vadd.f32 %v5940_v1, %v5838_v8  ;;  %v1460_v55 = vadd.f32 %v5909_v18, %v1296_v63  ;;  %v6473_v63 = vld [vmem:[#allocation9_spill] sm:$0xff] }
 0x16d   : > { %v6018_v24 = vpop.f32.mrf.mxu0  ;;  %v1675_v32 = vadd.f32 %v4525_v59, %v1456_v14  ;;  %v1676_v42 = vadd.f32 %v5974_v2, %v1457_v6  ;;  %v1458_v18 = vadd.f32 %v5916_v51, %v1294_v30  ;;  %v1300_v36 = vadd.f32 %v5949_v45, %v5858_v58 }
 0x16e   : > { %v6021_v13 = vpop.f32.mrf.mxu1  ;;  %v1900_v2 = vadd.f32 %v5964_v33, %v1673_v62  ;;  %v1679_v8 = vadd.f32 %v5982_v60, %v1460_v55  ;;  %v1461_v60 = vadd.f32 %v5920_v26, %v1297_v28  ;;  %v6475_v26 = vld [vmem:[#allocation23_spill] sm:$0xff] }
 0x16f   : > { %v6025_v39 = vpop.f32.mrf.mxu0  ;;  %v1902_v40 = vadd.f32 %v5962_v38, %v1675_v32  ;;  %v1674_v38 = vadd.f32 %v5978_v43, %v1455_v54  ;;  %v6478_v54 = vld [vmem:[#allocation10_spill] sm:$0xff] }
 0x170   : > { %v6029_v41 = vpop.f32.mrf.mxu1  ;;  %v1680_v6 = vadd.f32 %v6475_v26, %v1461_v60 }
 0x171   : > { %v4557_v15 = vpop.f32.mrf.mxu0 }
 0x172   : > { %v2062_v49 = vadd.f32 %v4557_v15, %v1898_v31  ;;  %v6041_v61 = vpop.f32.mrf.mxu1  ;;  %v1295_v15 = vadd.f32 %v5945_v27, %v5848_v44  ;;  %v1677_v44 = vadd.f32 %v5986_v48, %v1458_v18  ;;  %v6474_v48 = vld [vmem:[#allocation17_spill] sm:$0xff] }
 0x173   : > { %v1997_v16 = vpop.f32.mrf.mxu0  ;;  %v1906_v62 = vadd.f32 %v6474_v48, %v1679_v8 }
 0x174   : > { %v2084_v34 = vadd.f32 %v6037_v12, %v2062_v49  ;;  %v2060_v56 = vadd.f32 %v1997_v16, %v1896_v46  ;;  %v6048_v52 = vpop.f32.mrf.mxu1  ;;  %v1903_v49 = vadd.f32 %v5966_v53, %v1676_v42  ;;  %v1901_v16 = vadd.f32 %v5968_v10, %v1674_v38  ;;  %v6471_v53 = vld [vmem:[#allocation6_spill] sm:$0xff]  ;;  %v6481_v38 = vld [vmem:[#allocation16_spill] sm:$0xff] }
 0x175   : > { %v4558_v29 = vpop.f32.mrf.mxu0  ;;  %v1459_v58 = vadd.f32 %v6473_v63, %v1295_v15  ;;  %v6479_v42 = vld [vmem:[#allocation18_spill] sm:$0xff]  ;;  %v6483_v15 = vld [vmem:[#allocation11_spill] sm:$0xff] }
 0x176   : > { %v2100_v37 = vmax.f32 %v2084_v34, 0.0  ;;  %v2082_v11 = vadd.f32 %v6037_v12, %v2060_v56  ;;  %v2063_v17 = vadd.f32 %v4558_v29, %v1899_v22  ;;  %v6055_v59 = vpop.f32.mrf.mxu1  ;;  %v6472_v56 = vld [vmem:[#allocation14_spill] sm:$0xff] }
 0x177   : > { %v2000_v9 = vpop.f32.mrf.mxu0  ;;  %v1298_v22 = vadd.f32 %v6472_v56, %v6471_v53 }
 0x178   : > { %2116 = vst [vmem:[%s6062_s23 + $0x10] sm:$0xff] %v2100_v37  ;;  %v2098_v5 = vmax.f32 %v2082_v11, 0.0  ;;  %v2085_v7 = vadd.f32 %v6037_v12, %v2063_v17  ;;  %v2061_v47 = vadd.f32 %v2000_v9, %v1897_v3  ;;  %v6066_v19 = vpop.f32.mrf.mxu1  ;;  %v6476_v17 = vld [vmem:[#allocation7_spill] sm:$0xff]  ;;  %v1464_v9 = vadd.f32 %v6478_v54, %v1300_v36 }
 0x179   : > { %v4561_v0 = vpop.f32.mrf.mxu0  ;;  %v6477_v3 = vld [vmem:[#allocation15_spill] sm:$0xff]  ;;  %v1462_v8 = vadd.f32 %v6483_v15, %v1298_v22  ;;  %v6487_v22 = vld [vmem:[#allocation13_spill] sm:$0xff] }
 0x17a   : > { %2114 = vst [vmem:[%s6062_s23] sm:$0xff] %v2098_v5  ;;  %v2101_v20 = vmax.f32 %v2085_v7, 0.0  ;;  %v2083_v31 = vadd.f32 %v6037_v12, %v2061_v47  ;;  %v2066_v23 = vadd.f32 %v4561_v0, %v1902_v40  ;;  %v6075_v14 = vpop.f32.mrf.mxu1  ;;  %v1301_v30 = vadd.f32 %v6477_v3, %v6476_v17 }
 0x17b   : > { %v2013_v1 = vpop.f32.mrf.mxu0  ;;  %v1904_v5 = vadd.f32 %v6479_v42, %v1677_v44  ;;  %v1678_v7 = vadd.f32 %v5996_v50, %v1459_v58  ;;  %v1681_v36 = vadd.f32 %v6009_v21, %v1462_v8  ;;  %v6485_v44 = vld [vmem:[#allocation12_spill] sm:$0xff] }
 0x17c   : > { %2117 = vst [vmem:[%s6062_s23 + $0x18] sm:$0xff] %v2101_v20  ;;  %v2099_v33 = vmax.f32 %v2083_v31, 0.0  ;;  %v2088_v43 = vadd.f32 %v6037_v12, %v2066_v23  ;;  %v2064_v25 = vadd.f32 %v2013_v1, %v1900_v2  ;;  %v6084_v46 = vpop.f32.mrf.mxu1  ;;  %v6480_v2 = vld [vmem:[#allocation8_spill] sm:$0xff]  ;;  %v6482_v31 = vld [vmem:[#allocation26_spill] sm:$0xff]  ;;  %v1465_v60 = vadd.f32 %v6485_v44, %v1301_v30 }
 0x17d   : > { %v4562_v27 = vpop.f32.mrf.mxu0  ;;  %v1299_v20 = vadd.f32 %v6481_v38, %v6480_v2  ;;  %v1683_v23 = vadd.f32 %v6482_v31, %v1464_v9  ;;  %v6491_v31 = vld [vmem:[#allocation25_spill] sm:$0xff] }
 0x17e   : > { %2115 = vst [vmem:[%s6062_s23 + $0x8] sm:$0xff] %v2099_v33  ;;  %v2104_v51 = vmax.f32 %v2088_v43, 0.0  ;;  %v2086_v32 = vadd.f32 %v6037_v12, %v2064_v25  ;;  %v2067_v4 = vadd.f32 %v4562_v27, %v1903_v49  ;;  %v6093_v34 = vpop.f32.mrf.mxu1  ;;  %v6484_v43 = vld [vmem:[#allocation19_spill] sm:$0xff]  ;;  %v1684_v21 = vadd.f32 %v6018_v24, %v1465_v60 }
 0x17f   : > { %v2016_v45 = vpop.f32.mrf.mxu0  ;;  %v1907_v25 = vadd.f32 %v6484_v43, %v1680_v6  ;;  %v1463_v63 = vadd.f32 %v6487_v22, %v1299_v20 }
 0x180   : > { %2120 = vst [vmem:[%s6062_s23 + $0x30] sm:$0xff] %v2104_v51  ;;  %v2102_v29 = vmax.f32 %v2086_v32, 0.0  ;;  %v2089_v37 = vadd.f32 %v6037_v12, %v2067_v4  ;;  %v2065_v11 = vadd.f32 %v2016_v45, %v1901_v16  ;;  %v6102_v10 = vpop.f32.mrf.mxu1  ;;  %v6486_v16 = vld [vmem:[#allocation20_spill] sm:$0xff]  ;;  %v6488_v45 = vld [vmem:[#allocation21_spill] sm:$0xff] }
 0x181   : > { %v4565_v40 = vpop.f32.mrf.mxu0  ;;  %v1905_v53 = vadd.f32 %v6486_v16, %v1678_v7  ;;  %v1910_v48 = vadd.f32 %v6488_v45, %v1683_v23  ;;  %v1682_v3 = vadd.f32 %v6025_v39, %v1463_v63 }
 0x182   : > { %2118 = vst [vmem:[%s6062_s23 + $0x20] sm:$0xff] %v2102_v29  ;;  %v2105_v47 = vmax.f32 %v2089_v37, 0.0  ;;  %v2087_v28 = vadd.f32 %v6037_v12, %v2065_v11  ;;  %v2070_v55 = vadd.f32 %v4565_v40, %v1906_v62  ;;  %v6111_v0 = vpop.f32.mrf.mxu1  ;;  %v6489_v11 = vld [vmem:[#allocation22_spill] sm:$0xff] }
 0x183   : > { %v2029_v18 = vpop.f32.mrf.mxu0  ;;  %v1908_v17 = vadd.f32 %v6489_v11, %v1681_v36  ;;  %v1909_v23 = vadd.f32 %v6491_v31, %v1682_v3 }
 0x184   : > { %2121 = vst [vmem:[%s6062_s23 + $0x38] sm:$0xff] %v2105_v47  ;;  %v2103_v1 = vmax.f32 %v2087_v28, 0.0  ;;  %v2092_v50 = vadd.f32 %v6037_v12, %v2070_v55  ;;  %v2068_v33 = vadd.f32 %v2029_v18, %v1904_v5  ;;  %v6120_v49 = vpop.f32.mrf.mxu1  ;;  %v6490_v47 = vld [vmem:[#allocation24_spill] sm:$0xff] }
 0x185   : > { %v4566_v27 = vpop.f32.mrf.mxu0  ;;  %v1911_v28 = vadd.f32 %v6490_v47, %v1684_v21 }
 0x186   : > { %2119 = vst [vmem:[%s6062_s23 + $0x28] sm:$0xff] %v2103_v1  ;;  %v2108_v51 = vmax.f32 %v2092_v50, 0.0  ;;  %v2090_v32 = vadd.f32 %v6037_v12, %v2068_v33  ;;  %v2071_v4 = vadd.f32 %v4566_v27, %v1907_v25  ;;  %v6127_v56 = vpop.f32.mrf.mxu1 }
 0x187   : > { %v2032_v58 = vpop.f32.mrf.mxu0 }
 0x188   : > { %2124 = vst [vmem:[%s6062_s23 + $0x50] sm:$0xff] %v2108_v51  ;;  %v2106_v62 = vmax.f32 %v2090_v32, 0.0  ;;  %v2093_v26 = vadd.f32 %v6037_v12, %v2071_v4  ;;  %v2069_v6 = vadd.f32 %v2032_v58, %v1905_v53  ;;  %v6134_v29 = vpop.f32.mrf.mxu1 }
 0x189   : > { %v4569_v37 = vpop.f32.mrf.mxu0 }
 0x18a   : > { %2122 = vst [vmem:[%s6062_s23 + $0x40] sm:$0xff] %v2106_v62  ;;  %v2109_v30 = vmax.f32 %v2093_v26, 0.0  ;;  %v2091_v54 = vadd.f32 %v6037_v12, %v2069_v6  ;;  %v2074_v9 = vadd.f32 %v4569_v37, %v1910_v48  ;;  %v4611_v40 = vpop.f32.mrf.mxu1 }
 0x18b   : > { %v2045_v24 = vpop.f32.mrf.mxu0 }
 0x18c   : > { %2125 = vst [vmem:[%s6062_s23 + $0x58] sm:$0xff] %v2109_v30  ;;  %v2107_v42 = vmax.f32 %v2091_v54, 0.0  ;;  %v2096_v5 = vadd.f32 %v6037_v12, %v2074_v9  ;;  %v2072_v7 = vadd.f32 %v2045_v24, %v1908_v17  ;;  %v2583_v55 = vpop.f32.mrf.mxu1 }
 0x18d   : > { %v4570_v2 = vpop.f32.mrf.mxu0 }
 0x18e   : > { %2123 = vst [vmem:[%s6062_s23 + $0x48] sm:$0xff] %v2107_v42  ;;  %v2112_v39 = vmax.f32 %v2096_v5, 0.0  ;;  %v2094_v38 = vadd.f32 %v6037_v12, %v2072_v7  ;;  %v2075_v20 = vadd.f32 %v4570_v2, %v1911_v28  ;;  %v4612_v15 = vpop.f32.mrf.mxu1 }
 0x18f   : > { %v2048_v8 = vpop.f32.mrf.mxu0 }
 0x190   : > { %2128 = vst [vmem:[%s6062_s23 + $0x70] sm:$0xff] %v2112_v39  ;;  %v2110_v18 = vmax.f32 %v2094_v38, 0.0  ;;  %v2097_v1 = vadd.f32 %v6037_v12, %v2075_v20  ;;  %v2073_v50 = vadd.f32 %v2048_v8, %v1909_v23  ;;  %v2586_v33 = vpop.f32.mrf.mxu1 }
 0x191   : > { %v4593_v43 = vpop.f32.mrf.mxu0 }
 0x192   : > { %2126 = vst [vmem:[%s6062_s23 + $0x60] sm:$0xff] %v2110_v18  ;;  %v2113_v25 = vmax.f32 %v2097_v1, 0.0  ;;  %v2095_v36 = vadd.f32 %v6037_v12, %v2073_v50  ;;  %v2446_v44 = vadd.f32 %v4593_v43, %v6007_v35  ;;  %v4615_v60 = vpop.f32.mrf.mxu1 }
 0x193   : > { %v2437_v27 = vpop.f32.mrf.mxu0 }
 0x194   : > { %2129 = vst [vmem:[%s6062_s23 + $0x78] sm:$0xff] %v2113_v25  ;;  %v2111_v51 = vmax.f32 %v2095_v36, 0.0  ;;  %v2438_v32 = vadd.f32 %v2437_v27, %v6014_v57  ;;  %v2599_v4 = vpop.f32.mrf.mxu1  ;;  %v6153_v16 = vadd.f32 %v4611_v40, %v2446_v44 }
 0x195   : > { %v4594_v53 = vpop.f32.mrf.mxu0 }
 0x196   : > { %2127 = vst [vmem:[%s6062_s23 + $0x68] sm:$0xff] %v2111_v51  ;;  %v2449_v22 = vadd.f32 %v4594_v53, %v6021_v13  ;;  %v4616_v63 = vpop.f32.mrf.mxu1  ;;  %v6157_v58 = vadd.f32 %v2583_v55, %v2438_v32 }
 0x197   : > { %v2440_v45 = vpop.f32.mrf.mxu0 }
 0x198   : > { %v2441_v48 = vadd.f32 %v2440_v45, %v6029_v41  ;;  %v2602_v35 = vpop.f32.mrf.mxu1  ;;  %v6160_v21 = vadd.f32 %v4612_v15, %v2449_v22 }
 0x199   : > { %v4597_v62 = vpop.f32.mrf.mxu0 }
 0x19a   : > { %v2462_v26 = vadd.f32 %v4597_v62, %v6041_v61  ;;  %v4619_v57 = vpop.f32.mrf.mxu1  ;;  %v6163_v6 = vadd.f32 %v2586_v33, %v2441_v48 }
 0x19b   : > { %v2453_v37 = vpop.f32.mrf.mxu0 }
 0x19c   : > { %v2454_v11 = vadd.f32 %v2453_v37, %v6048_v52  ;;  %v2615_v17 = vpop.f32.mrf.mxu1  ;;  %v6166_v13 = vadd.f32 %v4615_v60, %v2462_v26 }
 0x19d   : > { %v4598_v3 = vpop.f32.mrf.mxu0 }
 0x19e   : > { %v2465_v30 = vadd.f32 %v4598_v3, %v6055_v59  ;;  %v4620_v54 = vpop.f32.mrf.mxu1  ;;  %v6169_v41 = vadd.f32 %v2599_v4, %v2454_v11 }
 0x19f   : > { %v2456_v9 = vpop.f32.mrf.mxu0 }
 0x1a0   : > { %v2457_v40 = vadd.f32 %v2456_v9, %v6066_v19  ;;  %v2618_v24 = vpop.f32.mrf.mxu1  ;;  %v6172_v61 = vadd.f32 %v4616_v63, %v2465_v30 }
 0x1a1   : > { %v4601_v42 = vpop.f32.mrf.mxu0 }
 0x1a2   : > { %v2478_v5 = vadd.f32 %v4601_v42, %v6075_v14  ;;  %v4623_v7 = vpop.f32.mrf.mxu1  ;;  %v6175_v52 = vadd.f32 %v2602_v35, %v2457_v40 }
 0x1a3   : > { %v2469_v47 = vpop.f32.mrf.mxu0 }
 0x1a4   : > { %v2470_v28 = vadd.f32 %v2469_v47, %v6084_v46  ;;  %v2631_v55 = vpop.f32.mrf.mxu1  ;;  %v6178_v59 = vadd.f32 %v4619_v57, %v2478_v5 }
 0x1a5   : > { %v4602_v2 = vpop.f32.mrf.mxu0 }
 0x1a6   : > { %v2481_v39 = vadd.f32 %v4602_v2, %v6093_v34  ;;  %v4624_v38 = vpop.f32.mrf.mxu1  ;;  %v6181_v19 = vadd.f32 %v2615_v17, %v2470_v28 }
 0x1a7   : > { %v2472_v20 = vpop.f32.mrf.mxu0 }
 0x1a8   : > { %v2473_v31 = vadd.f32 %v2472_v20, %v6102_v10  ;;  %v2634_v23 = vpop.f32.mrf.mxu1  ;;  %v6184_v14 = vadd.f32 %v4620_v54, %v2481_v39 }
 0x1a9   : > { %v4605_v15 = vpop.f32.mrf.mxu0 }
 0x1aa   : > { %v2494_v8 = vadd.f32 %v4605_v15, %v6111_v0  ;;  %v6187_v18 = vpop.f32.mrf.mxu1  ;;  %v6189_v46 = vadd.f32 %v2618_v24, %v2473_v31 }
 0x1ab   : > { %v2485_v1 = vpop.f32.mrf.mxu0 }
 0x1ac   : > { %v2486_v50 = vadd.f32 %v2485_v1, %v6120_v49  ;;  %v6192_v34 = vpop.f32.mrf.mxu1  ;;  %v6194_v33 = vadd.f32 %v4623_v7, %v2494_v8 }
 0x1ad   : > { %v4606_v43 = vpop.f32.mrf.mxu0 }
 0x1ae   : > { %v2497_v10 = vadd.f32 %v4606_v43, %v6127_v56  ;;  %v6197_v25 = vpop.f32.mrf.mxu1  ;;  %v6199_v36 = vadd.f32 %v2631_v55, %v2486_v50 }
 0x1af   : > { %v2488_v44 = vpop.f32.mrf.mxu0 }
 0x1b0   : > { %6492 = vst [vmem:[#allocation6_spill] sm:$0xff] %v6199_v36  ;;  %v2489_v0 = vadd.f32 %v2488_v44, %v6134_v29  ;;  %v6202_v60 = vpop.f32.mrf.mxu1  ;;  %v6204_v27 = vadd.f32 %v4624_v38, %v2497_v10 }
 0x1b1   : > { %v4629_v51 = vpop.f32.mrf.mxu0 }
 0x1b2   : > { %6493 = vst [vmem:[#allocation14_spill] sm:$0xff] %v6204_v27  ;;  %v6206_v49 = vpop.f32.mrf.mxu1  ;;  %v6208_v32 = vadd.f32 %v2634_v23, %v2489_v0 }
 0x1b3   : > { %v2801_v4 = vpop.f32.mrf.mxu0 }
 0x1b4   : > { %6494 = vst [vmem:[#allocation9_spill] sm:$0xff] %v6208_v32  ;;  %v6210_v53 = vpop.f32.mrf.mxu1 }
 0x1b5   : > { %v4630_v56 = vpop.f32.mrf.mxu0 }
 0x1b6   : > { %v6212_v22 = vpop.f32.mrf.mxu1 }
 0x1b7   : > { %v2804_v63 = vpop.f32.mrf.mxu0 }
 0x1b8   : > { %v6214_v45 = vpop.f32.mrf.mxu1 }
 0x1b9   : > { %v4633_v48 = vpop.f32.mrf.mxu0 }
 0x1ba   : > { %v6216_v29 = vpop.f32.mrf.mxu1 }
 0x1bb   : > { %v2817_v35 = vpop.f32.mrf.mxu0 }
 0x1bc   : > { %v6218_v62 = vpop.f32.mrf.mxu1 }
 0x1bd   : > { %v6220_v26 = vpop.f32.mrf.mxu0 }
 0x1be   : > { %v6222_v57 = vpop.f32.mrf.mxu1 }
 0x1bf   : > { %6495 = vst [vmem:[#allocation17_spill] sm:$0xff] %v6222_v57  ;;  %v6224_v37 = vpop.f32.mrf.mxu0 }
 0x1c0   : > { %v6226_v11 = vpop.f32.mrf.mxu1 }
 0x1c1   : > { %6496 = vst [vmem:[#allocation23_spill] sm:$0xff] %v6226_v11  ;;  %v6228_v17 = vpop.f32.mrf.mxu0 }
 0x1c2   : > { %v6230_v3 = vpop.f32.mrf.mxu1 }
 0x1c3   : > { %6497 = vst [vmem:[#allocation7_spill] sm:$0xff] %v6230_v3  ;;  %v6232_v30 = vpop.f32.mrf.mxu0 }
 0x1c4   : > { %v6234_v54 = vpop.f32.mrf.mxu1 }
 0x1c5   : > { %6498 = vst [vmem:[#allocation15_spill] sm:$0xff] %v6234_v54  ;;  %v6236_v9 = vpop.f32.mrf.mxu0 }
 0x1c6   : > { %v6238_v40 = vpop.f32.mrf.mxu1 }
 0x1c7   : > { %6499 = vst [vmem:[#allocation10_spill] sm:$0xff] %v6238_v40  ;;  %v6240_v24 = vpop.f32.mrf.mxu0 }
 0x1c8   : > { %v6242_v42 = vpop.f32.mrf.mxu1 }
 0x1c9   : > { %6500 = vst [vmem:[#allocation18_spill] sm:$0xff] %v6242_v42  ;;  %v6244_v5 = vpop.f32.mrf.mxu0 }
 0x1ca   : > { %v4683_v7 = vpop.f32.mrf.mxu1 }
 0x1cb   : > { %v6246_v47 = vpop.f32.mrf.mxu0 }
 0x1cc   : > { %6501 = vst [vmem:[#allocation8_spill] sm:$0xff] %v6246_v47  ;;  %v3406_v28 = vpop.f32.mrf.mxu1 }
 0x1cd   : > { %v6248_v55 = vpop.f32.mrf.mxu0 }
 0x1ce   : > { %6502 = vst [vmem:[#allocation16_spill] sm:$0xff] %v6248_v55  ;;  %v4684_v2 = vpop.f32.mrf.mxu1 }
 0x1cf   : > { %v6250_v39 = vpop.f32.mrf.mxu0 }
 0x1d0   : > { %6503 = vst [vmem:[#allocation26_spill] sm:$0xff] %v6250_v39  ;;  %v6252_v38 = vpop.f32.mrf.mxu1 }
 0x1d1   : > { %v4665_v20 = vpop.f32.mrf.mxu0 }
 0x1d2   : > { %v6254_v31 = vpop.f32.mrf.mxu1 }
 0x1d3   : > { %v3188_v23 = vpop.f32.mrf.mxu0 }
 0x1d4   : > { %v6256_v15 = vpop.f32.mrf.mxu1 }
 0x1d5   : > { %v4666_v8 = vpop.f32.mrf.mxu0 }
 0x1d6   : > { %v6258_v1 = vpop.f32.mrf.mxu1 }
 0x1d7   : > { %v3191_v50 = vpop.f32.mrf.mxu0 }
 0x1d8   : > { %v6260_v43 = vpop.f32.mrf.mxu1 }
 0x1d9   : > { %6504 = vst [vmem:[#allocation11_spill] sm:$0xff] %v6260_v43  ;;  %v4669_v10 = vpop.f32.mrf.mxu0 }
 0x1da   : > { %v6262_v44 = vpop.f32.mrf.mxu1 }
 0x1db   : > { %6505 = vst [vmem:[#allocation19_spill] sm:$0xff] %v6262_v44  ;;  %v3204_v0 = vpop.f32.mrf.mxu0  ;;  %v2866_v44 = vadd.f32 %v4629_v51, %v6153_v16 }
 0x1dc   : > { %v6264_v42 = vpop.f32.mrf.mxu1 }
 0x1dd   : > { %6506 = vst [vmem:[#allocation12_spill] sm:$0xff] %v6264_v42  ;;  %v4670_v40 = vpop.f32.mrf.mxu0  ;;  %v3091_v57 = vadd.f32 %v6187_v18, %v2866_v44 }
 0x1de   : > { %v6266_v54 = vpop.f32.mrf.mxu1 }
 0x1df   : > { %6507 = vst [vmem:[#allocation20_spill] sm:$0xff] %v6266_v54  ;;  %v6268_v39 = vpop.f32.mrf.mxu0  ;;  %v2864_v54 = vadd.f32 %v2801_v4, %v6157_v58  ;;  %v3253_v16 = vadd.f32 %v4665_v20, %v3091_v57 }
 0x1e0   : > { %v6270_v32 = vpop.f32.mrf.mxu1 }
 0x1e1   : > { %6508 = vst [vmem:[#allocation13_spill] sm:$0xff] %v6270_v32  ;;  %v6272_v3 = vpop.f32.mrf.mxu0  ;;  %v3089_v51 = vadd.f32 %v6192_v34, %v2864_v54  ;;  %v2871_v34 = vadd.f32 %v6220_v26, %v6172_v61  ;;  %v2874_v61 = vadd.f32 %v6228_v17, %v6178_v59 }
 0x1e2   : > { %v6274_v55 = vpop.f32.mrf.mxu1 }
 0x1e3   : > { %6509 = vst [vmem:[#allocation21_spill] sm:$0xff] %v6274_v55  ;;  %v6276_v27 = vpop.f32.mrf.mxu0  ;;  %v2867_v55 = vadd.f32 %v4630_v56, %v6160_v21  ;;  %v3251_v4 = vadd.f32 %v3188_v23, %v3089_v51  ;;  %v2868_v21 = vadd.f32 %v2817_v35, %v6169_v41  ;;  %v2869_v41 = vadd.f32 %v6224_v37, %v6175_v52 }
 0x1e4   : > { %6510 = vst [vmem:[#allocation22_spill] sm:$0xff] %v6276_v27  ;;  %v6278_v11 = vpop.f32.mrf.mxu1 }
 0x1e5   : > { %6511 = vst [vmem:[#allocation24_spill] sm:$0xff] %v6278_v11  ;;  %v6280_v47 = vpop.f32.mrf.mxu0  ;;  %v3469_v20 = vadd.f32 %v3406_v28, %v3251_v4 }
 0x1e6   : > { %6512 = vst [vmem:[#allocation25_spill] sm:$0xff] %v6280_v47  ;;  %v6283_v42 = vpop.f32.mrf.mxu1  ;;  %v2865_v47 = vadd.f32 %v2804_v63, %v6163_v6  ;;  %v3471_v6 = vadd.f32 %v4683_v7, %v3253_v16 }
 0x1e7   : > { %6513 = vst [vmem:[#allocation27_spill] sm:$0xff] %v6283_v42  ;;  %v6285_v36 = vpop.f32.mrf.mxu0 }
 0x1e8   : > { %6514 = vst [vmem:[#allocation28_spill] sm:$0xff] %v6285_v36  ;;  %v6288_v43 = vpop.f32.mrf.mxu1  ;;  %v2870_v36 = vadd.f32 %v4633_v48, %v6166_v13  ;;  %v3090_v44 = vadd.f32 %v6202_v60, %v2865_v47 }
 0x1e9   : > { %6515 = vst [vmem:[#allocation29_spill] sm:$0xff] %v6288_v43  ;;  %v6290_v32 = vpop.f32.mrf.mxu0  ;;  %v3092_v43 = vadd.f32 %v6197_v25, %v2867_v55  ;;  %v3093_v55 = vadd.f32 %v6210_v53, %v2868_v21 }
 0x1ea   : > { %6516 = vst [vmem:[#allocation30_spill] sm:$0xff] %v6290_v32  ;;  %v4719_v27 = vpop.f32.mrf.mxu1  ;;  %v3095_v13 = vadd.f32 %v6206_v49, %v2870_v36  ;;  %v3252_v57 = vadd.f32 %v3191_v50, %v3090_v44  ;;  %v3096_v49 = vadd.f32 %v6212_v22, %v2871_v34 }
 0x1eb   : > { %v6294_v11 = vpop.f32.mrf.mxu0  ;;  %v3254_v56 = vadd.f32 %v4666_v8, %v3092_v43  ;;  %v3255_v36 = vadd.f32 %v3204_v0, %v3093_v55  ;;  %v6520_v55 = vld [vmem:[#allocation6_spill] sm:$0xff] }
 0x1ec   : > { %v3793_v42 = vpop.f32.mrf.mxu1  ;;  %v3257_v35 = vadd.f32 %v4669_v10, %v3095_v13  ;;  %v3470_v52 = vadd.f32 %v6252_v38, %v3252_v57  ;;  %v3258_v53 = vadd.f32 %v4670_v40, %v3096_v49  ;;  %v2875_v38 = vadd.f32 %v6236_v9, %v6184_v14 }
 0x1ed   : > { %v6299_v58 = vpop.f32.mrf.mxu0  ;;  %v3472_v47 = vadd.f32 %v4684_v2, %v3254_v56  ;;  %v3094_v2 = vadd.f32 %v6214_v45, %v2869_v41  ;;  %v3473_v45 = vadd.f32 %v6256_v15, %v3255_v36  ;;  %v2873_v56 = vadd.f32 %v6240_v24, %v6189_v46  ;;  %v6518_v24 = vld [vmem:[#allocation17_spill] sm:$0xff]  ;;  %v6524_v36 = vld [vmem:[#allocation19_spill] sm:$0xff] }
 0x1ee   : > { %v4720_v32 = vpop.f32.mrf.mxu1  ;;  %v3475_v59 = vadd.f32 %v6254_v31, %v3257_v35  ;;  %v2878_v13 = vadd.f32 %v6244_v5, %v6194_v33  ;;  %v6523_v5 = vld [vmem:[#allocation23_spill] sm:$0xff] }
 0x1ef   : > { %v6303_v18 = vpop.f32.mrf.mxu0  ;;  %v3256_v51 = vadd.f32 %v6268_v39, %v3094_v2 }
 0x1f0   : > { %v3796_v63 = vpop.f32.mrf.mxu1 }
 0x1f1   : > { %v4701_v48 = vpop.f32.mrf.mxu0 }
 0x1f2   : > { %v3696_v54 = vadd.f32 %v4701_v48, %v3471_v6  ;;  %v4723_v25 = vpop.f32.mrf.mxu1  ;;  %v6517_v48 = vld [vmem:[#allocation22_spill] sm:$0xff] }
 0x1f3   : > { %v3631_v23 = vpop.f32.mrf.mxu0 }
 0x1f4   : > { %v3858_v60 = vadd.f32 %v4719_v27, %v3696_v54  ;;  %v3694_v7 = vadd.f32 %v3631_v23, %v3469_v20  ;;  %v3809_v8 = vpop.f32.mrf.mxu1  ;;  %v2872_v27 = vadd.f32 %v6232_v30, %v6181_v19  ;;  %v3099_v19 = vadd.f32 %v6216_v29, %v2874_v61  ;;  %v6521_v23 = vld [vmem:[#allocation8_spill] sm:$0xff] }
 0x1f5   : > { %v4702_v26 = vpop.f32.mrf.mxu0  ;;  %v3476_v29 = vadd.f32 %v6258_v1, %v3258_v53  ;;  %v6527_v53 = vld [vmem:[#allocation28_spill] sm:$0xff] }
 0x1f6   : > { %v3874_v28 = vadd.f32 %v6037_v12, %v3858_v60  ;;  %v3856_v50 = vadd.f32 %v3793_v42, %v3694_v7  ;;  %v3697_v43 = vadd.f32 %v4702_v26, %v3472_v47  ;;  %v4724_v37 = vpop.f32.mrf.mxu1  ;;  %v3261_v14 = vadd.f32 %v6272_v3, %v3099_v19  ;;  %v6522_v7 = vld [vmem:[#allocation25_spill] sm:$0xff] }
 0x1f7   : > { %v3634_v10 = vpop.f32.mrf.mxu0  ;;  %v3097_v9 = vadd.f32 %v6218_v62, %v2872_v27  ;;  %v3100_v3 = vadd.f32 %v6518_v24, %v2875_v38  ;;  %v6519_v62 = vld [vmem:[#allocation11_spill] sm:$0xff]  ;;  %v2876_v60 = vadd.f32 %v6521_v23, %v6520_v55  ;;  %v3098_v47 = vadd.f32 %v6523_v5, %v2873_v56  ;;  %v6536_v24 = vld [vmem:[#allocation13_spill] sm:$0xff] }
 0x1f8   : > { %v3890_v17 = vmax.f32 %v3874_v28, 0.0  ;;  %v3872_v22 = vadd.f32 %v6037_v12, %v3856_v50  ;;  %v3859_v0 = vadd.f32 %v4720_v32, %v3697_v43  ;;  %v3695_v16 = vadd.f32 %v3634_v10, %v3470_v52  ;;  %v3812_v42 = vpop.f32.mrf.mxu1  ;;  %v6526_v52 = vld [vmem:[#allocation16_spill] sm:$0xff]  ;;  %v6528_v10 = vld [vmem:[#allocation7_spill] sm:$0xff]  ;;  %v6538_v55 = vld [vmem:[#allocation21_spill] sm:$0xff] }
 0x1f9   : > { %v4705_v30 = vpop.f32.mrf.mxu0  ;;  %v3259_v46 = vadd.f32 %v6517_v48, %v3097_v9  ;;  %v3474_v54 = vadd.f32 %v6519_v62, %v3256_v51  ;;  %v3262_v33 = vadd.f32 %v6522_v7, %v3100_v3  ;;  %v3479_v49 = vadd.f32 %v6524_v36, %v3261_v14  ;;  %v6534_v9 = vld [vmem:[#allocation20_spill] sm:$0xff] }
 0x1fa   : > { %3906 = vst [vmem:[%s6062_s23 + $0x90] sm:$0xff] %v3890_v17  ;;  %v3888_v40 = vmax.f32 %v3872_v22, 0.0  ;;  %v3875_v31 = vadd.f32 %v6037_v12, %v3859_v0  ;;  %v3857_v4 = vadd.f32 %v3796_v63, %v3695_v16  ;;  %v3700_v21 = vadd.f32 %v4705_v30, %v3475_v59  ;;  %v4727_v32 = vpop.f32.mrf.mxu1  ;;  %v6529_v22 = vld [vmem:[#allocation12_spill] sm:$0xff] }
 0x1fb   : > { %v3647_v39 = vpop.f32.mrf.mxu0  ;;  %v3260_v2 = vadd.f32 %v6527_v53, %v3098_v47  ;;  %v3103_v59 = vadd.f32 %v6528_v10, %v2878_v13  ;;  %v3477_v0 = vadd.f32 %v6529_v22, %v3259_v46  ;;  %v6541_v10 = vld [vmem:[#allocation29_spill] sm:$0xff] }
 0x1fc   : > { %3904 = vst [vmem:[%s6062_s23 + $0x80] sm:$0xff] %v3888_v40  ;;  %v3891_v15 = vmax.f32 %v3875_v31, 0.0  ;;  %v3873_v44 = vadd.f32 %v6037_v12, %v3857_v4  ;;  %v3862_v6 = vadd.f32 %v4723_v25, %v3700_v21  ;;  %v3698_v34 = vadd.f32 %v3647_v39, %v3473_v45  ;;  %v3825_v63 = vpop.f32.mrf.mxu1  ;;  %v6531_v45 = vld [vmem:[#allocation26_spill] sm:$0xff]  ;;  %v6533_v21 = vld [vmem:[#allocation15_spill] sm:$0xff] }
 0x1fd   : > { %v4706_v57 = vpop.f32.mrf.mxu0  ;;  %v6532_v31 = vld [vmem:[#allocation30_spill] sm:$0xff]  ;;  %v3101_v56 = vadd.f32 %v6533_v21, %v2876_v60  ;;  %v3480_v39 = vadd.f32 %v6534_v9, %v3262_v33  ;;  %v3478_v3 = vadd.f32 %v6536_v24, %v3260_v2 }
 0x1fe   : > { %3907 = vst [vmem:[%s6062_s23 + $0x98] sm:$0xff] %v3891_v15  ;;  %v3889_v1 = vmax.f32 %v3873_v44, 0.0  ;;  %v3878_v20 = vadd.f32 %v6037_v12, %v3862_v6  ;;  %v3860_v41 = vadd.f32 %v3809_v8, %v3698_v34  ;;  %v3701_v35 = vadd.f32 %v4706_v57, %v3476_v29  ;;  %v4728_v25 = vpop.f32.mrf.mxu1  ;;  %v6525_v8 = vld [vmem:[#allocation14_spill] sm:$0xff] }
 0x1ff   : > { %v3650_v61 = vpop.f32.mrf.mxu0  ;;  %v2879_v27 = vadd.f32 %v6526_v52, %v6525_v8  ;;  %v3265_v4 = vadd.f32 %v6532_v31, %v3103_v59  ;;  %v6535_v34 = vld [vmem:[#allocation10_spill] sm:$0xff] }
 0x200   : > { %3905 = vst [vmem:[%s6062_s23 + $0x88] sm:$0xff] %v3889_v1  ;;  %v3894_v26 = vmax.f32 %v3878_v20, 0.0  ;;  %v3876_v28 = vadd.f32 %v6037_v12, %v3860_v41  ;;  %v3863_v50 = vadd.f32 %v4724_v37, %v3701_v35  ;;  %v3699_v43 = vadd.f32 %v3650_v61, %v3474_v54  ;;  %v3828_v16 = vpop.f32.mrf.mxu1  ;;  %v6530_v37 = vld [vmem:[#allocation9_spill] sm:$0xff] }
 0x201   : > { %v4709_v17 = vpop.f32.mrf.mxu0  ;;  %v2877_v40 = vadd.f32 %v6531_v45, %v6530_v37  ;;  %v3104_v13 = vadd.f32 %v6535_v34, %v2879_v27 }
 0x202   : > { %3910 = vst [vmem:[%s6062_s23 + $0xb0] sm:$0xff] %v3894_v26  ;;  %v3892_v38 = vmax.f32 %v3876_v28, 0.0  ;;  %v3879_v51 = vadd.f32 %v6037_v12, %v3863_v50  ;;  %v3861_v19 = vadd.f32 %v3812_v42, %v3699_v43  ;;  %v3704_v30 = vadd.f32 %v4709_v17, %v3479_v49  ;;  %v4731_v46 = vpop.f32.mrf.mxu1  ;;  %v6540_v43 = vld [vmem:[#allocation27_spill] sm:$0xff] }
 0x203   : > { %v3663_v14 = vpop.f32.mrf.mxu0  ;;  %v3263_v42 = vadd.f32 %v6294_v11, %v3101_v56  ;;  %v3266_v20 = vadd.f32 %v6299_v58, %v3104_v13  ;;  %v3483_v11 = vadd.f32 %v6538_v55, %v3265_v4 }
 0x204   : > { %3908 = vst [vmem:[%s6062_s23 + $0xa0] sm:$0xff] %v3892_v38  ;;  %v3895_v29 = vmax.f32 %v3879_v51, 0.0  ;;  %v3877_v15 = vadd.f32 %v6037_v12, %v3861_v19  ;;  %v3866_v44 = vadd.f32 %v4727_v32, %v3704_v30  ;;  %v3702_v6 = vadd.f32 %v3663_v14, %v3477_v0  ;;  %v6537_v32 = vld [vmem:[#allocation18_spill] sm:$0xff]  ;;  %v3841_v47 = vpop.f32.mrf.mxu1 }
 0x205   : > { %v4710_v48 = vpop.f32.mrf.mxu0  ;;  %v3102_v41 = vadd.f32 %v6537_v32, %v2877_v40  ;;  %v3484_v8 = vadd.f32 %v6540_v43, %v3266_v20 }
 0x206   : > { %3911 = vst [vmem:[%s6062_s23 + $0xb8] sm:$0xff] %v3895_v29  ;;  %v3893_v57 = vmax.f32 %v3877_v15, 0.0  ;;  %v3882_v62 = vadd.f32 %v6037_v12, %v3866_v44  ;;  %v3864_v54 = vadd.f32 %v3825_v63, %v3702_v6  ;;  %v3705_v1 = vadd.f32 %v4710_v48, %v3480_v39  ;;  %v6539_v63 = vld [vmem:[#allocation24_spill] sm:$0xff]  ;;  %v4732_v53 = vpop.f32.mrf.mxu1 }
 0x207   : > { %v3666_v35 = vpop.f32.mrf.mxu0  ;;  %v3264_v5 = vadd.f32 %v6303_v18, %v3102_v41  ;;  %v3481_v36 = vadd.f32 %v6539_v63, %v3263_v42 }
 0x208   : > { %3909 = vst [vmem:[%s6062_s23 + $0xa8] sm:$0xff] %v3893_v57  ;;  %v3898_v23 = vmax.f32 %v3882_v62, 0.0  ;;  %v3880_v60 = vadd.f32 %v6037_v12, %v3864_v54  ;;  %v3867_v7 = vadd.f32 %v4728_v25, %v3705_v1  ;;  %v3703_v33 = vadd.f32 %v3666_v35, %v3478_v3  ;;  %v3844_v45 = vpop.f32.mrf.mxu1 }
 0x209   : > { %v4713_v61 = vpop.f32.mrf.mxu0  ;;  %v3482_v59 = vadd.f32 %v6541_v10, %v3264_v5 }
 0x20a   : > { %3914 = vst [vmem:[%s6062_s23 + $0xd0] sm:$0xff] %v3898_v23  ;;  %v3896_v58 = vmax.f32 %v3880_v60, 0.0  ;;  %v3883_v49 = vadd.f32 %v6037_v12, %v3867_v7  ;;  %v3865_v26 = vadd.f32 %v3828_v16, %v3703_v33  ;;  %v3708_v28 = vadd.f32 %v4713_v61, %v3483_v11 }
 0x20b   : > { %v3679_v50 = vpop.f32.mrf.mxu0 }
 0x20c   : > { %3912 = vst [vmem:[%s6062_s23 + $0xc0] sm:$0xff] %v3896_v58  ;;  %v3899_v25 = vmax.f32 %v3883_v49, 0.0  ;;  %v3881_v52 = vadd.f32 %v6037_v12, %v3865_v26  ;;  %v3870_v18 = vadd.f32 %v4731_v46, %v3708_v28  ;;  %v3706_v27 = vadd.f32 %v3679_v50, %v3481_v36 }
 0x20d   : > { %v4714_v2 = vpop.f32.mrf.mxu0 }
 0x20e   : > { %3915 = vst [vmem:[%s6062_s23 + $0xd8] sm:$0xff] %v3899_v25  ;;  %v3897_v17 = vmax.f32 %v3881_v52, 0.0  ;;  %v3886_v22 = vadd.f32 %v6037_v12, %v3870_v18  ;;  %v3868_v0 = vadd.f32 %v3841_v47, %v3706_v27  ;;  %v3709_v16 = vadd.f32 %v4714_v2, %v3484_v8 }
 0x20f   : > { %v3682_v38 = vpop.f32.mrf.mxu0 }
 0x210   : > { %3913 = vst [vmem:[%s6062_s23 + $0xc8] sm:$0xff] %v3897_v17  ;;  %v3902_v51 = vmax.f32 %v3886_v22, 0.0  ;;  %v3884_v19 = vadd.f32 %v6037_v12, %v3868_v0  ;;  %v3871_v30 = vadd.f32 %v4732_v53, %v3709_v16  ;;  %v3707_v37 = vadd.f32 %v3682_v38, %v3482_v59 }
 0x212   : > { %3918 = vst [vmem:[%s6062_s23 + $0xf0] sm:$0xff] %v3902_v51  ;;  %v3900_v40 = vmax.f32 %v3884_v19, 0.0  ;;  %v3887_v31 = vadd.f32 %v6037_v12, %v3871_v30  ;;  %v3869_v4 = vadd.f32 %v3844_v45, %v3707_v37 }
 0x214   : > { %3916 = vst [vmem:[%s6062_s23 + $0xe0] sm:$0xff] %v3900_v40  ;;  %v3903_v21 = vmax.f32 %v3887_v31, 0.0  ;;  %v3885_v56 = vadd.f32 %v6037_v12, %v3869_v4 }
 0x216   : > { %3919 = vst [vmem:[%s6062_s23 + $0xf8] sm:$0xff] %v3903_v21  ;;  %v3901_v14 = vmax.f32 %v3885_v56, 0.0 }
 0x218   : > { %3917 = vst [vmem:[%s6062_s23 + $0xe8] sm:$0xff] %v3901_v14 }
 0x219   : > { %4865 = shalt.err (!%p4862_p4)
}
 0x21a   : > { %s4866_s10 = scalar_lea.hbm %s6395_s5, 4096  ;;  %s4870_s13 = scalar_lea.hbm %s6447_s4, 12288 }
 0x21b   : > { %p4867_p7 = scmp.ne.s32.totalorder %s6395_s5, %s4866_s10  ;;  %p4871_p10 = scmp.lt.s32.totalorder %s6395_s5, %s6447_s4 }
 0x21c   : > { %p4872_p11 = scmp.lt.s32.totalorder %s4870_s13, %s4866_s10 }
 0x21d   : > { %p4868_p8 = pnand %p4867_p7, %p4980_p5 }
 0x21e   : > { %p4873_p12 = por %p4872_p11, %p4871_p10 }
 0x21f   : > { %p4869_p9 = pneg %p4868_p8 }
 0x221   : > { %p4874_p13 = pnand %p4873_p12, %p4869_p9 }
 0x223   : > { %4877 = shalt.err (!%p4874_p13)
}
 0x224   : > { %s4915_s22 = smov 128   ;;  %s4916_s23 = smov 8  }
 0x225   : > { %4752 = dma.vmem_to_hbm [thread:$0]  (%p4980_p5), %s6397_s28, 4096, %s6395_s5, %s6403_s19, %s4915_s22, %s4915_s22, %s4916_s23  }
 0x226 PF: > { %p4758_p0 = scmp.ge.s32.totalorder %s4912_s18, 2  ;;  %s3949_s27 = sand.u32 1, %s4900_s15  }
 0x227   : > { %s3950_s29 = scalar_lea.sflag [#allocation4], %s3949_s27 }
 0x228   : > { %p4755_p1 = pnand %p4758_p0, %p4984_p6 }
 0x22a   : > { %p4756_p2 = pneg %p4755_p1 }
 0x22c   : > { %4895 = dma.done.wait (%p4756_p2), %s3950_s29, 4096  }
 0x22d   : > { %4897 = vsyncadd (%p4756_p2), %s3950_s29, 4294963200  ;;  %p14_p3 = scmp.ge.s32.totalorder %s4967_s21, 5   ;;  %s6542_s15 = smov %s4904_s16 }
 0x22e   : > { %s6543_s16 = smov %s4908_s17  ;;  %s6544_s17 = smov %s4978_s24 }
 0x22f   : > { %s6545_s18 = smov %s4967_s21  ;;  %16 = sbr.rel (!%p14_p3) target bundleno = 3 (0x3), region = 82 }
 0x234   :  { %3955 = vsyncpa [#allocation4], 1 }
 0x235   :  { %3957 = vsyncpa [#allocation4 + $0x1], 1 }

</bundles_post_ra>
